<compile_context>
chip_gen: v6e
topology: v6e:2x2x1
jax: 0.10.0
libtpu: 0.0.40
codegen_flags: <defaults>
</compile_context>

<pallas_src>
import functools

import jax
import jax.numpy as jnp
from jax.experimental import pallas as pl
from jax.experimental.pallas import tpu as pltpu


LANE = 128          # TPU lane width: keep channel dims padded to multiples of this
TK_MAX = 2304       # max K tile (per-step A/W blocks stay far below VMEM limits)


def _rup(c, m=LANE):
    return ((c + m - 1) // m) * m


def _choose_tm(m):
    """Row tile: >=2 tiles when possible (v7x has 2 TensorCores), multiple of 16."""
    if m < 16:
        return m
    for tm in (512, 256, 128, 64, 32, 16):
        if m % tm == 0 and m // tm >= 2:
            return tm
    return m


def _choose_tk(k):
    if k <= TK_MAX:
        return k
    for tk in (2304, 1152, 512, 256, 128):
        if k % tk == 0:
            return tk
    return k


# ------------------------------ Pallas kernel ------------------------------ #

def _fused_matmul_kernel(*refs, dual, affine, activation):
    """acc += A@W (+ A2@W2); epilogue: +bias [, *scale+shift] [, relu|sigmoid]."""
    idx = 0
    a_ref = refs[idx]; idx += 1
    w_ref = refs[idx]; idx += 1
    if dual:
        a2_ref, w2_ref = refs[idx], refs[idx + 1]; idx += 2
    bias_ref = refs[idx]; idx += 1
    if affine:
        scale_ref, shift_ref = refs[idx], refs[idx + 1]; idx += 2
    o_ref, acc_ref = refs[idx], refs[idx + 1]

    k = pl.program_id(1)

    @pl.when(k == 0)
    def _init():
        acc_ref[...] = jnp.zeros_like(acc_ref)

    acc_ref[...] += jnp.dot(a_ref[...], w_ref[...],
                            preferred_element_type=jnp.float32)
    if dual:
        acc_ref[...] += jnp.dot(a2_ref[...], w2_ref[...],
                                preferred_element_type=jnp.float32)

    @pl.when(k == pl.num_programs(1) - 1)
    def _finalize():
        y = acc_ref[...] + bias_ref[...]           # f32 epilogue
        if affine:
            y = y * scale_ref[...] + shift_ref[...]
        if activation == "relu":
            y = jnp.maximum(y, 0.0)
        elif activation == "sigmoid":
            y = 1.0 / (1.0 + jnp.exp(-y))
        o_ref[...] = y.astype(o_ref.dtype)


def fused_matmul(a, w, bias, *, activation="none", scale=None, shift=None,
                 a2=None, w2=None, out_dtype=jnp.bfloat16):
    """out = epilogue(A@W [+ A2@W2] + bias); bf16 inputs, f32 accumulate."""
    a = a.astype(jnp.bfloat16)
    m, k = a.shape
    n = w.shape[1]
    tm = _choose_tm(m)
    tk = _choose_tk(k)
    grid = (pl.cdiv(m, tm), k // tk)
    dual = a2 is not None
    affine = scale is not None

    in_specs = [pl.BlockSpec((tm, tk), lambda i, kk: (i, kk)),
                pl.BlockSpec((tk, n), lambda i, kk: (kk, 0))]
    args = [a, w.astype(jnp.bfloat16)]
    if dual:
        assert a2.shape == (m, k) and w2.shape == w.shape
        in_specs += [pl.BlockSpec((tm, tk), lambda i, kk: (i, kk)),
                     pl.BlockSpec((tk, n), lambda i, kk: (kk, 0))]
        args += [a2.astype(jnp.bfloat16), w2.astype(jnp.bfloat16)]
    in_specs.append(pl.BlockSpec((1, n), lambda i, kk: (0, 0)))
    args.append(bias.reshape(1, n).astype(jnp.float32))
    if affine:
        in_specs += [pl.BlockSpec((1, n), lambda i, kk: (0, 0))] * 2
        args += [scale.reshape(1, n).astype(jnp.float32),
                 shift.reshape(1, n).astype(jnp.float32)]

    kernel = functools.partial(_fused_matmul_kernel, dual=dual, affine=affine,
                               activation=activation)
    return pl.pallas_call(
        kernel,
        out_shape=jax.ShapeDtypeStruct((m, n), out_dtype),
        grid=grid,
        in_specs=in_specs,
        out_specs=pl.BlockSpec((tm, n), lambda i, kk: (i, 0)),
        scratch_shapes=[pltpu.VMEM((tm, n), jnp.float32)],
        compiler_params=pltpu.CompilerParams(
            dimension_semantics=("parallel", "arbitrary"),
            vmem_limit_bytes=48 * 1024 * 1024),     # sized for v7x's 64 MiB VMEM
    )(*args)


# --------------------------- conv lowering (glue) --------------------------- #

def _im2col_3x3(x):
    """x: [B,H,W,Cp] -> patches [B*H*W, 9*Cp] with (kh,kw) outer, channel inner."""
    b, h, w, c = x.shape
    xp = jnp.pad(x, ((0, 0), (1, 1), (1, 1), (0, 0)))
    cols = [xp[:, kh:kh + h, kw:kw + w, :] for kh in range(3) for kw in range(3)]
    return jnp.concatenate(cols, axis=-1).reshape(b * h * w, 9 * c)


def conv3x3(x, w_mat, bias, *, activation="none", scale=None, shift=None,
            shortcut_x=None, shortcut_w=None, out_dtype=jnp.bfloat16):
    """Conv2d(k3,s1,p1) as one fused matmul; optional fused shortcut conv + add."""
    b, h, w, _ = x.shape
    n = w_mat.shape[1]
    a = _im2col_3x3(x)
    a2 = _im2col_3x3(shortcut_x) if shortcut_x is not None else None
    out = fused_matmul(a, w_mat, bias, activation=activation, scale=scale,
                       shift=shift, a2=a2, w2=shortcut_w, out_dtype=out_dtype)
    return out.reshape(b, h, w, n)


def upsample2x(x, w_all, b_all, cpo):
    """ConvTranspose2d(k3,s2,p1,op1) via the 4 output-parity classes.

    A = [x, x[.,j+1], x[i+1,.], x[i+1,j+1]]  ->  one matmul with a [4Cp, 4Cp]
    block weight; columns = parity classes (0,0),(0,1),(1,0),(1,1), then
    pixel-shuffled back to [B, 2H, 2W, Cp]. No multiply-by-inserted-zeros.
    """
    b, h, w, cpi = x.shape
    x_r = jnp.pad(x, ((0, 0), (0, 0), (0, 1), (0, 0)))[:, :, 1:, :]
    x_d = jnp.pad(x, ((0, 0), (0, 1), (0, 0), (0, 0)))[:, 1:, :, :]
    x_dr = jnp.pad(x, ((0, 0), (0, 1), (0, 1), (0, 0)))[:, 1:, 1:, :]
    a = jnp.concatenate([x, x_r, x_d, x_dr], axis=-1).reshape(b * h * w, 4 * cpi)
    y = fused_matmul(a, w_all, b_all)                       # [B*H*W, 4*cpo]
    y = y.reshape(b, h, w, 2, 2, cpo)
    y = jnp.transpose(y, (0, 1, 3, 2, 4, 5)).reshape(b, 2 * h, 2 * w, cpo)
    return y


# --------------------- parameters (synthetic) & prepare --------------------- #

def init_params(key, input_shape, base_dim=8, latent_dim=32,
                block_per_scale=1, depth_per_block=2):
    desired_scale = input_shape[2]
    data_depth = input_shape[1]
    scales, dims = [], []
    s, d = 2, base_dim
    while s <= desired_scale:
        scales.append(s)
        dims.append(d)
        s *= 2
        d = min(d * 2, 1024)
    assert scales[-1] == desired_scale
    dims = list(reversed(dims))

    keys = iter(jax.random.split(key, 256))

    def nrm(shape, scale=0.05):
        return scale * jax.random.normal(next(keys), shape, dtype=jnp.float32)

    params = {}
    fc_out = 2 * 2 * dims[0]
    params["fc0_w"] = nrm((latent_dim, fc_out))      # stored [in, out] for y = x @ W
    params["fc0_b"] = nrm((fc_out,))

    params["stages"] = []
    for i in range(len(scales) - 1):
        c_in, c_out = dims[i], dims[i + 1]
        st = {"up_w": nrm((c_in, c_out, 3, 3)),      # ConvTranspose2d [Cin, Cout, 3, 3]
              "up_b": nrm((c_out,)), "blocks": []}
        for _ in range(block_per_scale):
            blk = {"bn_scale": [], "bn_shift": [], "conv_w": [], "conv_b": []}
            for _ in range(depth_per_block):
                gamma = jnp.ones((c_out,), jnp.float32)
                beta = jnp.zeros((c_out,), jnp.float32)
                mean = nrm((c_out,), 0.01)
                var = jnp.ones((c_out,), jnp.float32)
                sc = gamma / jnp.sqrt(var + 1e-5)        # eval-mode BN folded to affine
                sh = beta - mean * sc
                blk["bn_scale"].append(sc)
                blk["bn_shift"].append(sh)
                blk["conv_w"].append(nrm((c_out, c_out, 3, 3)))
                blk["conv_b"].append(nrm((c_out,)))
            blk["short_w"] = nrm((c_out, c_out, 3, 3))
            blk["short_b"] = nrm((c_out,))
            st["blocks"].append(blk)
        params["stages"].append(st)

    params["out_w"] = nrm((data_depth, dims[-1], 3, 3))
    params["out_b"] = nrm((data_depth,))
    params["loggamma"] = jnp.zeros((), jnp.float32)
    meta = {"dims": dims, "depth_per_block": depth_per_block,
            "data_depth": data_depth}
    return params, meta


def _pad_vec(v, n):
    return jnp.pad(v, (0, n - v.shape[0]))


def _conv_w_to_mat(w_oihw, cpi, cpo):
    """PyTorch Conv2d weight [Cout,Cin,3,3] -> [(kh,kw,Cin_pad), Cout_pad]."""
    co, ci = w_oihw.shape[0], w_oihw.shape[1]
    w = jnp.transpose(w_oihw, (2, 3, 1, 0))                       # [3,3,Cin,Cout]
    w = jnp.pad(w, ((0, 0), (0, 0), (0, cpi - ci), (0, cpo - co)))
    return w.reshape(9 * cpi, cpo)


def _deconv_w_to_mat(w_iohw, cpi, cpo):
    """ConvTranspose2d weight [Cin,Cout,3,3] -> [4*Cin_pad, 4*Cout_pad] block matrix.

    Rows: taps t0..t3 = x[i,j], x[i,j+1], x[i+1,j], x[i+1,j+1].
    Cols: output parity classes (di,dj) = (0,0),(0,1),(1,0),(1,1).
    M(a,b) = w[:, :, 2-a, 2-b]  (flipped kernel tap as a [Cin,Cout] matrix).
    """
    ci, co = w_iohw.shape[0], w_iohw.shape[1]

    def m(a, b):
        return jnp.pad(w_iohw[:, :, 2 - a, 2 - b],
                       ((0, cpi - ci), (0, cpo - co)))

    z = jnp.zeros((cpi, cpo), w_iohw.dtype)
    grid = [[m(1, 1), m(1, 0), m(0, 1), m(0, 0)],
            [z,       m(1, 2), z,       m(0, 2)],
            [z,       z,       m(2, 1), m(2, 0)],
            [z,       z,       z,       m(2, 2)]]
    return jnp.concatenate([jnp.concatenate(r, axis=1) for r in grid], axis=0)


def prepare_params(params, meta):
    """One-time (outside jit) layout transforms: pad to 128 lanes, bf16 weights."""
    dims = meta["dims"]
    depth = meta["depth_per_block"]
    bf = jnp.bfloat16
    prep = {"fc0_w": params["fc0_w"].astype(bf),
            "fc0_b": params["fc0_b"].astype(jnp.float32),
            "loggamma": params["loggamma"],
            "stages": []}
    for i, st in enumerate(params["stages"]):
        c_in, c_out = dims[i], dims[i + 1]
        cpi, cpo = _rup(c_in), _rup(c_out)
        stp = {"up_w": _deconv_w_to_mat(st["up_w"], cpi, cpo).astype(bf),
               "up_b": jnp.tile(_pad_vec(st["up_b"], cpo), 4).astype(jnp.float32),
               "blocks": []}
        for blk in st["blocks"]:
            bp = {"bn_scale": [_pad_vec(s, cpo).astype(jnp.float32)
                               for s in blk["bn_scale"]],
                  "bn_shift": [_pad_vec(s, cpo).astype(jnp.float32)
                               for s in blk["bn_shift"]],
                  "conv_w": [_conv_w_to_mat(w, cpo, cpo).astype(bf)
                             for w in blk["conv_w"]],
                  "conv_b": [_pad_vec(b, cpo).astype(jnp.float32)
                             for b in blk["conv_b"]],
                  "short_w": _conv_w_to_mat(blk["short_w"], cpo, cpo).astype(bf),
                  # last conv bias + shortcut bias folded into one epilogue bias
                  "last_b": _pad_vec(blk["conv_b"][depth - 1] + blk["short_b"],
                                     cpo).astype(jnp.float32)}
            stp["blocks"].append(bp)
        prep["stages"].append(stp)
    cpl = _rup(dims[-1])
    cp_out = _rup(meta["data_depth"])
    prep["out_w"] = _conv_w_to_mat(params["out_w"], cpl, cp_out).astype(bf)
    prep["out_b"] = _pad_vec(params["out_b"], cp_out).astype(jnp.float32)
    return prep


# ------------------------------- forward pass ------------------------------- #

def resnet_decoder_forward(prep, meta, x):
    dims = meta["dims"]
    depth = meta["depth_per_block"]
    data_depth = meta["data_depth"]
    b = x.shape[0]
    d0 = dims[0]

    # fc0 (Pallas matmul); PyTorch reshape is NCHW -> go NHWC, pad channels to 128.
    y = fused_matmul(x.astype(jnp.bfloat16), prep["fc0_w"], prep["fc0_b"])
    y = jnp.transpose(y.reshape(b, d0, 2, 2), (0, 2, 3, 1))          # [B,2,2,d0]
    y = jnp.pad(y, ((0, 0), (0, 0), (0, 0), (0, _rup(d0) - d0)))

    for i, stp in enumerate(prep["stages"]):
        cpo = _rup(dims[i + 1])
        # UpSample: ConvTranspose2d(k3,s2,p1,op1) -> one lane-dense matmul
        y = upsample2x(y, stp["up_w"], stp["up_b"], cpo)
        # ScaleBlock: pre-activation ResBlocks
        for bp in stp["blocks"]:
            x_in = y
            # First BN+ReLU stays in XLA glue (f32): the conv must zero-pad the
            # *activated* tensor, so it cannot be folded into the patch prologue;
            # XLA fuses this elementwise into the im2col under jit.
            h = jnp.maximum(x_in.astype(jnp.float32) * bp["bn_scale"][0]
                            + bp["bn_shift"][0], 0.0).astype(jnp.bfloat16)
            for d in range(depth):
                if d < depth - 1:
                    # conv_d with the NEXT BN affine + ReLU fused into the epilogue
                    h = conv3x3(h, bp["conv_w"][d], bp["conv_b"][d],
                                activation="relu",
                                scale=bp["bn_scale"][d + 1],
                                shift=bp["bn_shift"][d + 1])
                else:
                    # last conv + shortcut conv + residual add fused in one kernel
                    h = conv3x3(h, bp["conv_w"][d], bp["last_b"],
                                shortcut_x=x_in, shortcut_w=bp["short_w"])
            y = h

    # Final conv + sigmoid (fused epilogue), lane-dense padded output -> slice.
    y = conv3x3(y, prep["out_w"], prep["out_b"], activation="sigmoid",
                out_dtype=jnp.float32)
    x_hat = jnp.transpose(y[..., :data_depth], (0, 3, 1, 2))         # back to NCHW

    loggamma_x = prep["loggamma"]
    gamma_x = jnp.exp(loggamma_x)        # scalar exp: trivial, left in plain JAX
    return x_hat, loggamma_x, gamma_x


# ----------------------------------- main ----------------------------------- #

if __name__ == "__main__":
    key = jax.random.PRNGKey(0)
    k_param, k_x = jax.random.split(key)

    # Target image shape (B, C, H, W) and latent dim, kept small.
    input_shape = (2, 3, 8, 8)
    latent_dim = 32

    params, meta = init_params(k_param, input_shape, base_dim=8,
                               latent_dim=latent_dim)
    prep = prepare_params(params, meta)      # weight layout transforms hoisted out of the hot path
    x = jax.random.normal(k_x, (input_shape[0], latent_dim), dtype=jnp.float32)

    forward = jax.jit(lambda p, z: resnet_decoder_forward(p, meta, z))
    x_hat, loggamma_x, gamma_x = forward(prep, x)
    jax.block_until_ready((x_hat, loggamma_x, gamma_x))

    assert x_hat.shape == input_shape, x_hat.shape
    assert loggamma_x.shape == () and gamma_x.shape == ()
    print("KERNEL_OK")
</pallas_src>

<mosaic_0001>
module attributes {stable_mosaic.version = 11 : i64} {
  func.func @_fused_matmul_kernel(%arg0: i32, %arg1: i32, %arg2: memref<2x32xbf16, #tpu.memory_space<vmem>>, %arg3: memref<32x128xbf16, #tpu.memory_space<vmem>>, %arg4: memref<1x128xf32, #tpu.memory_space<vmem>>, %arg5: memref<2x128xbf16, #tpu.memory_space<vmem>>, %arg6: memref<2x128xf32, #tpu.memory_space<vmem>>) attributes {dimension_semantics = [#tpu.dimension_semantics<parallel>, #tpu.dimension_semantics<arbitrary>], iteration_bounds = array<i64: 1, 1>, scalar_prefetch = 0 : i64, scratch_operands = 1 : i64, tpu.core_type = #tpu.core_type<tc>, window_params = [{transform_indices = @transform_0, window_bounds = array<i64: 2, 32>}, {transform_indices = @transform_1, window_bounds = array<i64: 32, 128>}, {pipeline_mode = #tpu.pipeline_mode<synchronous>, transform_indices = @transform_2, window_bounds = array<i64: 1, 128>}, {transform_indices = @transform_3, window_bounds = array<i64: 2, 128>}]} {
    %c0_i32 = arith.constant 0 : i32
    %0 = arith.cmpi eq, %arg1, %c0_i32 : i32
    %1 = arith.extui %0 : i1 to i32
    %c0_i32_0 = arith.constant 0 : i32
    %2 = arith.cmpi ne, %1, %c0_i32_0 : i32
    scf.if %2 {
      %cst_10 = arith.constant 0.000000e+00 : f32
      %12 = vector.broadcast %cst_10 : f32 to vector<2x128xf32>
      %c0_11 = arith.constant 0 : index
      %c0_12 = arith.constant 0 : index
      %13 = vector.load %arg6[%c0_11, %c0_12] : memref<2x128xf32, #tpu.memory_space<vmem>>, vector<2x128xf32>
      tpu.vector_store %arg6[%c0_11, %c0_12], %12 {strides = array<i32>} : memref<2x128xf32, #tpu.memory_space<vmem>>, vector<2x128xf32>,
    } else {
    }
    %c0 = arith.constant 0 : index
    %c0_1 = arith.constant 0 : index
    %3 = vector.load %arg6[%c0, %c0_1] : memref<2x128xf32, #tpu.memory_space<vmem>>, vector<2x128xf32>
    %c0_2 = arith.constant 0 : index
    %c0_3 = arith.constant 0 : index
    %4 = vector.load %arg2[%c0_2, %c0_3] : memref<2x32xbf16, #tpu.memory_space<vmem>>, vector<2x32xbf16>
    %c0_4 = arith.constant 0 : index
    %c0_5 = arith.constant 0 : index
    %5 = vector.load %arg3[%c0_4, %c0_5] : memref<32x128xbf16, #tpu.memory_space<vmem>>, vector<32x128xbf16>
    %cst = arith.constant dense<0.000000e+00> : vector<2x128xf32>
    %6 = tpu.matmul %4, %5, %cst {dimension_numbers = #tpu.dot_dimension_numbers<[1], [0], [0], [1], [0, 0, 1, 1], [], []>} : vector<2x32xbf16>, vector<32x128xbf16>, vector<2x128xf32> -> vector<2x128xf32>
    %7 = arith.addf %3, %6 : vector<2x128xf32>
    %c0_6 = arith.constant 0 : index
    %c0_7 = arith.constant 0 : index
    %8 = vector.load %arg6[%c0_6, %c0_7] : memref<2x128xf32, #tpu.memory_space<vmem>>, vector<2x128xf32>
    tpu.vector_store %arg6[%c0_6, %c0_7], %7 {strides = array<i32>} : memref<2x128xf32, #tpu.memory_space<vmem>>, vector<2x128xf32>,
    %c0_i32_8 = arith.constant 0 : i32
    %9 = arith.cmpi eq, %arg1, %c0_i32_8 : i32
    %10 = arith.extui %9 : i1 to i32
    %c0_i32_9 = arith.constant 0 : i32
    %11 = arith.cmpi ne, %10, %c0_i32_9 : i32
    scf.if %11 {
      %c0_10 = arith.constant 0 : index
      %c0_11 = arith.constant 0 : index
      %12 = vector.load %arg6[%c0_10, %c0_11] : memref<2x128xf32, #tpu.memory_space<vmem>>, vector<2x128xf32>
      %c0_12 = arith.constant 0 : index
      %c0_13 = arith.constant 0 : index
      %13 = vector.load %arg4[%c0_12, %c0_13] : memref<1x128xf32, #tpu.memory_space<vmem>>, vector<1x128xf32>
      %14 = vector.broadcast %13 : vector<1x128xf32> to vector<2x128xf32>
      %15 = arith.addf %12, %14 : vector<2x128xf32>
      %16 = arith.truncf %15 : vector<2x128xf32> to vector<2x128xbf16>
      %c0_14 = arith.constant 0 : index
      %c0_15 = arith.constant 0 : index
      %17 = vector.load %arg5[%c0_14, %c0_15] : memref<2x128xbf16, #tpu.memory_space<vmem>>, vector<2x128xbf16>
      tpu.vector_store %arg5[%c0_14, %c0_15], %16 {strides = array<i32>} : memref<2x128xbf16, #tpu.memory_space<vmem>>, vector<2x128xbf16>,
    } else {
    }
    return
  }
  func.func @transform_0(%arg0: i32, %arg1: i32) -> (i32, i32) {
    %c0_i32 = arith.constant 0 : i32
    return %arg0, %arg1 : i32, i32
  }
  func.func @transform_1(%arg0: i32, %arg1: i32) -> (i32, i32) {
    %c0_i32 = arith.constant 0 : i32
    %c0_i32_0 = arith.constant 0 : i32
    return %arg1, %c0_i32 : i32, i32
  }
  func.func @transform_2(%arg0: i32, %arg1: i32) -> (i32, i32) {
    %c0_i32 = arith.constant 0 : i32
    %c0_i32_0 = arith.constant 0 : i32
    %c0_i32_1 = arith.constant 0 : i32
    return %c0_i32, %c0_i32_0 : i32, i32
  }
  func.func @transform_3(%arg0: i32, %arg1: i32) -> (i32, i32) {
    %c0_i32 = arith.constant 0 : i32
    %c0_i32_0 = arith.constant 0 : i32
    return %arg0, %c0_i32 : i32, i32
  }
}

module attributes {stable_mosaic.version = 11 : i64} {
  func.func @_fused_matmul_kernel(%arg0: i32, %arg1: i32, %arg2: memref<8x512xbf16, #tpu.memory_space<vmem>>, %arg3: memref<512x512xbf16, #tpu.memory_space<vmem>>, %arg4: memref<1x512xf32, #tpu.memory_space<vmem>>, %arg5: memref<8x512xbf16, #tpu.memory_space<vmem>>, %arg6: memref<8x512xf32, #tpu.memory_space<vmem>>) attributes {dimension_semantics = [#tpu.dimension_semantics<parallel>, #tpu.dimension_semantics<arbitrary>], iteration_bounds = array<i64: 1, 1>, scalar_prefetch = 0 : i64, scratch_operands = 1 : i64, tpu.core_type = #tpu.core_type<tc>, window_params = [{transform_indices = @transform_0, window_bounds = array<i64: 8, 512>}, {transform_indices = @transform_1, window_bounds = array<i64: 512, 512>}, {pipeline_mode = #tpu.pipeline_mode<synchronous>, transform_indices = @transform_2, window_bounds = array<i64: 1, 512>}, {transform_indices = @transform_3, window_bounds = array<i64: 8, 512>}]} {
    %c0_i32 = arith.constant 0 : i32
    %0 = arith.cmpi eq, %arg1, %c0_i32 : i32
    %1 = arith.extui %0 : i1 to i32
    %c0_i32_0 = arith.constant 0 : i32
    %2 = arith.cmpi ne, %1, %c0_i32_0 : i32
    scf.if %2 {
      %cst_10 = arith.constant 0.000000e+00 : f32
      %12 = vector.broadcast %cst_10 : f32 to vector<8x512xf32>
      %c0_11 = arith.constant 0 : index
      %c0_12 = arith.constant 0 : index
      %13 = vector.load %arg6[%c0_11, %c0_12] : memref<8x512xf32, #tpu.memory_space<vmem>>, vector<8x512xf32>
      tpu.vector_store %arg6[%c0_11, %c0_12], %12 {strides = array<i32>} : memref<8x512xf32, #tpu.memory_space<vmem>>, vector<8x512xf32>,
    } else {
    }
    %c0 = arith.constant 0 : index
    %c0_1 = arith.constant 0 : index
    %3 = vector.load %arg6[%c0, %c0_1] : memref<8x512xf32, #tpu.memory_space<vmem>>, vector<8x512xf32>
    %c0_2 = arith.constant 0 : index
    %c0_3 = arith.constant 0 : index
    %4 = vector.load %arg2[%c0_2, %c0_3] : memref<8x512xbf16, #tpu.memory_space<vmem>>, vector<8x512xbf16>
    %c0_4 = arith.constant 0 : index
    %c0_5 = arith.constant 0 : index
    %5 = vector.load %arg3[%c0_4, %c0_5] : memref<512x512xbf16, #tpu.memory_space<vmem>>, vector<512x512xbf16>
    %cst = arith.constant dense<0.000000e+00> : vector<8x512xf32>
    %6 = tpu.matmul %4, %5, %cst {dimension_numbers = #tpu.dot_dimension_numbers<[1], [0], [0], [1], [0, 0, 1, 1], [], []>} : vector<8x512xbf16>, vector<512x512xbf16>, vector<8x512xf32> -> vector<8x512xf32>
    %7 = arith.addf %3, %6 : vector<8x512xf32>
    %c0_6 = arith.constant 0 : index
    %c0_7 = arith.constant 0 : index
    %8 = vector.load %arg6[%c0_6, %c0_7] : memref<8x512xf32, #tpu.memory_space<vmem>>, vector<8x512xf32>
    tpu.vector_store %arg6[%c0_6, %c0_7], %7 {strides = array<i32>} : memref<8x512xf32, #tpu.memory_space<vmem>>, vector<8x512xf32>,
    %c0_i32_8 = arith.constant 0 : i32
    %9 = arith.cmpi eq, %arg1, %c0_i32_8 : i32
    %10 = arith.extui %9 : i1 to i32
    %c0_i32_9 = arith.constant 0 : i32
    %11 = arith.cmpi ne, %10, %c0_i32_9 : i32
    scf.if %11 {
      %c0_10 = arith.constant 0 : index
      %c0_11 = arith.constant 0 : index
      %12 = vector.load %arg6[%c0_10, %c0_11] : memref<8x512xf32, #tpu.memory_space<vmem>>, vector<8x512xf32>
      %c0_12 = arith.constant 0 : index
      %c0_13 = arith.constant 0 : index
      %13 = vector.load %arg4[%c0_12, %c0_13] : memref<1x512xf32, #tpu.memory_space<vmem>>, vector<1x512xf32>
      %14 = vector.broadcast %13 : vector<1x512xf32> to vector<8x512xf32>
      %15 = arith.addf %12, %14 : vector<8x512xf32>
      %16 = arith.truncf %15 : vector<8x512xf32> to vector<8x512xbf16>
      %c0_14 = arith.constant 0 : index
      %c0_15 = arith.constant 0 : index
      %17 = vector.load %arg5[%c0_14, %c0_15] : memref<8x512xbf16, #tpu.memory_space<vmem>>, vector<8x512xbf16>
      tpu.vector_store %arg5[%c0_14, %c0_15], %16 {strides = array<i32>} : memref<8x512xbf16, #tpu.memory_space<vmem>>, vector<8x512xbf16>,
    } else {
    }
    return
  }
  func.func @transform_0(%arg0: i32, %arg1: i32) -> (i32, i32) {
    %c0_i32 = arith.constant 0 : i32
    return %arg0, %arg1 : i32, i32
  }
  func.func @transform_1(%arg0: i32, %arg1: i32) -> (i32, i32) {
    %c0_i32 = arith.constant 0 : i32
    %c0_i32_0 = arith.constant 0 : i32
    return %arg1, %c0_i32 : i32, i32
  }
  func.func @transform_2(%arg0: i32, %arg1: i32) -> (i32, i32) {
    %c0_i32 = arith.constant 0 : i32
    %c0_i32_0 = arith.constant 0 : i32
    %c0_i32_1 = arith.constant 0 : i32
    return %c0_i32, %c0_i32_0 : i32, i32
  }
  func.func @transform_3(%arg0: i32, %arg1: i32) -> (i32, i32) {
    %c0_i32 = arith.constant 0 : i32
    %c0_i32_0 = arith.constant 0 : i32
    return %arg0, %c0_i32 : i32, i32
  }
}

module attributes {stable_mosaic.version = 11 : i64} {
  func.func @_fused_matmul_kernel(%arg0: i32, %arg1: i32, %arg2: memref<16x1152xbf16, #tpu.memory_space<vmem>>, %arg3: memref<1152x128xbf16, #tpu.memory_space<vmem>>, %arg4: memref<1x128xf32, #tpu.memory_space<vmem>>, %arg5: memref<1x128xf32, #tpu.memory_space<vmem>>, %arg6: memref<1x128xf32, #tpu.memory_space<vmem>>, %arg7: memref<16x128xbf16, #tpu.memory_space<vmem>>, %arg8: memref<16x128xf32, #tpu.memory_space<vmem>>) attributes {dimension_semantics = [#tpu.dimension_semantics<parallel>, #tpu.dimension_semantics<arbitrary>], iteration_bounds = array<i64: 2, 1>, scalar_prefetch = 0 : i64, scratch_operands = 1 : i64, tpu.core_type = #tpu.core_type<tc>, window_params = [{transform_indices = @transform_0, window_bounds = array<i64: 16, 1152>}, {transform_indices = @transform_1, window_bounds = array<i64: 1152, 128>}, {pipeline_mode = #tpu.pipeline_mode<synchronous>, transform_indices = @transform_2, window_bounds = array<i64: 1, 128>}, {pipeline_mode = #tpu.pipeline_mode<synchronous>, transform_indices = @transform_3, window_bounds = array<i64: 1, 128>}, {pipeline_mode = #tpu.pipeline_mode<synchronous>, transform_indices = @transform_4, window_bounds = array<i64: 1, 128>}, {transform_indices = @transform_5, window_bounds = array<i64: 16, 128>}]} {
    %c0_i32 = arith.constant 0 : i32
    %0 = arith.cmpi eq, %arg1, %c0_i32 : i32
    %1 = arith.extui %0 : i1 to i32
    %c0_i32_0 = arith.constant 0 : i32
    %2 = arith.cmpi ne, %1, %c0_i32_0 : i32
    scf.if %2 {
      %cst_10 = arith.constant 0.000000e+00 : f32
      %12 = vector.broadcast %cst_10 : f32 to vector<16x128xf32>
      %c0_11 = arith.constant 0 : index
      %c0_12 = arith.constant 0 : index
      %13 = vector.load %arg8[%c0_11, %c0_12] : memref<16x128xf32, #tpu.memory_space<vmem>>, vector<16x128xf32>
      tpu.vector_store %arg8[%c0_11, %c0_12], %12 {strides = array<i32>} : memref<16x128xf32, #tpu.memory_space<vmem>>, vector<16x128xf32>,
    } else {
    }
    %c0 = arith.constant 0 : index
    %c0_1 = arith.constant 0 : index
    %3 = vector.load %arg8[%c0, %c0_1] : memref<16x128xf32, #tpu.memory_space<vmem>>, vector<16x128xf32>
    %c0_2 = arith.constant 0 : index
    %c0_3 = arith.constant 0 : index
    %4 = vector.load %arg2[%c0_2, %c0_3] : memref<16x1152xbf16, #tpu.memory_space<vmem>>, vector<16x1152xbf16>
    %c0_4 = arith.constant 0 : index
    %c0_5 = arith.constant 0 : index
    %5 = vector.load %arg3[%c0_4, %c0_5] : memref<1152x128xbf16, #tpu.memory_space<vmem>>, vector<1152x128xbf16>
    %cst = arith.constant dense<0.000000e+00> : vector<16x128xf32>
    %6 = tpu.matmul %4, %5, %cst {dimension_numbers = #tpu.dot_dimension_numbers<[1], [0], [0], [1], [0, 0, 1, 1], [], []>} : vector<16x1152xbf16>, vector<1152x128xbf16>, vector<16x128xf32> -> vector<16x128xf32>
    %7 = arith.addf %3, %6 : vector<16x128xf32>
    %c0_6 = arith.constant 0 : index
    %c0_7 = arith.constant 0 : index
    %8 = vector.load %arg8[%c0_6, %c0_7] : memref<16x128xf32, #tpu.memory_space<vmem>>, vector<16x128xf32>
    tpu.vector_store %arg8[%c0_6, %c0_7], %7 {strides = array<i32>} : memref<16x128xf32, #tpu.memory_space<vmem>>, vector<16x128xf32>,
    %c0_i32_8 = arith.constant 0 : i32
    %9 = arith.cmpi eq, %arg1, %c0_i32_8 : i32
    %10 = arith.extui %9 : i1 to i32
    %c0_i32_9 = arith.constant 0 : i32
    %11 = arith.cmpi ne, %10, %c0_i32_9 : i32
    scf.if %11 {
      %c0_10 = arith.constant 0 : index
      %c0_11 = arith.constant 0 : index
      %12 = vector.load %arg8[%c0_10, %c0_11] : memref<16x128xf32, #tpu.memory_space<vmem>>, vector<16x128xf32>
      %c0_12 = arith.constant 0 : index
      %c0_13 = arith.constant 0 : index
      %13 = vector.load %arg4[%c0_12, %c0_13] : memref<1x128xf32, #tpu.memory_space<vmem>>, vector<1x128xf32>
      %14 = vector.broadcast %13 : vector<1x128xf32> to vector<16x128xf32>
      %15 = arith.addf %12, %14 : vector<16x128xf32>
      %c0_14 = arith.constant 0 : index
      %c0_15 = arith.constant 0 : index
      %16 = vector.load %arg5[%c0_14, %c0_15] : memref<1x128xf32, #tpu.memory_space<vmem>>, vector<1x128xf32>
      %17 = vector.broadcast %16 : vector<1x128xf32> to vector<16x128xf32>
      %18 = arith.mulf %15, %17 : vector<16x128xf32>
      %c0_16 = arith.constant 0 : index
      %c0_17 = arith.constant 0 : index
      %19 = vector.load %arg6[%c0_16, %c0_17] : memref<1x128xf32, #tpu.memory_space<vmem>>, vector<1x128xf32>
      %20 = vector.broadcast %19 : vector<1x128xf32> to vector<16x128xf32>
      %21 = arith.addf %18, %20 : vector<16x128xf32>
      %cst_18 = arith.constant 0.000000e+00 : f32
      %22 = vector.broadcast %cst_18 : f32 to vector<16x128xf32>
      %23 = arith.maximumf %21, %22 : vector<16x128xf32>
      %24 = arith.truncf %23 : vector<16x128xf32> to vector<16x128xbf16>
      %c0_19 = arith.constant 0 : index
      %c0_20 = arith.constant 0 : index
      %25 = vector.load %arg7[%c0_19, %c0_20] : memref<16x128xbf16, #tpu.memory_space<vmem>>, vector<16x128xbf16>
      tpu.vector_store %arg7[%c0_19, %c0_20], %24 {strides = array<i32>} : memref<16x128xbf16, #tpu.memory_space<vmem>>, vector<16x128xbf16>,
    } else {
    }
    return
  }
  func.func @transform_0(%arg0: i32, %arg1: i32) -> (i32, i32) {
    %c0_i32 = arith.constant 0 : i32
    return %arg0, %arg1 : i32, i32
  }
  func.func @transform_1(%arg0: i32, %arg1: i32) -> (i32, i32) {
    %c0_i32 = arith.constant 0 : i32
    %c0_i32_0 = arith.constant 0 : i32
    return %arg1, %c0_i32 : i32, i32
  }
  func.func @transform_2(%arg0: i32, %arg1: i32) -> (i32, i32) {
    %c0_i32 = arith.constant 0 : i32
    %c0_i32_0 = arith.constant 0 : i32
    %c0_i32_1 = arith.constant 0 : i32
    return %c0_i32, %c0_i32_0 : i32, i32
  }
  func.func @transform_3(%arg0: i32, %arg1: i32) -> (i32, i32) {
    %c0_i32 = arith.constant 0 : i32
    %c0_i32_0 = arith.constant 0 : i32
    %c0_i32_1 = arith.constant 0 : i32
    return %c0_i32, %c0_i32_0 : i32, i32
  }
  func.func @transform_4(%arg0: i32, %arg1: i32) -> (i32, i32) {
    %c0_i32 = arith.constant 0 : i32
    %c0_i32_0 = arith.constant 0 : i32
    %c0_i32_1 = arith.constant 0 : i32
    return %c0_i32, %c0_i32_0 : i32, i32
  }
  func.func @transform_5(%arg0: i32, %arg1: i32) -> (i32, i32) {
    %c0_i32 = arith.constant 0 : i32
    %c0_i32_0 = arith.constant 0 : i32
    return %arg0, %c0_i32 : i32, i32
  }
}

module attributes {stable_mosaic.version = 11 : i64} {
  func.func @_fused_matmul_kernel(%arg0: i32, %arg1: i32, %arg2: memref<16x512xbf16, #tpu.memory_space<vmem>>, %arg3: memref<512x512xbf16, #tpu.memory_space<vmem>>, %arg4: memref<1x512xf32, #tpu.memory_space<vmem>>, %arg5: memref<16x512xbf16, #tpu.memory_space<vmem>>, %arg6: memref<16x512xf32, #tpu.memory_space<vmem>>) attributes {dimension_semantics = [#tpu.dimension_semantics<parallel>, #tpu.dimension_semantics<arbitrary>], iteration_bounds = array<i64: 2, 1>, scalar_prefetch = 0 : i64, scratch_operands = 1 : i64, tpu.core_type = #tpu.core_type<tc>, window_params = [{transform_indices = @transform_0, window_bounds = array<i64: 16, 512>}, {transform_indices = @transform_1, window_bounds = array<i64: 512, 512>}, {pipeline_mode = #tpu.pipeline_mode<synchronous>, transform_indices = @transform_2, window_bounds = array<i64: 1, 512>}, {transform_indices = @transform_3, window_bounds = array<i64: 16, 512>}]} {
    %c0_i32 = arith.constant 0 : i32
    %0 = arith.cmpi eq, %arg1, %c0_i32 : i32
    %1 = arith.extui %0 : i1 to i32
    %c0_i32_0 = arith.constant 0 : i32
    %2 = arith.cmpi ne, %1, %c0_i32_0 : i32
    scf.if %2 {
      %cst_10 = arith.constant 0.000000e+00 : f32
      %12 = vector.broadcast %cst_10 : f32 to vector<16x512xf32>
      %c0_11 = arith.constant 0 : index
      %c0_12 = arith.constant 0 : index
      %13 = vector.load %arg6[%c0_11, %c0_12] : memref<16x512xf32, #tpu.memory_space<vmem>>, vector<16x512xf32>
      tpu.vector_store %arg6[%c0_11, %c0_12], %12 {strides = array<i32>} : memref<16x512xf32, #tpu.memory_space<vmem>>, vector<16x512xf32>,
    } else {
    }
    %c0 = arith.constant 0 : index
    %c0_1 = arith.constant 0 : index
    %3 = vector.load %arg6[%c0, %c0_1] : memref<16x512xf32, #tpu.memory_space<vmem>>, vector<16x512xf32>
    %c0_2 = arith.constant 0 : index
    %c0_3 = arith.constant 0 : index
    %4 = vector.load %arg2[%c0_2, %c0_3] : memref<16x512xbf16, #tpu.memory_space<vmem>>, vector<16x512xbf16>
    %c0_4 = arith.constant 0 : index
    %c0_5 = arith.constant 0 : index
    %5 = vector.load %arg3[%c0_4, %c0_5] : memref<512x512xbf16, #tpu.memory_space<vmem>>, vector<512x512xbf16>
    %cst = arith.constant dense<0.000000e+00> : vector<16x512xf32>
    %6 = tpu.matmul %4, %5, %cst {dimension_numbers = #tpu.dot_dimension_numbers<[1], [0], [0], [1], [0, 0, 1, 1], [], []>} : vector<16x512xbf16>, vector<512x512xbf16>, vector<16x512xf32> -> vector<16x512xf32>
    %7 = arith.addf %3, %6 : vector<16x512xf32>
    %c0_6 = arith.constant 0 : index
    %c0_7 = arith.constant 0 : index
    %8 = vector.load %arg6[%c0_6, %c0_7] : memref<16x512xf32, #tpu.memory_space<vmem>>, vector<16x512xf32>
    tpu.vector_store %arg6[%c0_6, %c0_7], %7 {strides = array<i32>} : memref<16x512xf32, #tpu.memory_space<vmem>>, vector<16x512xf32>,
    %c0_i32_8 = arith.constant 0 : i32
    %9 = arith.cmpi eq, %arg1, %c0_i32_8 : i32
    %10 = arith.extui %9 : i1 to i32
    %c0_i32_9 = arith.constant 0 : i32
    %11 = arith.cmpi ne, %10, %c0_i32_9 : i32
    scf.if %11 {
      %c0_10 = arith.constant 0 : index
      %c0_11 = arith.constant 0 : index
      %12 = vector.load %arg6[%c0_10, %c0_11] : memref<16x512xf32, #tpu.memory_space<vmem>>, vector<16x512xf32>
      %c0_12 = arith.constant 0 : index
      %c0_13 = arith.constant 0 : index
      %13 = vector.load %arg4[%c0_12, %c0_13] : memref<1x512xf32, #tpu.memory_space<vmem>>, vector<1x512xf32>
      %14 = vector.broadcast %13 : vector<1x512xf32> to vector<16x512xf32>
      %15 = arith.addf %12, %14 : vector<16x512xf32>
      %16 = arith.truncf %15 : vector<16x512xf32> to vector<16x512xbf16>
      %c0_14 = arith.constant 0 : index
      %c0_15 = arith.constant 0 : index
      %17 = vector.load %arg5[%c0_14, %c0_15] : memref<16x512xbf16, #tpu.memory_space<vmem>>, vector<16x512xbf16>
      tpu.vector_store %arg5[%c0_14, %c0_15], %16 {strides = array<i32>} : memref<16x512xbf16, #tpu.memory_space<vmem>>, vector<16x512xbf16>,
    } else {
    }
    return
  }
  func.func @transform_0(%arg0: i32, %arg1: i32) -> (i32, i32) {
    %c0_i32 = arith.constant 0 : i32
    return %arg0, %arg1 : i32, i32
  }
  func.func @transform_1(%arg0: i32, %arg1: i32) -> (i32, i32) {
    %c0_i32 = arith.constant 0 : i32
    %c0_i32_0 = arith.constant 0 : i32
    return %arg1, %c0_i32 : i32, i32
  }
  func.func @transform_2(%arg0: i32, %arg1: i32) -> (i32, i32) {
    %c0_i32 = arith.constant 0 : i32
    %c0_i32_0 = arith.constant 0 : i32
    %c0_i32_1 = arith.constant 0 : i32
    return %c0_i32, %c0_i32_0 : i32, i32
  }
  func.func @transform_3(%arg0: i32, %arg1: i32) -> (i32, i32) {
    %c0_i32 = arith.constant 0 : i32
    %c0_i32_0 = arith.constant 0 : i32
    return %arg0, %c0_i32 : i32, i32
  }
}

module attributes {stable_mosaic.version = 11 : i64} {
  func.func @_fused_matmul_kernel(%arg0: i32, %arg1: i32, %arg2: memref<16x1152xbf16, #tpu.memory_space<vmem>>, %arg3: memref<1152x128xbf16, #tpu.memory_space<vmem>>, %arg4: memref<16x1152xbf16, #tpu.memory_space<vmem>>, %arg5: memref<1152x128xbf16, #tpu.memory_space<vmem>>, %arg6: memref<1x128xf32, #tpu.memory_space<vmem>>, %arg7: memref<16x128xbf16, #tpu.memory_space<vmem>>, %arg8: memref<16x128xf32, #tpu.memory_space<vmem>>) attributes {dimension_semantics = [#tpu.dimension_semantics<parallel>, #tpu.dimension_semantics<arbitrary>], iteration_bounds = array<i64: 2, 1>, scalar_prefetch = 0 : i64, scratch_operands = 1 : i64, tpu.core_type = #tpu.core_type<tc>, window_params = [{transform_indices = @transform_0, window_bounds = array<i64: 16, 1152>}, {transform_indices = @transform_1, window_bounds = array<i64: 1152, 128>}, {transform_indices = @transform_2, window_bounds = array<i64: 16, 1152>}, {transform_indices = @transform_3, window_bounds = array<i64: 1152, 128>}, {pipeline_mode = #tpu.pipeline_mode<synchronous>, transform_indices = @transform_4, window_bounds = array<i64: 1, 128>}, {transform_indices = @transform_5, window_bounds = array<i64: 16, 128>}]} {
    %c0_i32 = arith.constant 0 : i32
    %0 = arith.cmpi eq, %arg1, %c0_i32 : i32
    %1 = arith.extui %0 : i1 to i32
    %c0_i32_0 = arith.constant 0 : i32
    %2 = arith.cmpi ne, %1, %c0_i32_0 : i32
    scf.if %2 {
      %cst_19 = arith.constant 0.000000e+00 : f32
      %18 = vector.broadcast %cst_19 : f32 to vector<16x128xf32>
      %c0_20 = arith.constant 0 : index
      %c0_21 = arith.constant 0 : index
      %19 = vector.load %arg8[%c0_20, %c0_21] : memref<16x128xf32, #tpu.memory_space<vmem>>, vector<16x128xf32>
      tpu.vector_store %arg8[%c0_20, %c0_21], %18 {strides = array<i32>} : memref<16x128xf32, #tpu.memory_space<vmem>>, vector<16x128xf32>,
    } else {
    }
    %c0 = arith.constant 0 : index
    %c0_1 = arith.constant 0 : index
    %3 = vector.load %arg8[%c0, %c0_1] : memref<16x128xf32, #tpu.memory_space<vmem>>, vector<16x128xf32>
    %c0_2 = arith.constant 0 : index
    %c0_3 = arith.constant 0 : index
    %4 = vector.load %arg2[%c0_2, %c0_3] : memref<16x1152xbf16, #tpu.memory_space<vmem>>, vector<16x1152xbf16>
    %c0_4 = arith.constant 0 : index
    %c0_5 = arith.constant 0 : index
    %5 = vector.load %arg3[%c0_4, %c0_5] : memref<1152x128xbf16, #tpu.memory_space<vmem>>, vector<1152x128xbf16>
    %cst = arith.constant dense<0.000000e+00> : vector<16x128xf32>
    %6 = tpu.matmul %4, %5, %cst {dimension_numbers = #tpu.dot_dimension_numbers<[1], [0], [0], [1], [0, 0, 1, 1], [], []>} : vector<16x1152xbf16>, vector<1152x128xbf16>, vector<16x128xf32> -> vector<16x128xf32>
    %7 = arith.addf %3, %6 : vector<16x128xf32>
    %c0_6 = arith.constant 0 : index
    %c0_7 = arith.constant 0 : index
    %8 = vector.load %arg8[%c0_6, %c0_7] : memref<16x128xf32, #tpu.memory_space<vmem>>, vector<16x128xf32>
    tpu.vector_store %arg8[%c0_6, %c0_7], %7 {strides = array<i32>} : memref<16x128xf32, #tpu.memory_space<vmem>>, vector<16x128xf32>,
    %c0_8 = arith.constant 0 : index
    %c0_9 = arith.constant 0 : index
    %9 = vector.load %arg8[%c0_8, %c0_9] : memref<16x128xf32, #tpu.memory_space<vmem>>, vector<16x128xf32>
    %c0_10 = arith.constant 0 : index
    %c0_11 = arith.constant 0 : index
    %10 = vector.load %arg4[%c0_10, %c0_11] : memref<16x1152xbf16, #tpu.memory_space<vmem>>, vector<16x1152xbf16>
    %c0_12 = arith.constant 0 : index
    %c0_13 = arith.constant 0 : index
    %11 = vector.load %arg5[%c0_12, %c0_13] : memref<1152x128xbf16, #tpu.memory_space<vmem>>, vector<1152x128xbf16>
    %cst_14 = arith.constant dense<0.000000e+00> : vector<16x128xf32>
    %12 = tpu.matmul %10, %11, %cst_14 {dimension_numbers = #tpu.dot_dimension_numbers<[1], [0], [0], [1], [0, 0, 1, 1], [], []>} : vector<16x1152xbf16>, vector<1152x128xbf16>, vector<16x128xf32> -> vector<16x128xf32>
    %13 = arith.addf %9, %12 : vector<16x128xf32>
    %c0_15 = arith.constant 0 : index
    %c0_16 = arith.constant 0 : index
    %14 = vector.load %arg8[%c0_15, %c0_16] : memref<16x128xf32, #tpu.memory_space<vmem>>, vector<16x128xf32>
    tpu.vector_store %arg8[%c0_15, %c0_16], %13 {strides = array<i32>} : memref<16x128xf32, #tpu.memory_space<vmem>>, vector<16x128xf32>,
    %c0_i32_17 = arith.constant 0 : i32
    %15 = arith.cmpi eq, %arg1, %c0_i32_17 : i32
    %16 = arith.extui %15 : i1 to i32
    %c0_i32_18 = arith.constant 0 : i32
    %17 = arith.cmpi ne, %16, %c0_i32_18 : i32
    scf.if %17 {
      %c0_19 = arith.constant 0 : index
      %c0_20 = arith.constant 0 : index
      %18 = vector.load %arg8[%c0_19, %c0_20] : memref<16x128xf32, #tpu.memory_space<vmem>>, vector<16x128xf32>
      %c0_21 = arith.constant 0 : index
      %c0_22 = arith.constant 0 : index
      %19 = vector.load %arg6[%c0_21, %c0_22] : memref<1x128xf32, #tpu.memory_space<vmem>>, vector<1x128xf32>
      %20 = vector.broadcast %19 : vector<1x128xf32> to vector<16x128xf32>
      %21 = arith.addf %18, %20 : vector<16x128xf32>
      %22 = arith.truncf %21 : vector<16x128xf32> to vector<16x128xbf16>
      %c0_23 = arith.constant 0 : index
      %c0_24 = arith.constant 0 : index
      %23 = vector.load %arg7[%c0_23, %c0_24] : memref<16x128xbf16, #tpu.memory_space<vmem>>, vector<16x128xbf16>
      tpu.vector_store %arg7[%c0_23, %c0_24], %22 {strides = array<i32>} : memref<16x128xbf16, #tpu.memory_space<vmem>>, vector<16x128xbf16>,
    } else {
    }
    return
  }
  func.func @transform_0(%arg0: i32, %arg1: i32) -> (i32, i32) {
    %c0_i32 = arith.constant 0 : i32
    return %arg0, %arg1 : i32, i32
  }
  func.func @transform_1(%arg0: i32, %arg1: i32) -> (i32, i32) {
    %c0_i32 = arith.constant 0 : i32
    %c0_i32_0 = arith.constant 0 : i32
    return %arg1, %c0_i32 : i32, i32
  }
  func.func @transform_2(%arg0: i32, %arg1: i32) -> (i32, i32) {
    %c0_i32 = arith.constant 0 : i32
    return %arg0, %arg1 : i32, i32
  }
  func.func @transform_3(%arg0: i32, %arg1: i32) -> (i32, i32) {
    %c0_i32 = arith.constant 0 : i32
    %c0_i32_0 = arith.constant 0 : i32
    return %arg1, %c0_i32 : i32, i32
  }
  func.func @transform_4(%arg0: i32, %arg1: i32) -> (i32, i32) {
    %c0_i32 = arith.constant 0 : i32
    %c0_i32_0 = arith.constant 0 : i32
    %c0_i32_1 = arith.constant 0 : i32
    return %c0_i32, %c0_i32_0 : i32, i32
  }
  func.func @transform_5(%arg0: i32, %arg1: i32) -> (i32, i32) {
    %c0_i32 = arith.constant 0 : i32
    %c0_i32_0 = arith.constant 0 : i32
    return %arg0, %c0_i32 : i32, i32
  }
}

module attributes {stable_mosaic.version = 11 : i64} {
  func.func @_fused_matmul_kernel(%arg0: i32, %arg1: i32, %arg2: memref<64x1152xbf16, #tpu.memory_space<vmem>>, %arg3: memref<1152x128xbf16, #tpu.memory_space<vmem>>, %arg4: memref<1x128xf32, #tpu.memory_space<vmem>>, %arg5: memref<1x128xf32, #tpu.memory_space<vmem>>, %arg6: memref<1x128xf32, #tpu.memory_space<vmem>>, %arg7: memref<64x128xbf16, #tpu.memory_space<vmem>>, %arg8: memref<64x128xf32, #tpu.memory_space<vmem>>) attributes {dimension_semantics = [#tpu.dimension_semantics<parallel>, #tpu.dimension_semantics<arbitrary>], iteration_bounds = array<i64: 2, 1>, scalar_prefetch = 0 : i64, scratch_operands = 1 : i64, tpu.core_type = #tpu.core_type<tc>, window_params = [{transform_indices = @transform_0, window_bounds = array<i64: 64, 1152>}, {transform_indices = @transform_1, window_bounds = array<i64: 1152, 128>}, {pipeline_mode = #tpu.pipeline_mode<synchronous>, transform_indices = @transform_2, window_bounds = array<i64: 1, 128>}, {pipeline_mode = #tpu.pipeline_mode<synchronous>, transform_indices = @transform_3, window_bounds = array<i64: 1, 128>}, {pipeline_mode = #tpu.pipeline_mode<synchronous>, transform_indices = @transform_4, window_bounds = array<i64: 1, 128>}, {transform_indices = @transform_5, window_bounds = array<i64: 64, 128>}]} {
    %c0_i32 = arith.constant 0 : i32
    %0 = arith.cmpi eq, %arg1, %c0_i32 : i32
    %1 = arith.extui %0 : i1 to i32
    %c0_i32_0 = arith.constant 0 : i32
    %2 = arith.cmpi ne, %1, %c0_i32_0 : i32
    scf.if %2 {
      %cst_10 = arith.constant 0.000000e+00 : f32
      %12 = vector.broadcast %cst_10 : f32 to vector<64x128xf32>
      %c0_11 = arith.constant 0 : index
      %c0_12 = arith.constant 0 : index
      %13 = vector.load %arg8[%c0_11, %c0_12] : memref<64x128xf32, #tpu.memory_space<vmem>>, vector<64x128xf32>
      tpu.vector_store %arg8[%c0_11, %c0_12], %12 {strides = array<i32>} : memref<64x128xf32, #tpu.memory_space<vmem>>, vector<64x128xf32>,
    } else {
    }
    %c0 = arith.constant 0 : index
    %c0_1 = arith.constant 0 : index
    %3 = vector.load %arg8[%c0, %c0_1] : memref<64x128xf32, #tpu.memory_space<vmem>>, vector<64x128xf32>
    %c0_2 = arith.constant 0 : index
    %c0_3 = arith.constant 0 : index
    %4 = vector.load %arg2[%c0_2, %c0_3] : memref<64x1152xbf16, #tpu.memory_space<vmem>>, vector<64x1152xbf16>
    %c0_4 = arith.constant 0 : index
    %c0_5 = arith.constant 0 : index
    %5 = vector.load %arg3[%c0_4, %c0_5] : memref<1152x128xbf16, #tpu.memory_space<vmem>>, vector<1152x128xbf16>
    %cst = arith.constant dense<0.000000e+00> : vector<64x128xf32>
    %6 = tpu.matmul %4, %5, %cst {dimension_numbers = #tpu.dot_dimension_numbers<[1], [0], [0], [1], [0, 0, 1, 1], [], []>} : vector<64x1152xbf16>, vector<1152x128xbf16>, vector<64x128xf32> -> vector<64x128xf32>
    %7 = arith.addf %3, %6 : vector<64x128xf32>
    %c0_6 = arith.constant 0 : index
    %c0_7 = arith.constant 0 : index
    %8 = vector.load %arg8[%c0_6, %c0_7] : memref<64x128xf32, #tpu.memory_space<vmem>>, vector<64x128xf32>
    tpu.vector_store %arg8[%c0_6, %c0_7], %7 {strides = array<i32>} : memref<64x128xf32, #tpu.memory_space<vmem>>, vector<64x128xf32>,
    %c0_i32_8 = arith.constant 0 : i32
    %9 = arith.cmpi eq, %arg1, %c0_i32_8 : i32
    %10 = arith.extui %9 : i1 to i32
    %c0_i32_9 = arith.constant 0 : i32
    %11 = arith.cmpi ne, %10, %c0_i32_9 : i32
    scf.if %11 {
      %c0_10 = arith.constant 0 : index
      %c0_11 = arith.constant 0 : index
      %12 = vector.load %arg8[%c0_10, %c0_11] : memref<64x128xf32, #tpu.memory_space<vmem>>, vector<64x128xf32>
      %c0_12 = arith.constant 0 : index
      %c0_13 = arith.constant 0 : index
      %13 = vector.load %arg4[%c0_12, %c0_13] : memref<1x128xf32, #tpu.memory_space<vmem>>, vector<1x128xf32>
      %14 = vector.broadcast %13 : vector<1x128xf32> to vector<64x128xf32>
      %15 = arith.addf %12, %14 : vector<64x128xf32>
      %c0_14 = arith.constant 0 : index
      %c0_15 = arith.constant 0 : index
      %16 = vector.load %arg5[%c0_14, %c0_15] : memref<1x128xf32, #tpu.memory_space<vmem>>, vector<1x128xf32>
      %17 = vector.broadcast %16 : vector<1x128xf32> to vector<64x128xf32>
      %18 = arith.mulf %15, %17 : vector<64x128xf32>
      %c0_16 = arith.constant 0 : index
      %c0_17 = arith.constant 0 : index
      %19 = vector.load %arg6[%c0_16, %c0_17] : memref<1x128xf32, #tpu.memory_space<vmem>>, vector<1x128xf32>
      %20 = vector.broadcast %19 : vector<1x128xf32> to vector<64x128xf32>
      %21 = arith.addf %18, %20 : vector<64x128xf32>
      %cst_18 = arith.constant 0.000000e+00 : f32
      %22 = vector.broadcast %cst_18 : f32 to vector<64x128xf32>
      %23 = arith.maximumf %21, %22 : vector<64x128xf32>
      %24 = arith.truncf %23 : vector<64x128xf32> to vector<64x128xbf16>
      %c0_19 = arith.constant 0 : index
      %c0_20 = arith.constant 0 : index
      %25 = vector.load %arg7[%c0_19, %c0_20] : memref<64x128xbf16, #tpu.memory_space<vmem>>, vector<64x128xbf16>
      tpu.vector_store %arg7[%c0_19, %c0_20], %24 {strides = array<i32>} : memref<64x128xbf16, #tpu.memory_space<vmem>>, vector<64x128xbf16>,
    } else {
    }
    return
  }
  func.func @transform_0(%arg0: i32, %arg1: i32) -> (i32, i32) {
    %c0_i32 = arith.constant 0 : i32
    return %arg0, %arg1 : i32, i32
  }
  func.func @transform_1(%arg0: i32, %arg1: i32) -> (i32, i32) {
    %c0_i32 = arith.constant 0 : i32
    %c0_i32_0 = arith.constant 0 : i32
    return %arg1, %c0_i32 : i32, i32
  }
  func.func @transform_2(%arg0: i32, %arg1: i32) -> (i32, i32) {
    %c0_i32 = arith.constant 0 : i32
    %c0_i32_0 = arith.constant 0 : i32
    %c0_i32_1 = arith.constant 0 : i32
    return %c0_i32, %c0_i32_0 : i32, i32
  }
  func.func @transform_3(%arg0: i32, %arg1: i32) -> (i32, i32) {
    %c0_i32 = arith.constant 0 : i32
    %c0_i32_0 = arith.constant 0 : i32
    %c0_i32_1 = arith.constant 0 : i32
    return %c0_i32, %c0_i32_0 : i32, i32
  }
  func.func @transform_4(%arg0: i32, %arg1: i32) -> (i32, i32) {
    %c0_i32 = arith.constant 0 : i32
    %c0_i32_0 = arith.constant 0 : i32
    %c0_i32_1 = arith.constant 0 : i32
    return %c0_i32, %c0_i32_0 : i32, i32
  }
  func.func @transform_5(%arg0: i32, %arg1: i32) -> (i32, i32) {
    %c0_i32 = arith.constant 0 : i32
    %c0_i32_0 = arith.constant 0 : i32
    return %arg0, %c0_i32 : i32, i32
  }
}

module attributes {stable_mosaic.version = 11 : i64} {
  func.func @_fused_matmul_kernel(%arg0: i32, %arg1: i32, %arg2: memref<64x1152xbf16, #tpu.memory_space<vmem>>, %arg3: memref<1152x128xbf16, #tpu.memory_space<vmem>>, %arg4: memref<1x128xf32, #tpu.memory_space<vmem>>, %arg5: memref<64x128xf32, #tpu.memory_space<vmem>>, %arg6: memref<64x128xf32, #tpu.memory_space<vmem>>) attributes {dimension_semantics = [#tpu.dimension_semantics<parallel>, #tpu.dimension_semantics<arbitrary>], iteration_bounds = array<i64: 2, 1>, scalar_prefetch = 0 : i64, scratch_operands = 1 : i64, tpu.core_type = #tpu.core_type<tc>, window_params = [{transform_indices = @transform_0, window_bounds = array<i64: 64, 1152>}, {transform_indices = @transform_1, window_bounds = array<i64: 1152, 128>}, {pipeline_mode = #tpu.pipeline_mode<synchronous>, transform_indices = @transform_2, window_bounds = array<i64: 1, 128>}, {transform_indices = @transform_3, window_bounds = array<i64: 64, 128>}]} {
    %c0_i32 = arith.constant 0 : i32
    %0 = arith.cmpi eq, %arg1, %c0_i32 : i32
    %1 = arith.extui %0 : i1 to i32
    %c0_i32_0 = arith.constant 0 : i32
    %2 = arith.cmpi ne, %1, %c0_i32_0 : i32
    scf.if %2 {
      %cst_10 = arith.constant 0.000000e+00 : f32
      %12 = vector.broadcast %cst_10 : f32 to vector<64x128xf32>
      %c0_11 = arith.constant 0 : index
      %c0_12 = arith.constant 0 : index
      %13 = vector.load %arg6[%c0_11, %c0_12] : memref<64x128xf32, #tpu.memory_space<vmem>>, vector<64x128xf32>
      tpu.vector_store %arg6[%c0_11, %c0_12], %12 {strides = array<i32>} : memref<64x128xf32, #tpu.memory_space<vmem>>, vector<64x128xf32>,
    } else {
    }
    %c0 = arith.constant 0 : index
    %c0_1 = arith.constant 0 : index
    %3 = vector.load %arg6[%c0, %c0_1] : memref<64x128xf32, #tpu.memory_space<vmem>>, vector<64x128xf32>
    %c0_2 = arith.constant 0 : index
    %c0_3 = arith.constant 0 : index
    %4 = vector.load %arg2[%c0_2, %c0_3] : memref<64x1152xbf16, #tpu.memory_space<vmem>>, vector<64x1152xbf16>
    %c0_4 = arith.constant 0 : index
    %c0_5 = arith.constant 0 : index
    %5 = vector.load %arg3[%c0_4, %c0_5] : memref<1152x128xbf16, #tpu.memory_space<vmem>>, vector<1152x128xbf16>
    %cst = arith.constant dense<0.000000e+00> : vector<64x128xf32>
    %6 = tpu.matmul %4, %5, %cst {dimension_numbers = #tpu.dot_dimension_numbers<[1], [0], [0], [1], [0, 0, 1, 1], [], []>} : vector<64x1152xbf16>, vector<1152x128xbf16>, vector<64x128xf32> -> vector<64x128xf32>
    %7 = arith.addf %3, %6 : vector<64x128xf32>
    %c0_6 = arith.constant 0 : index
    %c0_7 = arith.constant 0 : index
    %8 = vector.load %arg6[%c0_6, %c0_7] : memref<64x128xf32, #tpu.memory_space<vmem>>, vector<64x128xf32>
    tpu.vector_store %arg6[%c0_6, %c0_7], %7 {strides = array<i32>} : memref<64x128xf32, #tpu.memory_space<vmem>>, vector<64x128xf32>,
    %c0_i32_8 = arith.constant 0 : i32
    %9 = arith.cmpi eq, %arg1, %c0_i32_8 : i32
    %10 = arith.extui %9 : i1 to i32
    %c0_i32_9 = arith.constant 0 : i32
    %11 = arith.cmpi ne, %10, %c0_i32_9 : i32
    scf.if %11 {
      %c0_10 = arith.constant 0 : index
      %c0_11 = arith.constant 0 : index
      %12 = vector.load %arg6[%c0_10, %c0_11] : memref<64x128xf32, #tpu.memory_space<vmem>>, vector<64x128xf32>
      %c0_12 = arith.constant 0 : index
      %c0_13 = arith.constant 0 : index
      %13 = vector.load %arg4[%c0_12, %c0_13] : memref<1x128xf32, #tpu.memory_space<vmem>>, vector<1x128xf32>
      %14 = vector.broadcast %13 : vector<1x128xf32> to vector<64x128xf32>
      %15 = arith.addf %12, %14 : vector<64x128xf32>
      %cst_14 = arith.constant 0.000000e+00 : f32
      %16 = vector.broadcast %cst_14 : f32 to vector<64x128xf32>
      %17 = arith.subf %16, %15 : vector<64x128xf32>
      %18 = math.exp %17 : vector<64x128xf32>
      %cst_15 = arith.constant 1.000000e+00 : f32
      %19 = vector.broadcast %cst_15 : f32 to vector<64x128xf32>
      %20 = arith.addf %19, %18 : vector<64x128xf32>
      %cst_16 = arith.constant 1.000000e+00 : f32
      %21 = vector.broadcast %cst_16 : f32 to vector<64x128xf32>
      %22 = arith.divf %21, %20 : vector<64x128xf32>
      %c0_17 = arith.constant 0 : index
      %c0_18 = arith.constant 0 : index
      %23 = vector.load %arg5[%c0_17, %c0_18] : memref<64x128xf32, #tpu.memory_space<vmem>>, vector<64x128xf32>
      tpu.vector_store %arg5[%c0_17, %c0_18], %22 {strides = array<i32>} : memref<64x128xf32, #tpu.memory_space<vmem>>, vector<64x128xf32>,
    } else {
    }
    return
  }
  func.func @transform_0(%arg0: i32, %arg1: i32) -> (i32, i32) {
    %c0_i32 = arith.constant 0 : i32
    return %arg0, %arg1 : i32, i32
  }
  func.func @transform_1(%arg0: i32, %arg1: i32) -> (i32, i32) {
    %c0_i32 = arith.constant 0 : i32
    %c0_i32_0 = arith.constant 0 : i32
    return %arg1, %c0_i32 : i32, i32
  }
  func.func @transform_2(%arg0: i32, %arg1: i32) -> (i32, i32) {
    %c0_i32 = arith.constant 0 : i32
    %c0_i32_0 = arith.constant 0 : i32
    %c0_i32_1 = arith.constant 0 : i32
    return %c0_i32, %c0_i32_0 : i32, i32
  }
  func.func @transform_3(%arg0: i32, %arg1: i32) -> (i32, i32) {
    %c0_i32 = arith.constant 0 : i32
    %c0_i32_0 = arith.constant 0 : i32
    return %arg0, %c0_i32 : i32, i32
  }
}

module attributes {stable_mosaic.version = 11 : i64} {
  func.func @_fused_matmul_kernel(%arg0: i32, %arg1: i32, %arg2: memref<64x1152xbf16, #tpu.memory_space<vmem>>, %arg3: memref<1152x128xbf16, #tpu.memory_space<vmem>>, %arg4: memref<64x1152xbf16, #tpu.memory_space<vmem>>, %arg5: memref<1152x128xbf16, #tpu.memory_space<vmem>>, %arg6: memref<1x128xf32, #tpu.memory_space<vmem>>, %arg7: memref<64x128xbf16, #tpu.memory_space<vmem>>, %arg8: memref<64x128xf32, #tpu.memory_space<vmem>>) attributes {dimension_semantics = [#tpu.dimension_semantics<parallel>, #tpu.dimension_semantics<arbitrary>], iteration_bounds = array<i64: 2, 1>, scalar_prefetch = 0 : i64, scratch_operands = 1 : i64, tpu.core_type = #tpu.core_type<tc>, window_params = [{transform_indices = @transform_0, window_bounds = array<i64: 64, 1152>}, {transform_indices = @transform_1, window_bounds = array<i64: 1152, 128>}, {transform_indices = @transform_2, window_bounds = array<i64: 64, 1152>}, {transform_indices = @transform_3, window_bounds = array<i64: 1152, 128>}, {pipeline_mode = #tpu.pipeline_mode<synchronous>, transform_indices = @transform_4, window_bounds = array<i64: 1, 128>}, {transform_indices = @transform_5, window_bounds = array<i64: 64, 128>}]} {
    %c0_i32 = arith.constant 0 : i32
    %0 = arith.cmpi eq, %arg1, %c0_i32 : i32
    %1 = arith.extui %0 : i1 to i32
    %c0_i32_0 = arith.constant 0 : i32
    %2 = arith.cmpi ne, %1, %c0_i32_0 : i32
    scf.if %2 {
      %cst_19 = arith.constant 0.000000e+00 : f32
      %18 = vector.broadcast %cst_19 : f32 to vector<64x128xf32>
      %c0_20 = arith.constant 0 : index
      %c0_21 = arith.constant 0 : index
      %19 = vector.load %arg8[%c0_20, %c0_21] : memref<64x128xf32, #tpu.memory_space<vmem>>, vector<64x128xf32>
      tpu.vector_store %arg8[%c0_20, %c0_21], %18 {strides = array<i32>} : memref<64x128xf32, #tpu.memory_space<vmem>>, vector<64x128xf32>,
    } else {
    }
    %c0 = arith.constant 0 : index
    %c0_1 = arith.constant 0 : index
    %3 = vector.load %arg8[%c0, %c0_1] : memref<64x128xf32, #tpu.memory_space<vmem>>, vector<64x128xf32>
    %c0_2 = arith.constant 0 : index
    %c0_3 = arith.constant 0 : index
    %4 = vector.load %arg2[%c0_2, %c0_3] : memref<64x1152xbf16, #tpu.memory_space<vmem>>, vector<64x1152xbf16>
    %c0_4 = arith.constant 0 : index
    %c0_5 = arith.constant 0 : index
    %5 = vector.load %arg3[%c0_4, %c0_5] : memref<1152x128xbf16, #tpu.memory_space<vmem>>, vector<1152x128xbf16>
    %cst = arith.constant dense<0.000000e+00> : vector<64x128xf32>
    %6 = tpu.matmul %4, %5, %cst {dimension_numbers = #tpu.dot_dimension_numbers<[1], [0], [0], [1], [0, 0, 1, 1], [], []>} : vector<64x1152xbf16>, vector<1152x128xbf16>, vector<64x128xf32> -> vector<64x128xf32>
    %7 = arith.addf %3, %6 : vector<64x128xf32>
    %c0_6 = arith.constant 0 : index
    %c0_7 = arith.constant 0 : index
    %8 = vector.load %arg8[%c0_6, %c0_7] : memref<64x128xf32, #tpu.memory_space<vmem>>, vector<64x128xf32>
    tpu.vector_store %arg8[%c0_6, %c0_7], %7 {strides = array<i32>} : memref<64x128xf32, #tpu.memory_space<vmem>>, vector<64x128xf32>,
    %c0_8 = arith.constant 0 : index
    %c0_9 = arith.constant 0 : index
    %9 = vector.load %arg8[%c0_8, %c0_9] : memref<64x128xf32, #tpu.memory_space<vmem>>, vector<64x128xf32>
    %c0_10 = arith.constant 0 : index
    %c0_11 = arith.constant 0 : index
    %10 = vector.load %arg4[%c0_10, %c0_11] : memref<64x1152xbf16, #tpu.memory_space<vmem>>, vector<64x1152xbf16>
    %c0_12 = arith.constant 0 : index
    %c0_13 = arith.constant 0 : index
    %11 = vector.load %arg5[%c0_12, %c0_13] : memref<1152x128xbf16, #tpu.memory_space<vmem>>, vector<1152x128xbf16>
    %cst_14 = arith.constant dense<0.000000e+00> : vector<64x128xf32>
    %12 = tpu.matmul %10, %11, %cst_14 {dimension_numbers = #tpu.dot_dimension_numbers<[1], [0], [0], [1], [0, 0, 1, 1], [], []>} : vector<64x1152xbf16>, vector<1152x128xbf16>, vector<64x128xf32> -> vector<64x128xf32>
    %13 = arith.addf %9, %12 : vector<64x128xf32>
    %c0_15 = arith.constant 0 : index
    %c0_16 = arith.constant 0 : index
    %14 = vector.load %arg8[%c0_15, %c0_16] : memref<64x128xf32, #tpu.memory_space<vmem>>, vector<64x128xf32>
    tpu.vector_store %arg8[%c0_15, %c0_16], %13 {strides = array<i32>} : memref<64x128xf32, #tpu.memory_space<vmem>>, vector<64x128xf32>,
    %c0_i32_17 = arith.constant 0 : i32
    %15 = arith.cmpi eq, %arg1, %c0_i32_17 : i32
    %16 = arith.extui %15 : i1 to i32
    %c0_i32_18 = arith.constant 0 : i32
    %17 = arith.cmpi ne, %16, %c0_i32_18 : i32
    scf.if %17 {
      %c0_19 = arith.constant 0 : index
      %c0_20 = arith.constant 0 : index
      %18 = vector.load %arg8[%c0_19, %c0_20] : memref<64x128xf32, #tpu.memory_space<vmem>>, vector<64x128xf32>
      %c0_21 = arith.constant 0 : index
      %c0_22 = arith.constant 0 : index
      %19 = vector.load %arg6[%c0_21, %c0_22] : memref<1x128xf32, #tpu.memory_space<vmem>>, vector<1x128xf32>
      %20 = vector.broadcast %19 : vector<1x128xf32> to vector<64x128xf32>
      %21 = arith.addf %18, %20 : vector<64x128xf32>
      %22 = arith.truncf %21 : vector<64x128xf32> to vector<64x128xbf16>
      %c0_23 = arith.constant 0 : index
      %c0_24 = arith.constant 0 : index
      %23 = vector.load %arg7[%c0_23, %c0_24] : memref<64x128xbf16, #tpu.memory_space<vmem>>, vector<64x128xbf16>
      tpu.vector_store %arg7[%c0_23, %c0_24], %22 {strides = array<i32>} : memref<64x128xbf16, #tpu.memory_space<vmem>>, vector<64x128xbf16>,
    } else {
    }
    return
  }
  func.func @transform_0(%arg0: i32, %arg1: i32) -> (i32, i32) {
    %c0_i32 = arith.constant 0 : i32
    return %arg0, %arg1 : i32, i32
  }
  func.func @transform_1(%arg0: i32, %arg1: i32) -> (i32, i32) {
    %c0_i32 = arith.constant 0 : i32
    %c0_i32_0 = arith.constant 0 : i32
    return %arg1, %c0_i32 : i32, i32
  }
  func.func @transform_2(%arg0: i32, %arg1: i32) -> (i32, i32) {
    %c0_i32 = arith.constant 0 : i32
    return %arg0, %arg1 : i32, i32
  }
  func.func @transform_3(%arg0: i32, %arg1: i32) -> (i32, i32) {
    %c0_i32 = arith.constant 0 : i32
    %c0_i32_0 = arith.constant 0 : i32
    return %arg1, %c0_i32 : i32, i32
  }
  func.func @transform_4(%arg0: i32, %arg1: i32) -> (i32, i32) {
    %c0_i32 = arith.constant 0 : i32
    %c0_i32_0 = arith.constant 0 : i32
    %c0_i32_1 = arith.constant 0 : i32
    return %c0_i32, %c0_i32_0 : i32, i32
  }
  func.func @transform_5(%arg0: i32, %arg1: i32) -> (i32, i32) {
    %c0_i32 = arith.constant 0 : i32
    %c0_i32_0 = arith.constant 0 : i32
    return %arg0, %c0_i32 : i32, i32
  }
}

</mosaic_0001>

<bundles_post_ra>
// kernel: _lambda_.8
= control target key start
LH: loop header
LB: loop body
LE: loop exit
PB: predicated region body
PF: predicated region fallthrough
CT: control target
= control target key end

     0   :  { %v121_v0 = vmov 0.0   ;;  %vm122_vm0 = vmmov 0   ;;  %vm38_vm1 = vcmask 261120   ;;  %s158_s1 = inlined_call_operand.vmem [shape: bf16[32,128], index: 1, kind: input, shape index: {}]   ;;  %s159_s0 = inlined_call_operand.vmem [shape: bf16[2,32], index: 0, kind: input, shape index: {}]   ;;  %s160_s2 = inlined_call_operand.vmem [shape: f32[1,128], index: 2, kind: input, shape index: {}]   ;;  %s161_s3 = inlined_call_operand.vmem [shape: bf16[2,128], index: 3, kind: output, shape index: {}]  }
   0x1   :  { %109 = vmatprep.subr.bf16.mxu0 %v121_v0  ;;  %19 = vst [vmem:[#allocation2] sm:$0x3] %v121_v0  ;;  %v119_v1 = vld [vmem:[%s158_s1 + $0x8] sm:$0xff]   ;;  %113 = vmatprep.mubr.msk.bf16.mxu0 %vm122_vm0, %v121_v0  ;;  %v120_v2 = vld [vmem:[%s158_s1] sm:$0xff]  }
   0x2   :  { %110 = vmatpush3.bf16.msra.mxu0 %v119_v1  ;;  %v21_v3 = vld [vmem:[%s159_s0] sm:$0x1] }
   0x3   :  { %111 = vmatprep.subr.bf16.mxu0 %v121_v0  ;;  %v105_v10 = vld [vmem:[%s160_s2] ss:$0 sm:$0xff] }
   0x6   :  { %112 = vmatpush3.bf16.msra.mxu0 %v120_v2 }
   0x8   :  { %v20_v4 = vld [vmem:[#allocation2] sm:$0x3] }
   0x9   :  { %114 = vmatmul.mubr.msk.bf16.vlgmr.msra.gmra.mxu0 %vm38_vm1, %v21_v3 }
  0xc9   :  { %v76_v5 = vpop.f32.mrf.mxu0 }
  0xca   :  { %v82_v6 = vadd.f32 %v76_v5, %v20_v4 }
  0xcb   :  { %v115_v7 = vpop.f32.mrf.mxu0 }
  0xcc   :  { %83 = vst [vmem:[#allocation2] sm:$0x3] %v82_v6 }
  0xcd   :  { %v79_v8 = vpop.f32.mrf.mxu0 }
  0xcf   :  { %v116_v9 = vpop.f32.mrf.mxu0 }
  0xd3   :  { %v87_v11 = vld [vmem:[#allocation2] sm:$0x3] }
  0xd4   :  { %v95_v12 = vadd.f32 %v105_v10, %v87_v11 }
  0xd6   :  { %v96_v13 = vpack.c.bf16 %v95_v12, %v95_v12 }
  0xd8   :  { %97 = vst [vmem:[%s161_s3] sm:$0x1] %v96_v13 }

// kernel: _lambda_.9
= control target key start
LH: loop header
LB: loop body
LE: loop exit
PB: predicated region body
PF: predicated region fallthrough
CT: control target
= control target key end

     0   :  { %s1800_s1 = inlined_call_operand.vmem [shape: bf16[512,512], index: 1, kind: input, shape index: {}]   ;;  %s1801_s0 = inlined_call_operand.vmem [shape: bf16[8,512], index: 0, kind: input, shape index: {}]   ;;  %s1802_s2 = inlined_call_operand.vmem [shape: f32[1,512], index: 2, kind: input, shape index: {}]   ;;  %s1803_s3 = inlined_call_operand.vmem [shape: bf16[8,512], index: 3, kind: output, shape index: {}]  }
   0x1   :  { %v1173_v0 = vld [vmem:[%s1800_s1 + $0xe4] ss:$16 sps:$4 sm:$0xff]   ;;  %v1177_v2 = vld [vmem:[%s1800_s1 + $0xe0] ss:$16 sps:$4 sm:$0xff]   ;;  %v27_v48 = vld [vmem:[%s1801_s0 + $0x8] sm:$0xff] }
   0x2   :  { %v1175_v1 = vld [vmem:[%s1800_s1 + $0x2e4] ss:$16 sps:$4 sm:$0xff]   ;;  %810 = vmatprep.subr.bf16.mxu0 %v1173_v0  ;;  %v1178_v3 = vld [vmem:[%s1800_s1 + $0x2e0] ss:$16 sps:$4 sm:$0xff]   ;;  %v1040_v51 = vcombine.high %v27_v48, %v27_v48 }
   0x3   :  { %851 = vmatprep.subr.bf16.mxu1 %v1175_v1  ;;  %v1179_v4 = vld [vmem:[%s1800_s1 + $0xc4] ss:$16 sps:$4 sm:$0xff]   ;;  %811 = vmatpush1.bf16.msra.mxu0 %v1177_v2  ;;  %v1183_v6 = vld [vmem:[%s1800_s1 + $0xc0] ss:$16 sps:$4 sm:$0xff]  }
   0x4   :  { %852 = vmatpush1.bf16.msra.mxu1 %v1178_v3  ;;  %v1181_v5 = vld [vmem:[%s1800_s1 + $0x2c4] ss:$16 sps:$4 sm:$0xff]   ;;  %812 = vmatprep.subr.bf16.mxu0 %v1179_v4  ;;  %v1184_v7 = vld [vmem:[%s1800_s1 + $0x2c0] ss:$16 sps:$4 sm:$0xff]   ;;  %v1275_v4 = vld [vmem:[%s1800_s1 + $0xec] ss:$16 sps:$4 sm:$0xff]  }
   0x5   :  { %853 = vmatprep.subr.bf16.mxu1 %v1181_v5  ;;  %v1185_v8 = vld [vmem:[%s1800_s1 + $0xa4] ss:$16 sps:$4 sm:$0xff]   ;;  %v1189_v10 = vld [vmem:[%s1800_s1 + $0xa0] ss:$16 sps:$4 sm:$0xff]   ;;  %883 = vmatprep.mubr.bf16.mxu1 %v1040_v51  ;;  %v1278_v5 = vld [vmem:[%s1800_s1 + $0x2ec] ss:$16 sps:$4 sm:$0xff]  }
   0x6   :  { %v1187_v9 = vld [vmem:[%s1800_s1 + $0x2a4] ss:$16 sps:$4 sm:$0xff]   ;;  %v1190_v11 = vld [vmem:[%s1800_s1 + $0x2a0] ss:$16 sps:$4 sm:$0xff]  }
   0x7   :  { %813 = vmatpush1.bf16.msra.mxu0 %v1183_v6  ;;  %v1191_v12 = vld [vmem:[%s1800_s1 + $0x84] ss:$16 sps:$4 sm:$0xff]   ;;  %v1195_v14 = vld [vmem:[%s1800_s1 + $0x80] ss:$16 sps:$4 sm:$0xff]  }
   0x8   :  { %854 = vmatpush1.bf16.msra.mxu1 %v1184_v7  ;;  %814 = vmatprep.subr.bf16.mxu0 %v1185_v8  ;;  %v1193_v13 = vld [vmem:[%s1800_s1 + $0x284] ss:$16 sps:$4 sm:$0xff]   ;;  %v1196_v15 = vld [vmem:[%s1800_s1 + $0x280] ss:$16 sps:$4 sm:$0xff]   ;;  %v1598_v7 = vcombine.low %v27_v48, %v27_v48  ;;  %v1273_v8 = vld [vmem:[%s1800_s1 + $0xe8] ss:$16 sps:$4 sm:$0xff]  }
   0x9   :  { %855 = vmatprep.subr.bf16.mxu1 %v1187_v9  ;;  %v1197_v16 = vld [vmem:[%s1800_s1 + $0x64] ss:$16 sps:$4 sm:$0xff]   ;;  %v1201_v18 = vld [vmem:[%s1800_s1 + $0x60] ss:$16 sps:$4 sm:$0xff]   ;;  %v1276_v9 = vld [vmem:[%s1800_s1 + $0x2e8] ss:$16 sps:$4 sm:$0xff]  }
   0xa   :  { %v1199_v17 = vld [vmem:[%s1800_s1 + $0x264] ss:$16 sps:$4 sm:$0xff]   ;;  %v1202_v19 = vld [vmem:[%s1800_s1 + $0x260] ss:$16 sps:$4 sm:$0xff]   ;;  %v1333_v48 = vld [vmem:[%s1800_s1 + $0x1a8] ss:$16 sps:$4 sm:$0xff]  }
   0xb   :  { %815 = vmatpush1.bf16.msra.mxu0 %v1189_v10  ;;  %v1203_v20 = vld [vmem:[%s1800_s1 + $0x44] ss:$16 sps:$4 sm:$0xff]   ;;  %v1207_v22 = vld [vmem:[%s1800_s1 + $0x40] ss:$16 sps:$4 sm:$0xff]   ;;  %v1281_v10 = vld [vmem:[%s1800_s1 + $0xcc] ss:$16 sps:$4 sm:$0xff]  }
   0xc   :  { %856 = vmatpush1.bf16.msra.mxu1 %v1190_v11  ;;  %816 = vmatprep.subr.bf16.mxu0 %v1191_v12  ;;  %v1205_v21 = vld [vmem:[%s1800_s1 + $0x244] ss:$16 sps:$4 sm:$0xff]   ;;  %v1208_v23 = vld [vmem:[%s1800_s1 + $0x240] ss:$16 sps:$4 sm:$0xff]   ;;  %v1284_v11 = vld [vmem:[%s1800_s1 + $0x2cc] ss:$16 sps:$4 sm:$0xff]  }
   0xd   :  { %857 = vmatprep.subr.bf16.mxu1 %v1193_v13  ;;  %v1209_v24 = vld [vmem:[%s1800_s1 + $0x24] ss:$16 sps:$4 sm:$0xff]   ;;  %v1213_v26 = vld [vmem:[%s1800_s1 + $0x20] ss:$16 sps:$4 sm:$0xff]   ;;  %v1279_v12 = vld [vmem:[%s1800_s1 + $0xc8] ss:$16 sps:$4 sm:$0xff]  }
   0xe   :  { %v1211_v25 = vld [vmem:[%s1800_s1 + $0x224] ss:$16 sps:$4 sm:$0xff]   ;;  %v1214_v27 = vld [vmem:[%s1800_s1 + $0x220] ss:$16 sps:$4 sm:$0xff]   ;;  %v1282_v13 = vld [vmem:[%s1800_s1 + $0x2c8] ss:$16 sps:$4 sm:$0xff]  }
   0xf   :  { %817 = vmatpush1.bf16.msra.mxu0 %v1195_v14  ;;  %v1215_v28 = vld [vmem:[%s1800_s1 + $0x4] ss:$16 sps:$4 sm:$0xff]   ;;  %v1219_v30 = vld [vmem:[%s1800_s1] ss:$16 sps:$4 sm:$0xff]   ;;  %v1287_v14 = vld [vmem:[%s1800_s1 + $0xac] ss:$16 sps:$4 sm:$0xff]  }
  0x10   :  { %858 = vmatpush1.bf16.msra.mxu1 %v1196_v15  ;;  %818 = vmatprep.subr.bf16.mxu0 %v1197_v16  ;;  %v1217_v29 = vld [vmem:[%s1800_s1 + $0x204] ss:$16 sps:$4 sm:$0xff]   ;;  %v1220_v31 = vld [vmem:[%s1800_s1 + $0x200] ss:$16 sps:$4 sm:$0xff]   ;;  %v1290_v15 = vld [vmem:[%s1800_s1 + $0x2ac] ss:$16 sps:$4 sm:$0xff]  }
  0x11   :  { %859 = vmatprep.subr.bf16.mxu1 %v1199_v17  ;;  %v1221_v32 = vld [vmem:[%s1800_s1 + $0x1e4] ss:$16 sps:$4 sm:$0xff]   ;;  %v1225_v34 = vld [vmem:[%s1800_s1 + $0x1e0] ss:$16 sps:$4 sm:$0xff]   ;;  %v1285_v16 = vld [vmem:[%s1800_s1 + $0xa8] ss:$16 sps:$4 sm:$0xff]  }
  0x12   :  { %v1223_v33 = vld [vmem:[%s1800_s1 + $0x3e4] ss:$16 sps:$4 sm:$0xff]   ;;  %v1226_v35 = vld [vmem:[%s1800_s1 + $0x3e0] ss:$16 sps:$4 sm:$0xff]   ;;  %v1288_v17 = vld [vmem:[%s1800_s1 + $0x2a8] ss:$16 sps:$4 sm:$0xff]  }
  0x13   :  { %819 = vmatpush1.bf16.msra.mxu0 %v1201_v18  ;;  %v1227_v36 = vld [vmem:[%s1800_s1 + $0x1c4] ss:$16 sps:$4 sm:$0xff]   ;;  %v1231_v38 = vld [vmem:[%s1800_s1 + $0x1c0] ss:$16 sps:$4 sm:$0xff]   ;;  %v1293_v18 = vld [vmem:[%s1800_s1 + $0x8c] ss:$16 sps:$4 sm:$0xff]  }
  0x14   :  { %860 = vmatpush1.bf16.msra.mxu1 %v1202_v19  ;;  %820 = vmatprep.subr.bf16.mxu0 %v1203_v20  ;;  %v1229_v37 = vld [vmem:[%s1800_s1 + $0x3c4] ss:$16 sps:$4 sm:$0xff]   ;;  %v1232_v39 = vld [vmem:[%s1800_s1 + $0x3c0] ss:$16 sps:$4 sm:$0xff]   ;;  %v1296_v19 = vld [vmem:[%s1800_s1 + $0x28c] ss:$16 sps:$4 sm:$0xff]  }
  0x15   :  { %861 = vmatprep.subr.bf16.mxu1 %v1205_v21  ;;  %v1233_v40 = vld [vmem:[%s1800_s1 + $0x1a4] ss:$16 sps:$4 sm:$0xff]   ;;  %v1237_v42 = vld [vmem:[%s1800_s1 + $0x1a0] ss:$16 sps:$4 sm:$0xff]   ;;  %v1291_v20 = vld [vmem:[%s1800_s1 + $0x88] ss:$16 sps:$4 sm:$0xff]  }
  0x16   :  { %v1235_v41 = vld [vmem:[%s1800_s1 + $0x3a4] ss:$16 sps:$4 sm:$0xff]   ;;  %v1238_v43 = vld [vmem:[%s1800_s1 + $0x3a0] ss:$16 sps:$4 sm:$0xff]   ;;  %v1294_v21 = vld [vmem:[%s1800_s1 + $0x288] ss:$16 sps:$4 sm:$0xff]  }
  0x17   :  { %821 = vmatpush1.bf16.msra.mxu0 %v1207_v22  ;;  %v1239_v44 = vld [vmem:[%s1800_s1 + $0x184] ss:$16 sps:$4 sm:$0xff]   ;;  %v1243_v49 = vld [vmem:[%s1800_s1 + $0x180] ss:$16 sps:$4 sm:$0xff]   ;;  %v1299_v22 = vld [vmem:[%s1800_s1 + $0x6c] ss:$16 sps:$4 sm:$0xff]  }
  0x18   :  { %862 = vmatpush1.bf16.msra.mxu1 %v1208_v23  ;;  %822 = vmatprep.subr.bf16.mxu0 %v1209_v24  ;;  %v1241_v45 = vld [vmem:[%s1800_s1 + $0x384] ss:$16 sps:$4 sm:$0xff]   ;;  %v1244_v50 = vld [vmem:[%s1800_s1 + $0x380] ss:$16 sps:$4 sm:$0xff]   ;;  %v1302_v23 = vld [vmem:[%s1800_s1 + $0x26c] ss:$16 sps:$4 sm:$0xff]  }
  0x19   :  { %863 = vmatprep.subr.bf16.mxu1 %v1211_v25  ;;  %v26_v46 = vld [vmem:[%s1801_s0] sm:$0xff]  ;;  %v1297_v24 = vld [vmem:[%s1800_s1 + $0x68] ss:$16 sps:$4 sm:$0xff]  }
  0x1a   :  { %v1530_v47 = vcombine.high %v26_v46, %v26_v46  ;;  %v1245_v52 = vld [vmem:[%s1800_s1 + $0x164] ss:$16 sps:$4 sm:$0xff]   ;;  %v1249_v54 = vld [vmem:[%s1800_s1 + $0x160] ss:$16 sps:$4 sm:$0xff]   ;;  %v1596_v6 = vcombine.low %v26_v46, %v26_v46  ;;  %v1300_v25 = vld [vmem:[%s1800_s1 + $0x268] ss:$16 sps:$4 sm:$0xff]  }
  0x1b   :  { %823 = vmatpush1.bf16.msra.mxu0 %v1213_v26  ;;  %v1247_v53 = vld [vmem:[%s1800_s1 + $0x364] ss:$16 sps:$4 sm:$0xff]   ;;  %v1250_v55 = vld [vmem:[%s1800_s1 + $0x360] ss:$16 sps:$4 sm:$0xff]   ;;  %v1305_v26 = vld [vmem:[%s1800_s1 + $0x4c] ss:$16 sps:$4 sm:$0xff]  }
  0x1c   :  { %864 = vmatpush1.bf16.msra.mxu1 %v1214_v27  ;;  %824 = vmatprep.subr.bf16.mxu0 %v1215_v28  ;;  %v1251_v56 = vld [vmem:[%s1800_s1 + $0x144] ss:$16 sps:$4 sm:$0xff]   ;;  %v1255_v58 = vld [vmem:[%s1800_s1 + $0x140] ss:$16 sps:$4 sm:$0xff]   ;;  %v1308_v27 = vld [vmem:[%s1800_s1 + $0x24c] ss:$16 sps:$4 sm:$0xff]  }
  0x1d   :  { %865 = vmatprep.subr.bf16.mxu1 %v1217_v29  ;;  %842 = vmatprep.mubr.bf16.mxu0 %v1530_v47  ;;  %v1253_v57 = vld [vmem:[%s1800_s1 + $0x344] ss:$16 sps:$4 sm:$0xff]   ;;  %v1256_v59 = vld [vmem:[%s1800_s1 + $0x340] ss:$16 sps:$4 sm:$0xff]   ;;  %v1303_v28 = vld [vmem:[%s1800_s1 + $0x48] ss:$16 sps:$4 sm:$0xff]  }
  0x1e   :  { %v1257_v60 = vld [vmem:[%s1800_s1 + $0x124] ss:$16 sps:$4 sm:$0xff]   ;;  %v1261_v62 = vld [vmem:[%s1800_s1 + $0x120] ss:$16 sps:$4 sm:$0xff]   ;;  %v1306_v29 = vld [vmem:[%s1800_s1 + $0x248] ss:$16 sps:$4 sm:$0xff]  }
  0x1f   :  { %825 = vmatpush1.bf16.msra.mxu0 %v1219_v30  ;;  %v1259_v61 = vld [vmem:[%s1800_s1 + $0x324] ss:$16 sps:$4 sm:$0xff]   ;;  %v1262_v63 = vld [vmem:[%s1800_s1 + $0x320] ss:$16 sps:$4 sm:$0xff]   ;;  %v1311_v30 = vld [vmem:[%s1800_s1 + $0x2c] ss:$16 sps:$4 sm:$0xff]  }
  0x20   :  { %866 = vmatpush1.bf16.msra.mxu1 %v1220_v31  ;;  %826 = vmatprep.subr.bf16.mxu0 %v1221_v32  ;;  %v1263_v0 = vld [vmem:[%s1800_s1 + $0x104] ss:$16 sps:$4 sm:$0xff]   ;;  %v1267_v2 = vld [vmem:[%s1800_s1 + $0x100] ss:$16 sps:$4 sm:$0xff]   ;;  %v1314_v31 = vld [vmem:[%s1800_s1 + $0x22c] ss:$16 sps:$4 sm:$0xff]  }
  0x21   :  { %867 = vmatprep.subr.bf16.mxu1 %v1223_v33  ;;  %v1265_v1 = vld [vmem:[%s1800_s1 + $0x304] ss:$16 sps:$4 sm:$0xff]   ;;  %v1268_v3 = vld [vmem:[%s1800_s1 + $0x300] ss:$16 sps:$4 sm:$0xff]   ;;  %v1309_v32 = vld [vmem:[%s1800_s1 + $0x28] ss:$16 sps:$4 sm:$0xff]  }
  0x22   :  { %v1312_v33 = vld [vmem:[%s1800_s1 + $0x228] ss:$16 sps:$4 sm:$0xff]   ;;  %v1335_v46 = vld [vmem:[%s1800_s1 + $0x1ac] ss:$16 sps:$4 sm:$0xff]  }
  0x23   :  { %827 = vmatpush2.bf16.msra.mxu0 %v1225_v34  ;;  %v1317_v34 = vld [vmem:[%s1800_s1 + $0xc] ss:$16 sps:$4 sm:$0xff]  }
  0x24   :  { %868 = vmatpush2.bf16.msra.mxu1 %v1226_v35  ;;  %828 = vmatprep.subr.bf16.mxu0 %v1227_v36  ;;  %v1320_v35 = vld [vmem:[%s1800_s1 + $0x20c] ss:$16 sps:$4 sm:$0xff]   ;;  %v1315_v36 = vld [vmem:[%s1800_s1 + $0x8] ss:$16 sps:$4 sm:$0xff]  }
  0x25   :  { %869 = vmatprep.subr.bf16.mxu1 %v1229_v37  ;;  %v1318_v37 = vld [vmem:[%s1800_s1 + $0x208] ss:$16 sps:$4 sm:$0xff]  }
  0x27   :  { %829 = vmatpush2.bf16.msra.mxu0 %v1231_v38  ;;  %v1323_v38 = vld [vmem:[%s1800_s1 + $0x1ec] ss:$16 sps:$4 sm:$0xff]  }
  0x28   :  { %870 = vmatpush2.bf16.msra.mxu1 %v1232_v39  ;;  %830 = vmatprep.subr.bf16.mxu0 %v1233_v40  ;;  %v1326_v39 = vld [vmem:[%s1800_s1 + $0x3ec] ss:$16 sps:$4 sm:$0xff]   ;;  %v1321_v40 = vld [vmem:[%s1800_s1 + $0x1e8] ss:$16 sps:$4 sm:$0xff]  }
  0x29   :  { %871 = vmatprep.subr.bf16.mxu1 %v1235_v41  ;;  %v1324_v41 = vld [vmem:[%s1800_s1 + $0x3e8] ss:$16 sps:$4 sm:$0xff]  }
  0x2b   :  { %831 = vmatpush2.bf16.msra.mxu0 %v1237_v42  ;;  %v1329_v42 = vld [vmem:[%s1800_s1 + $0x1cc] ss:$16 sps:$4 sm:$0xff]  }
  0x2c   :  { %872 = vmatpush2.bf16.msra.mxu1 %v1238_v43  ;;  %832 = vmatprep.subr.bf16.mxu0 %v1239_v44  ;;  %v1332_v43 = vld [vmem:[%s1800_s1 + $0x3cc] ss:$16 sps:$4 sm:$0xff]   ;;  %v1327_v44 = vld [vmem:[%s1800_s1 + $0x1c8] ss:$16 sps:$4 sm:$0xff]  }
  0x2d   :  { %873 = vmatprep.subr.bf16.mxu1 %v1241_v45  ;;  %v1330_v45 = vld [vmem:[%s1800_s1 + $0x3c8] ss:$16 sps:$4 sm:$0xff]  }
  0x2f   :  { %833 = vmatpush2.bf16.msra.mxu0 %v1243_v49  ;;  %v1336_v49 = vld [vmem:[%s1800_s1 + $0x3a8] ss:$16 sps:$4 sm:$0xff]  }
  0x30   :  { %874 = vmatpush2.bf16.msra.mxu1 %v1244_v50  ;;  %834 = vmatprep.subr.bf16.mxu0 %v1245_v52  ;;  %v1341_v50 = vld [vmem:[%s1800_s1 + $0x18c] ss:$16 sps:$4 sm:$0xff]   ;;  %v1339_v52 = vld [vmem:[%s1800_s1 + $0x188] ss:$16 sps:$4 sm:$0xff]  }
  0x31   :  { %875 = vmatprep.subr.bf16.mxu1 %v1247_v53  ;;  %v1342_v53 = vld [vmem:[%s1800_s1 + $0x388] ss:$16 sps:$4 sm:$0xff]  }
  0x33   :  { %835 = vmatpush2.bf16.msra.mxu0 %v1249_v54  ;;  %v1347_v54 = vld [vmem:[%s1800_s1 + $0x16c] ss:$16 sps:$4 sm:$0xff]  }
  0x34   :  { %876 = vmatpush2.bf16.msra.mxu1 %v1250_v55  ;;  %836 = vmatprep.subr.bf16.mxu0 %v1251_v56  ;;  %v1350_v55 = vld [vmem:[%s1800_s1 + $0x36c] ss:$16 sps:$4 sm:$0xff]   ;;  %v1345_v56 = vld [vmem:[%s1800_s1 + $0x168] ss:$16 sps:$4 sm:$0xff]  }
  0x35   :  { %877 = vmatprep.subr.bf16.mxu1 %v1253_v57  ;;  %v1348_v57 = vld [vmem:[%s1800_s1 + $0x368] ss:$16 sps:$4 sm:$0xff]  }
  0x37   :  { %837 = vmatpush2.bf16.msra.mxu0 %v1255_v58  ;;  %v1353_v58 = vld [vmem:[%s1800_s1 + $0x14c] ss:$16 sps:$4 sm:$0xff]  }
  0x38   :  { %878 = vmatpush2.bf16.msra.mxu1 %v1256_v59  ;;  %838 = vmatprep.subr.bf16.mxu0 %v1257_v60  ;;  %v1356_v59 = vld [vmem:[%s1800_s1 + $0x34c] ss:$16 sps:$4 sm:$0xff]   ;;  %v1351_v60 = vld [vmem:[%s1800_s1 + $0x148] ss:$16 sps:$4 sm:$0xff]  }
  0x39   :  { %879 = vmatprep.subr.bf16.mxu1 %v1259_v61  ;;  %v1354_v61 = vld [vmem:[%s1800_s1 + $0x348] ss:$16 sps:$4 sm:$0xff]  }
  0x3b   :  { %839 = vmatpush2.bf16.msra.mxu0 %v1261_v62  ;;  %v1359_v62 = vld [vmem:[%s1800_s1 + $0x12c] ss:$16 sps:$4 sm:$0xff]  }
  0x3c   :  { %880 = vmatpush2.bf16.msra.mxu1 %v1262_v63  ;;  %840 = vmatprep.subr.bf16.mxu0 %v1263_v0  ;;  %v1362_v63 = vld [vmem:[%s1800_s1 + $0x32c] ss:$16 sps:$4 sm:$0xff]   ;;  %v1357_v0 = vld [vmem:[%s1800_s1 + $0x128] ss:$16 sps:$4 sm:$0xff]  }
  0x3d   :  { %881 = vmatprep.subr.bf16.mxu1 %v1265_v1  ;;  %v1360_v1 = vld [vmem:[%s1800_s1 + $0x328] ss:$16 sps:$4 sm:$0xff]  }
  0x3f   :  { %841 = vmatpush2.bf16.msra.mxu0 %v1267_v2  ;;  %v1365_v2 = vld [vmem:[%s1800_s1 + $0x10c] ss:$16 sps:$4 sm:$0xff]  }
  0x40   :  { %882 = vmatpush2.bf16.msra.mxu1 %v1268_v3  ;;  %892 = vmatprep.subr.bf16.mxu0 %v1275_v4  ;;  %v1368_v3 = vld [vmem:[%s1800_s1 + $0x30c] ss:$16 sps:$4 sm:$0xff]   ;;  %v1363_v4 = vld [vmem:[%s1800_s1 + $0x108] ss:$16 sps:$4 sm:$0xff]  }
  0x41   :  { %933 = vmatprep.subr.bf16.mxu1 %v1278_v5  ;;  %v1366_v5 = vld [vmem:[%s1800_s1 + $0x308] ss:$16 sps:$4 sm:$0xff]  }
  0x42   :  { %843 = vmatmul.mubr.bf16.vlgmr.msra.gmra.mxu0 %v1596_v6 }
  0x43   :  { %884 = vmatmul.mubr.bf16.vlgmr.msra.gmra.mxu1 %v1598_v7  ;;  %893 = vmatpush1.bf16.msra.mxu0 %v1273_v8  ;;  %v991_v8 = vlaneseq }
  0x44   :  { %934 = vmatpush1.bf16.msra.mxu1 %v1276_v9  ;;  %894 = vmatprep.subr.bf16.mxu0 %v1281_v10 }
  0x45   :  { %935 = vmatprep.subr.bf16.mxu1 %v1284_v11  ;;  %924 = vmatprep.mubr.bf16.mxu0 %v1530_v47  ;;  %v1338_v47 = vld [vmem:[%s1800_s1 + $0x3ac] ss:$16 sps:$4 sm:$0xff]   ;;  %v992_v9 = vshrl.u32 %v991_v8, 7  ;;  %v989_v11 = vld [vmem:[%s1802_s2] sm:$0xf] }
  0x46   :  { %965 = vmatprep.mubr.bf16.mxu1 %v1040_v51  ;;  %v1344_v51 = vld [vmem:[%s1800_s1 + $0x38c] ss:$16 sps:$4 sm:$0xff]  }
  0x47   :  { %895 = vmatpush1.bf16.msra.mxu0 %v1279_v12  ;;  %v1001_v10 = vsub.s32 2, %v992_v9 }
  0x48   :  { %936 = vmatpush1.bf16.msra.mxu1 %v1282_v13  ;;  %896 = vmatprep.subr.bf16.mxu0 %v1287_v14  ;;  %v1005_v13 = vsub.s32 3, %v992_v9 }
  0x49   :  { %937 = vmatprep.subr.bf16.mxu1 %v1290_v15  ;;  %v1002_v12 = vrot.slane %v989_v11, %v1001_v10  ;;  %v993_v15 = vsub.s32 0, %v992_v9 }
  0x4a   :  { %v1006_v14 = vrot.slane %v989_v11, %v1005_v13 }
  0x4b   :  { %897 = vmatpush1.bf16.msra.mxu0 %v1285_v16  ;;  %v997_v16 = vsub.s32 1, %v992_v9 }
  0x4c   :  { %938 = vmatpush1.bf16.msra.mxu1 %v1288_v17  ;;  %898 = vmatprep.subr.bf16.mxu0 %v1293_v18  ;;  %v994_v17 = vrot.slane %v989_v11, %v993_v15 }
  0x4d   :  { %939 = vmatprep.subr.bf16.mxu1 %v1296_v19 }
  0x4f   :  { %899 = vmatpush1.bf16.msra.mxu0 %v1291_v20 }
  0x50   :  { %940 = vmatpush1.bf16.msra.mxu1 %v1294_v21  ;;  %900 = vmatprep.subr.bf16.mxu0 %v1299_v22  ;;  %v998_v21 = vrot.slane %v989_v11, %v997_v16 }
  0x51   :  { %941 = vmatprep.subr.bf16.mxu1 %v1302_v23 }
  0x53   :  { %901 = vmatpush1.bf16.msra.mxu0 %v1297_v24 }
  0x54   :  { %942 = vmatpush1.bf16.msra.mxu1 %v1300_v25  ;;  %902 = vmatprep.subr.bf16.mxu0 %v1305_v26 }
  0x55   :  { %943 = vmatprep.subr.bf16.mxu1 %v1308_v27 }
  0x57   :  { %903 = vmatpush1.bf16.msra.mxu0 %v1303_v28 }
  0x58   :  { %944 = vmatpush1.bf16.msra.mxu1 %v1306_v29  ;;  %904 = vmatprep.subr.bf16.mxu0 %v1311_v30 }
  0x59   :  { %945 = vmatprep.subr.bf16.mxu1 %v1314_v31 }
  0x5b   :  { %905 = vmatpush1.bf16.msra.mxu0 %v1309_v32 }
  0x5c   :  { %946 = vmatpush1.bf16.msra.mxu1 %v1312_v33  ;;  %906 = vmatprep.subr.bf16.mxu0 %v1317_v34 }
  0x5d   :  { %947 = vmatprep.subr.bf16.mxu1 %v1320_v35 }
  0x5f   :  { %907 = vmatpush1.bf16.msra.mxu0 %v1315_v36 }
  0x60   :  { %948 = vmatpush1.bf16.msra.mxu1 %v1318_v37  ;;  %908 = vmatprep.subr.bf16.mxu0 %v1323_v38 }
  0x61   :  { %949 = vmatprep.subr.bf16.mxu1 %v1326_v39 }
  0x63   :  { %909 = vmatpush2.bf16.msra.mxu0 %v1321_v40 }
  0x64   :  { %950 = vmatpush2.bf16.msra.mxu1 %v1324_v41  ;;  %910 = vmatprep.subr.bf16.mxu0 %v1329_v42 }
  0x65   :  { %951 = vmatprep.subr.bf16.mxu1 %v1332_v43 }
  0x67   :  { %911 = vmatpush2.bf16.msra.mxu0 %v1327_v44 }
  0x68   :  { %952 = vmatpush2.bf16.msra.mxu1 %v1330_v45  ;;  %912 = vmatprep.subr.bf16.mxu0 %v1335_v46 }
  0x69   :  { %953 = vmatprep.subr.bf16.mxu1 %v1338_v47 }
  0x6b   :  { %913 = vmatpush2.bf16.msra.mxu0 %v1333_v48 }
  0x6c   :  { %954 = vmatpush2.bf16.msra.mxu1 %v1336_v49  ;;  %914 = vmatprep.subr.bf16.mxu0 %v1341_v50 }
  0x6d   :  { %955 = vmatprep.subr.bf16.mxu1 %v1344_v51 }
  0x6f   :  { %915 = vmatpush2.bf16.msra.mxu0 %v1339_v52 }
  0x70   :  { %956 = vmatpush2.bf16.msra.mxu1 %v1342_v53  ;;  %916 = vmatprep.subr.bf16.mxu0 %v1347_v54 }
  0x71   :  { %957 = vmatprep.subr.bf16.mxu1 %v1350_v55 }
  0x73   :  { %917 = vmatpush2.bf16.msra.mxu0 %v1345_v56 }
  0x74   :  { %958 = vmatpush2.bf16.msra.mxu1 %v1348_v57  ;;  %918 = vmatprep.subr.bf16.mxu0 %v1353_v58 }
  0x75   :  { %959 = vmatprep.subr.bf16.mxu1 %v1356_v59 }
  0x77   :  { %919 = vmatpush2.bf16.msra.mxu0 %v1351_v60 }
  0x78   :  { %960 = vmatpush2.bf16.msra.mxu1 %v1354_v61  ;;  %920 = vmatprep.subr.bf16.mxu0 %v1359_v62 }
  0x79   :  { %961 = vmatprep.subr.bf16.mxu1 %v1362_v63 }
  0x7b   :  { %921 = vmatpush2.bf16.msra.mxu0 %v1357_v0 }
  0x7c   :  { %962 = vmatpush2.bf16.msra.mxu1 %v1360_v1  ;;  %922 = vmatprep.subr.bf16.mxu0 %v1365_v2 }
  0x7d   :  { %963 = vmatprep.subr.bf16.mxu1 %v1368_v3 }
  0x7f   :  { %923 = vmatpush2.bf16.msra.mxu0 %v1363_v4 }
  0x80   :  { %964 = vmatpush2.bf16.msra.mxu1 %v1366_v5 }
  0x82   :  { %925 = vmatmul.mubr.bf16.vlgmr.msra.gmra.mxu0 %v1596_v6 }
  0x83   :  { %966 = vmatmul.mubr.bf16.vlgmr.msra.gmra.mxu1 %v1598_v7 }
 0x102   :  { %v844_v18 = vpop.f32.mrf.mxu0 }
 0x103   :  { %v885_v19 = vpop.f32.mrf.mxu1 }
 0x104   :  { %v886_v20 = vadd.f32 %v885_v19, %v844_v18  ;;  %v846_v6 = vpop.f32.mrf.mxu0 }
 0x105   :  { %v887_v22 = vpop.f32.mrf.mxu1 }
 0x106   :  { %v1011_v7 = vadd.f32 %v994_v17, %v886_v20  ;;  %v888_v23 = vadd.f32 %v887_v22, %v846_v6  ;;  %v848_v24 = vpop.f32.mrf.mxu0 }
 0x107   :  { %v889_v25 = vpop.f32.mrf.mxu1 }
 0x108   :  { %v1012_v26 = vadd.f32 %v998_v21, %v888_v23  ;;  %v849_v27 = vpop.f32.mrf.mxu0 }
 0x109   :  { %v890_v28 = vpop.f32.mrf.mxu1 }
 0x10a   :  { %v1171_v29 = vpack.c.bf16 %v1012_v26, %v1011_v7 }
 0x10c   :  { %1031 = vst [vmem:[%s1803_s3] sm:$0xff] %v1171_v29 }
 0x142   :  { %v926_v30 = vpop.f32.mrf.mxu0 }
 0x143   :  { %v967_v31 = vpop.f32.mrf.mxu1 }
 0x144   :  { %v968_v32 = vadd.f32 %v967_v31, %v926_v30  ;;  %v928_v33 = vpop.f32.mrf.mxu0 }
 0x145   :  { %v969_v34 = vpop.f32.mrf.mxu1 }
 0x146   :  { %v970_v35 = vadd.f32 %v969_v34, %v928_v33  ;;  %v930_v36 = vpop.f32.mrf.mxu0  ;;  %v1013_v38 = vadd.f32 %v1002_v12, %v968_v32 }
 0x147   :  { %v971_v37 = vpop.f32.mrf.mxu1 }
 0x148   :  { %v1014_v39 = vadd.f32 %v1006_v14, %v970_v35  ;;  %v931_v40 = vpop.f32.mrf.mxu0 }
 0x149   :  { %v972_v41 = vpop.f32.mrf.mxu1 }
 0x14a   :  { %v1172_v42 = vpack.c.bf16 %v1014_v39, %v1013_v38 }
 0x14c   :  { %1032 = vst [vmem:[%s1803_s3 + $0x8] sm:$0xff] %v1172_v42 }

// kernel: _lambda_.10
= control target key start
LH: loop header
LB: loop body
LE: loop exit
PB: predicated region body
PF: predicated region fallthrough
CT: control target
= control target key end

     0   :  { %s1651_s18 = smov 0   ;;  %s1653_s19 = smov 0   ;;  %s1927_s0 = inlined_call_operand.vmem [shape: bf16[32,1152], index: 0, kind: input, shape index: {}]   ;;  %s1928_s1 = inlined_call_operand.vmem [shape: bf16[1152,128], index: 1, kind: input, shape index: {}]   ;;  %s1929_s2 = inlined_call_operand.vmem [shape: f32[1,128], index: 2, kind: input, shape index: {}]   ;;  %s1930_s3 = inlined_call_operand.vmem [shape: f32[1,128], index: 3, kind: input, shape index: {}]   ;;  %s1931_s4 = inlined_call_operand.vmem [shape: f32[1,128], index: 4, kind: input, shape index: {}]   ;;  %s1932_s5 = inlined_call_operand.vmem [shape: bf16[32,128], index: 5, kind: output, shape index: {}]  }
   0x1   :  { %s1655_s20 = smov 0  }
   0x2 LB: > { %s27_s21 = sadd.s32 1, %s1613_s19  ;;  %p1266_p0 = scmp.ge.s32.totalorder %s1617_s20, 1  ;;  %s1617_s20 = sphi %s1655_s20, %s15_s20   ;;  %s1613_s19 = sphi %s1653_s19, %s1934_s19   ;;  %s1609_s18 = sphi %s1651_s18, %s1933_s18  }
   0x3   : > { %p29_p1 = scmp.ge.s32.totalorder %s27_s21, 2  ;;  %p219_p2 = scmp.lt.s32.totalorder %s1617_s20, 3 }
   0x5   : > { %s1936_s21 = smov (%p29_p1, %s27_s21), 0  ;;  %p220_p3 = pnand %p1266_p0, %p219_p2 }
   0x6   : > { %s1267_s6 = sshll.u32 (!%p220_p3), %s1609_s18, 1 }
   0x7   : > { %223 = sbr.rel (%p220_p3) target bundleno = 320 (0x140), region = 40  ;;  %p259_p4 = scmp.lt.s32.totalorder (!%p220_p3), %s1267_s6, 3 }
   0xc   : > { %v1510_v0 = vld [vmem:[%s1928_s1 + $0x78] sm:$0xff]   ;;  %v1514_v4 = vld [vmem:[%s1928_s1 + $0x70] sm:$0xff]   ;;  %v1518_v8 = vld [vmem:[%s1928_s1 + $0x68] sm:$0xff]   ;;  %s1938_s6 = smov (!%p259_p4, %s1267_s6), 3  ;;  %vm1620_vm0 = vmmov 0  }
   0xd   : > { %v1511_v1 = vld [vmem:[%s1928_s1 + $0xf8] sm:$0xff]   ;;  %1366 = vmatprep.subr.bf16.mxu0 %v1510_v0  ;;  %v1515_v5 = vld [vmem:[%s1928_s1 + $0xf0] sm:$0xff]   ;;  %v1519_v9 = vld [vmem:[%s1928_s1 + $0xe8] sm:$0xff]   ;;  %s1483_s8 = smul.u32 36, %s1938_s6 }
   0xe   : > { %v1512_v2 = vld [vmem:[%s1928_s1 + $0x38] sm:$0xff]   ;;  %1388 = vmatprep.subr.bf16.mxu1 %v1511_v1  ;;  %v1516_v6 = vld [vmem:[%s1928_s1 + $0x30] sm:$0xff]   ;;  %v1520_v10 = vld [vmem:[%s1928_s1 + $0x28] sm:$0xff]  }
   0xf   : > { %v1513_v3 = vld [vmem:[%s1928_s1 + $0xb8] sm:$0xff]   ;;  %1367 = vmatpush3.bf16.msra.mxu0 %v1512_v2  ;;  %v1517_v7 = vld [vmem:[%s1928_s1 + $0xb0] sm:$0xff]   ;;  %v1521_v11 = vld [vmem:[%s1928_s1 + $0xa8] sm:$0xff]   ;;  %s1768_s22 = scalar_lea.vmem %s1927_s0, %s1483_s8  ;;  %s1270_s8 = sshll.u32 %s1938_s6, 2 }
  0x10   : > { %1389 = vmatpush3.bf16.msra.mxu1 %v1513_v3  ;;  %1368 = vmatprep.subr.bf16.mxu0 %v1514_v4  ;;  %v1522_v12 = vld [vmem:[%s1928_s1 + $0x60] sm:$0xff]   ;;  %v1526_v16 = vld [vmem:[%s1928_s1 + $0x58] sm:$0xff]   ;;  %v1530_v20 = vld [vmem:[%s1928_s1 + $0x50] sm:$0xff]   ;;  %s279_s11 = scalar_lea.vmem %s1932_s5, %s1270_s8 }
  0x11   : > { %1390 = vmatprep.subr.bf16.mxu1 %v1515_v5  ;;  %v1523_v13 = vld [vmem:[%s1928_s1 + $0xe0] sm:$0xff]   ;;  %v1527_v17 = vld [vmem:[%s1928_s1 + $0xd8] sm:$0xff]   ;;  %v1531_v21 = vld [vmem:[%s1928_s1 + $0xd0] sm:$0xff]  }
  0x12   : > { %v1524_v14 = vld [vmem:[%s1928_s1 + $0x20] sm:$0xff]   ;;  %v1528_v18 = vld [vmem:[%s1928_s1 + $0x18] sm:$0xff]   ;;  %v1532_v22 = vld [vmem:[%s1928_s1 + $0x10] sm:$0xff]  }
  0x13   : > { %1369 = vmatpush3.bf16.msra.mxu0 %v1516_v6  ;;  %v1525_v15 = vld [vmem:[%s1928_s1 + $0xa0] sm:$0xff]   ;;  %v1529_v19 = vld [vmem:[%s1928_s1 + $0x98] sm:$0xff]   ;;  %v1533_v23 = vld [vmem:[%s1928_s1 + $0x90] sm:$0xff]   ;;  %v1619_v6 = vmov 0.0  }
  0x14   : > { %1391 = vmatpush3.bf16.msra.mxu1 %v1517_v7  ;;  %1370 = vmatprep.subr.bf16.mxu0 %v1518_v8  ;;  %v1534_v24 = vld [vmem:[%s1928_s1 + $0x48] sm:$0xff]   ;;  %v1538_v28 = vld [vmem:[%s1928_s1 + $0x40] sm:$0xff]   ;;  %v1548_v36 = vld [vmem:[%s1928_s1 + $0x178] sm:$0xff]  }
  0x15   : > { %1392 = vmatprep.subr.bf16.mxu1 %v1519_v9  ;;  %v1535_v25 = vld [vmem:[%s1928_s1 + $0xc8] sm:$0xff]   ;;  %v1539_v29 = vld [vmem:[%s1928_s1 + $0xc0] sm:$0xff]   ;;  %v1549_v37 = vld [vmem:[%s1928_s1 + $0x138] sm:$0xff]  }
  0x16   : > { %v1536_v26 = vld [vmem:[%s1928_s1 + $0x8] sm:$0xff]   ;;  %v1540_v30 = vld [vmem:[%s1928_s1] sm:$0xff]   ;;  %v1550_v38 = vld [vmem:[%s1928_s1 + $0x1f8] sm:$0xff]  }
  0x17   : > { %1371 = vmatpush3.bf16.msra.mxu0 %v1520_v10  ;;  %v1537_v27 = vld [vmem:[%s1928_s1 + $0x88] sm:$0xff]   ;;  %v1541_v31 = vld [vmem:[%s1928_s1 + $0x80] sm:$0xff]   ;;  %v1551_v39 = vld [vmem:[%s1928_s1 + $0x1b8] sm:$0xff]  }
  0x18   : > { %1393 = vmatpush3.bf16.msra.mxu1 %v1521_v11  ;;  %1372 = vmatprep.subr.bf16.mxu0 %v1522_v12  ;;  %v1542_v32 = vld [vmem:[%s1768_s22] ss:$36 sps:$4 sm:$0xff]   ;;  %v1545_v34 = vld [vmem:[%s1768_s22 + $0x8] ss:$36 sps:$4 sm:$0xff]   ;;  %v1552_v40 = vld [vmem:[%s1928_s1 + $0x170] sm:$0xff]  }
  0x19   : > { %1394 = vmatprep.subr.bf16.mxu1 %v1523_v13  ;;  %v1544_v33 = vld [vmem:[%s1768_s22 + $0x4] ss:$36 sps:$4 sm:$0xff]   ;;  %v1547_v35 = vld [vmem:[%s1768_s22 + $0xc] ss:$36 sps:$4 sm:$0xff]   ;;  %v1564_v52 = vld [vmem:[%s1928_s1 + $0x158] sm:$0xff]  }
  0x1a   : > { %954 = vmatprep.mubr.bf16.mxu0 %v1544_v33  ;;  %995 = vmatprep.mubr.bf16.mxu1 %v1547_v35  ;;  %v1553_v41 = vld [vmem:[%s1928_s1 + $0x130] sm:$0xff]   ;;  %v1556_v44 = vld [vmem:[%s1928_s1 + $0x168] sm:$0xff]   ;;  %v1560_v48 = vld [vmem:[%s1928_s1 + $0x160] sm:$0xff]  }
  0x1b   : > { %1373 = vmatpush3.bf16.msra.mxu0 %v1524_v14  ;;  %v1554_v42 = vld [vmem:[%s1928_s1 + $0x1f0] sm:$0xff]   ;;  %v1557_v45 = vld [vmem:[%s1928_s1 + $0x128] sm:$0xff]   ;;  %v1561_v49 = vld [vmem:[%s1928_s1 + $0x120] sm:$0xff]  }
  0x1c   : > { %1395 = vmatpush3.bf16.msra.mxu1 %v1525_v15  ;;  %1374 = vmatprep.subr.bf16.mxu0 %v1526_v16  ;;  %v1555_v43 = vld [vmem:[%s1928_s1 + $0x1b0] sm:$0xff]   ;;  %v1558_v46 = vld [vmem:[%s1928_s1 + $0x1e8] sm:$0xff]   ;;  %v1562_v50 = vld [vmem:[%s1928_s1 + $0x1e0] sm:$0xff]  }
  0x1d   : > { %1396 = vmatprep.subr.bf16.mxu1 %v1527_v17  ;;  %v1559_v47 = vld [vmem:[%s1928_s1 + $0x1a8] sm:$0xff]   ;;  %v1563_v51 = vld [vmem:[%s1928_s1 + $0x1a0] sm:$0xff]   ;;  %v1565_v53 = vld [vmem:[%s1928_s1 + $0x118] sm:$0xff]  }
  0x1e   : > { %v1566_v54 = vld [vmem:[%s1928_s1 + $0x1d8] sm:$0xff]   ;;  %v1568_v56 = vld [vmem:[%s1928_s1 + $0x150] sm:$0xff]   ;;  %v1572_v60 = vld [vmem:[%s1928_s1 + $0x148] sm:$0xff]  }
  0x1f   : > { %1375 = vmatpush3.bf16.msra.mxu0 %v1528_v18  ;;  %v1567_v55 = vld [vmem:[%s1928_s1 + $0x198] sm:$0xff]   ;;  %v1569_v57 = vld [vmem:[%s1928_s1 + $0x110] sm:$0xff]   ;;  %v1573_v61 = vld [vmem:[%s1928_s1 + $0x108] sm:$0xff]  }
  0x20   : > { %1397 = vmatpush3.bf16.msra.mxu1 %v1529_v19  ;;  %1376 = vmatprep.subr.bf16.mxu0 %v1530_v20  ;;  %v1570_v58 = vld [vmem:[%s1928_s1 + $0x1d0] sm:$0xff]   ;;  %v1574_v62 = vld [vmem:[%s1928_s1 + $0x1c8] sm:$0xff]   ;;  %v1576_v0 = vld [vmem:[%s1928_s1 + $0x140] sm:$0xff]  }
  0x21   : > { %1398 = vmatprep.subr.bf16.mxu1 %v1531_v21  ;;  %v1571_v59 = vld [vmem:[%s1928_s1 + $0x190] sm:$0xff]   ;;  %v1575_v63 = vld [vmem:[%s1928_s1 + $0x188] sm:$0xff]   ;;  %v1577_v1 = vld [vmem:[%s1928_s1 + $0x100] sm:$0xff]  }
  0x22   : > { %v1578_v2 = vld [vmem:[%s1928_s1 + $0x1c0] sm:$0xff]   ;;  %v1579_v3 = vld [vmem:[%s1768_s22 + $0x10] ss:$36 sps:$4 sm:$0xff]   ;;  %v1583_v7 = vld [vmem:[%s1768_s22 + $0x18] ss:$36 sps:$4 sm:$0xff]  }
  0x23   : > { %1377 = vmatpush3.bf16.msra.mxu0 %v1532_v22  ;;  %v1581_v4 = vld [vmem:[%s1768_s22 + $0x14] ss:$36 sps:$4 sm:$0xff]   ;;  %v1582_v5 = vld [vmem:[%s1928_s1 + $0x180] sm:$0xff]   ;;  %v1588_v11 = vld [vmem:[%s1928_s1 + $0x228] sm:$0xff]  }
  0x24   : > { %1399 = vmatpush3.bf16.msra.mxu1 %v1533_v23  ;;  %1378 = vmatprep.subr.bf16.mxu0 %v1534_v24  ;;  %v1585_v8 = vld [vmem:[%s1768_s22 + $0x1c] ss:$36 sps:$4 sm:$0xff]   ;;  %v1587_v10 = vld [vmem:[%s1928_s1 + $0x230] sm:$0xff]   ;;  %v1592_v15 = vld [vmem:[%s1928_s1 + $0x208] sm:$0xff]  }
  0x25   : > { %1400 = vmatprep.subr.bf16.mxu1 %v1535_v25  ;;  %v1586_v9 = vld [vmem:[%s1928_s1 + $0x238] sm:$0xff]   ;;  %v1589_v12 = vld [vmem:[%s1928_s1 + $0x220] sm:$0xff]   ;;  %v1591_v14 = vld [vmem:[%s1928_s1 + $0x210] sm:$0xff]  }
  0x26   : > { %v1590_v13 = vld [vmem:[%s1928_s1 + $0x218] sm:$0xff]   ;;  %v1593_v16 = vld [vmem:[%s1928_s1 + $0x200] sm:$0xff]  }
  0x27   : > { %1379 = vmatpush3.bf16.msra.mxu0 %v1536_v26  ;;  %v1594_v17 = vld [vmem:[%s1768_s22 + $0x20] ss:$36 sps:$4 sm:$0xff]  }
  0x28   : > { %1401 = vmatpush3.bf16.msra.mxu1 %v1537_v27  ;;  %1380 = vmatprep.subr.bf16.mxu0 %v1538_v28 }
  0x29   : > { %1402 = vmatprep.subr.bf16.mxu1 %v1539_v29 }
  0x2b   : > { %1381 = vmatpush3.bf16.msra.mxu0 %v1540_v30 }
  0x2c   : > { %1403 = vmatpush3.bf16.msra.mxu1 %v1541_v31  ;;  %1410 = vmatprep.subr.bf16.mxu0 %v1548_v36 }
  0x2d   : > { %1432 = vmatprep.subr.bf16.mxu1 %v1550_v38 }
  0x2e   : > { %955 = vmatmul.mubr.bf16.vlgmr.msra.gmra.mxu0 %v1542_v32 }
  0x2f   : > { %996 = vmatmul.mubr.bf16.vlgmr.msra.gmra.mxu1 %v1545_v34  ;;  %1411 = vmatpush3.bf16.msra.mxu0 %v1549_v37 }
  0x30   : > { %1433 = vmatpush3.bf16.msra.mxu1 %v1551_v39  ;;  %1412 = vmatprep.subr.bf16.mxu0 %v1552_v40 }
  0x31   : > { %1434 = vmatprep.subr.bf16.mxu1 %v1554_v42  ;;  %1036 = vmatprep.mubr.bf16.mxu0 %v1581_v4 }
  0x32   : > { %1077 = vmatprep.mubr.bf16.mxu1 %v1585_v8 }
  0x33   : > { %1413 = vmatpush3.bf16.msra.mxu0 %v1553_v41 }
  0x34   : > { %1435 = vmatpush3.bf16.msra.mxu1 %v1555_v43  ;;  %1414 = vmatprep.subr.bf16.mxu0 %v1556_v44 }
  0x35   : > { %1436 = vmatprep.subr.bf16.mxu1 %v1558_v46 }
  0x37   : > { %1415 = vmatpush3.bf16.msra.mxu0 %v1557_v45 }
  0x38   : > { %1437 = vmatpush3.bf16.msra.mxu1 %v1559_v47  ;;  %1416 = vmatprep.subr.bf16.mxu0 %v1560_v48  ;;  %v1352_v48 = vld [vmem:[%s1929_s2] ss:$0 sm:$0xff] }
  0x39   : > { %1438 = vmatprep.subr.bf16.mxu1 %v1562_v50  ;;  %v1353_v50 = vld [vmem:[%s1930_s3] ss:$0 sm:$0xff] }
  0x3b   : > { %1417 = vmatpush3.bf16.msra.mxu0 %v1561_v49 }
  0x3c   : > { %1439 = vmatpush3.bf16.msra.mxu1 %v1563_v51  ;;  %1418 = vmatprep.subr.bf16.mxu0 %v1564_v52 }
  0x3d   : > { %1440 = vmatprep.subr.bf16.mxu1 %v1566_v54 }
  0x3f   : > { %1419 = vmatpush3.bf16.msra.mxu0 %v1565_v53 }
  0x40   : > { %1441 = vmatpush3.bf16.msra.mxu1 %v1567_v55  ;;  %1420 = vmatprep.subr.bf16.mxu0 %v1568_v56 }
  0x41   : > { %1442 = vmatprep.subr.bf16.mxu1 %v1570_v58 }
  0x43   : > { %1421 = vmatpush3.bf16.msra.mxu0 %v1569_v57  ;;  %v1354_v57 = vld [vmem:[%s1931_s4] ss:$0 sm:$0xff] }
  0x44   : > { %1443 = vmatpush3.bf16.msra.mxu1 %v1571_v59  ;;  %1422 = vmatprep.subr.bf16.mxu0 %v1572_v60 }
  0x45   : > { %1444 = vmatprep.subr.bf16.mxu1 %v1574_v62 }
  0x47   : > { %1423 = vmatpush3.bf16.msra.mxu0 %v1573_v61 }
  0x48   : > { %1445 = vmatpush3.bf16.msra.mxu1 %v1575_v63  ;;  %1424 = vmatprep.subr.bf16.mxu0 %v1576_v0 }
  0x49   : > { %1446 = vmatprep.subr.bf16.mxu1 %v1578_v2 }
  0x4b   : > { %1425 = vmatpush3.bf16.msra.mxu0 %v1577_v1 }
  0x4c   : > { %1463 = vmatprep.subr.bf16.mxu0 %v1619_v6  ;;  %1447 = vmatpush3.bf16.msra.mxu1 %v1582_v5 }
  0x4e   : > { %1037 = vmatmul.mubr.bf16.vlgmr.msra.gmra.mxu0 %v1579_v3 }
  0x4f   : > { %1479 = vmatprep.mubr.msk.bf16.mxu0 %vm1620_vm0, %v1619_v6  ;;  %1464 = vmatpush3.bf16.msra.mxu0 %v1586_v9 }
  0x50   : > { %1078 = vmatmul.mubr.bf16.vlgmr.msra.gmra.mxu1 %v1583_v7  ;;  %1465 = vmatprep.subr.bf16.mxu0 %v1619_v6 }
  0x53   : > { %1466 = vmatpush3.bf16.msra.mxu0 %v1587_v10 }
  0x54   : > { %1467 = vmatprep.subr.bf16.mxu0 %v1619_v6 }
  0x57   : > { %1468 = vmatpush3.bf16.msra.mxu0 %v1588_v11 }
  0x58   : > { %1469 = vmatprep.subr.bf16.mxu0 %v1619_v6 }
  0x5b   : > { %1470 = vmatpush3.bf16.msra.mxu0 %v1589_v12 }
  0x5c   : > { %1471 = vmatprep.subr.bf16.mxu0 %v1619_v6 }
  0x5f   : > { %1472 = vmatpush3.bf16.msra.mxu0 %v1590_v13 }
  0x60   : > { %1473 = vmatprep.subr.bf16.mxu0 %v1619_v6 }
  0x63   : > { %1474 = vmatpush3.bf16.msra.mxu0 %v1591_v14 }
  0x64   : > { %1475 = vmatprep.subr.bf16.mxu0 %v1619_v6 }
  0x67   : > { %1476 = vmatpush3.bf16.msra.mxu0 %v1592_v15 }
  0x68   : > { %1477 = vmatprep.subr.bf16.mxu0 %v1619_v6 }
  0x6b   : > { %1478 = vmatpush3.bf16.msra.mxu0 %v1593_v16 }
  0x6e   : > { %1480 = vmatmul.mubr.bf16.vlgmr.msra.gmra.mxu0 %v1594_v17 }
  0xee   : > { %v1382_v18 = vpop.f32.mrf.mxu0 }
  0xef   : > { %v1404_v19 = vpop.f32.mrf.mxu1 }
  0xf0   : > { %v1383_v20 = vpop.f32.mrf.mxu0 }
  0xf1   : > { %v1405_v21 = vpop.f32.mrf.mxu1  ;;  %v1384_v31 = vadd.f32 %v1383_v20, %v1382_v18 }
  0xf2   : > { %v1385_v22 = vpop.f32.mrf.mxu0  ;;  %v1406_v32 = vadd.f32 %v1405_v21, %v1404_v19 }
  0xf3   : > { %v1407_v23 = vpop.f32.mrf.mxu1 }
  0xf4   : > { %v1386_v24 = vpop.f32.mrf.mxu0  ;;  %v998_v36 = vadd.f32 %v1406_v32, %v1384_v31 }
  0xf5   : > { %v1408_v26 = vpop.f32.mrf.mxu1  ;;  %v1387_v37 = vadd.f32 %v1386_v24, %v1385_v22 }
  0xf6   : > { %v1409_v38 = vadd.f32 %v1408_v26, %v1407_v23 }
  0xf8   : > { %v1001_v43 = vadd.f32 %v1409_v38, %v1387_v37 }
 0x10e   : > { %v1426_v25 = vpop.f32.mrf.mxu0 }
 0x110   : > { %v1427_v27 = vpop.f32.mrf.mxu0  ;;  %v1448_v28 = vpop.f32.mrf.mxu1 }
 0x111   : > { %v1428_v33 = vadd.f32 %v1427_v27, %v1426_v25 }
 0x112   : > { %v1429_v29 = vpop.f32.mrf.mxu0  ;;  %v1449_v30 = vpop.f32.mrf.mxu1 }
 0x113   : > { %v1039_v39 = vadd.f32 %v1428_v33, %v998_v36  ;;  %v1450_v40 = vadd.f32 %v1449_v30, %v1448_v28 }
 0x114   : > { %v1430_v34 = vpop.f32.mrf.mxu0  ;;  %v1451_v35 = vpop.f32.mrf.mxu1 }
 0x115   : > { %v1431_v41 = vadd.f32 %v1430_v34, %v1429_v29  ;;  %v1080_v46 = vadd.f32 %v1450_v40, %v1039_v39 }
 0x116   : > { %v1452_v42 = vpop.f32.mrf.mxu1 }
 0x117   : > { %v1042_v44 = vadd.f32 %v1431_v41, %v1001_v43  ;;  %v1453_v45 = vadd.f32 %v1452_v42, %v1451_v35 }
 0x119   : > { %v1083_v53 = vadd.f32 %v1453_v45, %v1042_v44 }
 0x12e   : > { %v1120_v47 = vpop.f32.mrf.mxu0 }
 0x12f   : > { %v1121_v49 = vadd.f32 %v1120_v47, %v1080_v46 }
 0x130   : > { %v1481_v51 = vpop.f32.mrf.mxu0 }
 0x131   : > { %v1143_v52 = vadd.f32 %v1352_v48, %v1121_v49 }
 0x132   : > { %v1123_v54 = vpop.f32.mrf.mxu0 }
 0x133   : > { %v1152_v55 = vmul.f32 %v1353_v50, %v1143_v52  ;;  %v1124_v56 = vadd.f32 %v1123_v54, %v1083_v53 }
 0x134   : > { %v1482_v58 = vpop.f32.mrf.mxu0 }
 0x135   : > { %v1144_v59 = vadd.f32 %v1352_v48, %v1124_v56  ;;  %v1161_v60 = vadd.f32 %v1354_v57, %v1152_v55 }
 0x137   : > { %v1153_v61 = vmul.f32 %v1353_v50, %v1144_v59  ;;  %v1163_v63 = vmax.f32 %v1161_v60, 0.0 }
 0x139   : > { %v1162_v62 = vadd.f32 %v1354_v57, %v1153_v61 }
 0x13b   : > { %v1164_v0 = vmax.f32 %v1162_v62, 0.0 }
 0x13d   : > { %v1364_v1 = vpack.c.bf16 %v1164_v0, %v1163_v63 }
 0x13f   : > { %1365 = vst [vmem:[%s279_s11] sm:$0xff] %v1364_v1  }
 0x140 PF: > { %s15_s20 = sadd.s32 1, %s1617_s20   ;;  %s1933_s18 = smov %s1613_s19 }
 0x141   : > { %p12_p5 = scmp.ge.s32.totalorder %s15_s20, 4   ;;  %s1934_s19 = smov %s1936_s21 }
 0x143   :  { %14 = sbr.rel (!%p12_p5) target bundleno = 2 (0x2), region = 81 }

// kernel: _lambda_.12
= control target key start
LH: loop header
LB: loop body
LE: loop exit
PB: predicated region body
PF: predicated region fallthrough
CT: control target
= control target key end

     0   :  { %s1811_s12 = smov 0   ;;  %s1813_s13 = smov 0   ;;  %s2255_s0 = inlined_call_operand.vmem [shape: bf16[32,512], index: 0, kind: input, shape index: {}]   ;;  %s2256_s1 = inlined_call_operand.vmem [shape: bf16[512,512], index: 1, kind: input, shape index: {}]   ;;  %s2257_s2 = inlined_call_operand.vmem [shape: f32[1,512], index: 2, kind: input, shape index: {}]   ;;  %s2258_s3 = inlined_call_operand.vmem [shape: bf16[32,512], index: 3, kind: output, shape index: {}]  }
   0x1   :  { %s1815_s14 = smov 0  }
   0x2 LB: > { %s25_s15 = sadd.s32 1, %s1785_s13  ;;  %p1394_p0 = scmp.ge.s32.totalorder %s1789_s14, 1  ;;  %s1789_s14 = sphi %s1815_s14, %s13_s14   ;;  %s1785_s13 = sphi %s1813_s13, %s2260_s13   ;;  %s1781_s12 = sphi %s1811_s12, %s2259_s12  }
   0x3   : > { %p27_p1 = scmp.ge.s32.totalorder %s25_s15, 2  ;;  %p170_p2 = scmp.lt.s32.totalorder %s1789_s14, 3 }
   0x5   : > { %s2262_s15 = smov (%p27_p1, %s25_s15), 0  ;;  %p171_p3 = pnand %p1394_p0, %p170_p2 }
   0x6   : > { %s1395_s30 = sshll.u32 (!%p171_p3), %s1781_s12, 1 }
   0x7   : > { %174 = sbr.rel (%p171_p3) target bundleno = 348 (0x15c), region = 32  ;;  %p208_p4 = scmp.lt.s32.totalorder (!%p171_p3), %s1395_s30, 3 }
   0xc   : > { %v1569_v0 = vld [vmem:[%s2256_s1 + $0xe4] ss:$16 sps:$4 sm:$0xff]   ;;  %v1573_v2 = vld [vmem:[%s2256_s1 + $0xe0] ss:$16 sps:$4 sm:$0xff]   ;;  %s2264_s30 = smov (!%p208_p4, %s1395_s30), 3 }
   0xd   : > { %v1571_v1 = vld [vmem:[%s2256_s1 + $0x2e4] ss:$16 sps:$4 sm:$0xff]   ;;  %1044 = vmatprep.subr.bf16.mxu0 %v1569_v0  ;;  %v1574_v3 = vld [vmem:[%s2256_s1 + $0x2e0] ss:$16 sps:$4 sm:$0xff]   ;;  %s1539_s5 = sshll.u32 %s2264_s30, 4 }
   0xe   : > { %1087 = vmatprep.subr.bf16.mxu1 %v1571_v1  ;;  %v1575_v4 = vld [vmem:[%s2256_s1 + $0xc4] ss:$16 sps:$4 sm:$0xff]   ;;  %1045 = vmatpush1.bf16.msra.mxu0 %v1573_v2  ;;  %v1579_v6 = vld [vmem:[%s2256_s1 + $0xc0] ss:$16 sps:$4 sm:$0xff]   ;;  %s1975_s17 = scalar_lea.vmem %s2255_s0, %s1539_s5  ;;  %v1673_v2 = vld [vmem:[%s2256_s1 + $0xec] ss:$16 sps:$4 sm:$0xff]   ;;  %s230_s10 = scalar_lea.vmem %s2258_s3, %s1539_s5 }
   0xf   : > { %1088 = vmatpush1.bf16.msra.mxu1 %v1574_v3  ;;  %v1577_v5 = vld [vmem:[%s2256_s1 + $0x2c4] ss:$16 sps:$4 sm:$0xff]   ;;  %1046 = vmatprep.subr.bf16.mxu0 %v1575_v4  ;;  %v1580_v7 = vld [vmem:[%s2256_s1 + $0x2c0] ss:$16 sps:$4 sm:$0xff]   ;;  %v1670_v51 = vld [vmem:[%s1975_s17 + $0xc] ss:$16 sps:$4 sm:$0xff]  }
  0x10   : > { %1089 = vmatprep.subr.bf16.mxu1 %v1577_v5  ;;  %v1581_v8 = vld [vmem:[%s2256_s1 + $0xa4] ss:$16 sps:$4 sm:$0xff]   ;;  %v1585_v10 = vld [vmem:[%s2256_s1 + $0xa0] ss:$16 sps:$4 sm:$0xff]   ;;  %1119 = vmatprep.mubr.bf16.mxu1 %v1670_v51  ;;  %v1676_v3 = vld [vmem:[%s2256_s1 + $0x2ec] ss:$16 sps:$4 sm:$0xff]  }
  0x11   : > { %v1583_v9 = vld [vmem:[%s2256_s1 + $0x2a4] ss:$16 sps:$4 sm:$0xff]   ;;  %v1586_v11 = vld [vmem:[%s2256_s1 + $0x2a0] ss:$16 sps:$4 sm:$0xff]   ;;  %v2046_v5 = vld [vmem:[%s1975_s17 + $0x8] ss:$16 sps:$4 sm:$0xff]  }
  0x12   : > { %1047 = vmatpush1.bf16.msra.mxu0 %v1579_v6  ;;  %v1587_v12 = vld [vmem:[%s2256_s1 + $0x84] ss:$16 sps:$4 sm:$0xff]   ;;  %v1591_v14 = vld [vmem:[%s2256_s1 + $0x80] ss:$16 sps:$4 sm:$0xff]   ;;  %v1671_v6 = vld [vmem:[%s2256_s1 + $0xe8] ss:$16 sps:$4 sm:$0xff]  }
  0x13   : > { %1090 = vmatpush1.bf16.msra.mxu1 %v1580_v7  ;;  %1048 = vmatprep.subr.bf16.mxu0 %v1581_v8  ;;  %v1589_v13 = vld [vmem:[%s2256_s1 + $0x284] ss:$16 sps:$4 sm:$0xff]   ;;  %v1592_v15 = vld [vmem:[%s2256_s1 + $0x280] ss:$16 sps:$4 sm:$0xff]   ;;  %v1674_v7 = vld [vmem:[%s2256_s1 + $0x2e8] ss:$16 sps:$4 sm:$0xff]  }
  0x14   : > { %1091 = vmatprep.subr.bf16.mxu1 %v1583_v9  ;;  %v1593_v16 = vld [vmem:[%s2256_s1 + $0x64] ss:$16 sps:$4 sm:$0xff]   ;;  %v1597_v18 = vld [vmem:[%s2256_s1 + $0x60] ss:$16 sps:$4 sm:$0xff]   ;;  %v1679_v8 = vld [vmem:[%s2256_s1 + $0xcc] ss:$16 sps:$4 sm:$0xff]  }
  0x15   : > { %v1595_v17 = vld [vmem:[%s2256_s1 + $0x264] ss:$16 sps:$4 sm:$0xff]   ;;  %v1598_v19 = vld [vmem:[%s2256_s1 + $0x260] ss:$16 sps:$4 sm:$0xff]   ;;  %v1682_v9 = vld [vmem:[%s2256_s1 + $0x2cc] ss:$16 sps:$4 sm:$0xff]  }
  0x16   : > { %1049 = vmatpush1.bf16.msra.mxu0 %v1585_v10  ;;  %v1599_v20 = vld [vmem:[%s2256_s1 + $0x44] ss:$16 sps:$4 sm:$0xff]   ;;  %v1603_v22 = vld [vmem:[%s2256_s1 + $0x40] ss:$16 sps:$4 sm:$0xff]   ;;  %v1677_v10 = vld [vmem:[%s2256_s1 + $0xc8] ss:$16 sps:$4 sm:$0xff]  }
  0x17   : > { %1092 = vmatpush1.bf16.msra.mxu1 %v1586_v11  ;;  %1050 = vmatprep.subr.bf16.mxu0 %v1587_v12  ;;  %v1601_v21 = vld [vmem:[%s2256_s1 + $0x244] ss:$16 sps:$4 sm:$0xff]   ;;  %v1604_v23 = vld [vmem:[%s2256_s1 + $0x240] ss:$16 sps:$4 sm:$0xff]   ;;  %v1680_v11 = vld [vmem:[%s2256_s1 + $0x2c8] ss:$16 sps:$4 sm:$0xff]  }
  0x18   : > { %1093 = vmatprep.subr.bf16.mxu1 %v1589_v13  ;;  %v1605_v24 = vld [vmem:[%s2256_s1 + $0x24] ss:$16 sps:$4 sm:$0xff]   ;;  %v1609_v26 = vld [vmem:[%s2256_s1 + $0x20] ss:$16 sps:$4 sm:$0xff]   ;;  %v1685_v12 = vld [vmem:[%s2256_s1 + $0xac] ss:$16 sps:$4 sm:$0xff]  }
  0x19   : > { %v1607_v25 = vld [vmem:[%s2256_s1 + $0x224] ss:$16 sps:$4 sm:$0xff]   ;;  %v1610_v27 = vld [vmem:[%s2256_s1 + $0x220] ss:$16 sps:$4 sm:$0xff]   ;;  %v1688_v13 = vld [vmem:[%s2256_s1 + $0x2ac] ss:$16 sps:$4 sm:$0xff]  }
  0x1a   : > { %1051 = vmatpush1.bf16.msra.mxu0 %v1591_v14  ;;  %v1611_v28 = vld [vmem:[%s2256_s1 + $0x4] ss:$16 sps:$4 sm:$0xff]   ;;  %v1615_v30 = vld [vmem:[%s2256_s1] ss:$16 sps:$4 sm:$0xff]   ;;  %v1683_v14 = vld [vmem:[%s2256_s1 + $0xa8] ss:$16 sps:$4 sm:$0xff]  }
  0x1b   : > { %1094 = vmatpush1.bf16.msra.mxu1 %v1592_v15  ;;  %1052 = vmatprep.subr.bf16.mxu0 %v1593_v16  ;;  %v1613_v29 = vld [vmem:[%s2256_s1 + $0x204] ss:$16 sps:$4 sm:$0xff]   ;;  %v1616_v31 = vld [vmem:[%s2256_s1 + $0x200] ss:$16 sps:$4 sm:$0xff]   ;;  %v1686_v15 = vld [vmem:[%s2256_s1 + $0x2a8] ss:$16 sps:$4 sm:$0xff]  }
  0x1c   : > { %1095 = vmatprep.subr.bf16.mxu1 %v1595_v17  ;;  %v1617_v32 = vld [vmem:[%s2256_s1 + $0x1e4] ss:$16 sps:$4 sm:$0xff]   ;;  %v1621_v34 = vld [vmem:[%s2256_s1 + $0x1e0] ss:$16 sps:$4 sm:$0xff]   ;;  %v1691_v16 = vld [vmem:[%s2256_s1 + $0x8c] ss:$16 sps:$4 sm:$0xff]  }
  0x1d   : > { %v1619_v33 = vld [vmem:[%s2256_s1 + $0x3e4] ss:$16 sps:$4 sm:$0xff]   ;;  %v1622_v35 = vld [vmem:[%s2256_s1 + $0x3e0] ss:$16 sps:$4 sm:$0xff]   ;;  %v1694_v17 = vld [vmem:[%s2256_s1 + $0x28c] ss:$16 sps:$4 sm:$0xff]  }
  0x1e   : > { %1053 = vmatpush1.bf16.msra.mxu0 %v1597_v18  ;;  %v1623_v36 = vld [vmem:[%s2256_s1 + $0x1c4] ss:$16 sps:$4 sm:$0xff]   ;;  %v1627_v38 = vld [vmem:[%s2256_s1 + $0x1c0] ss:$16 sps:$4 sm:$0xff]   ;;  %v1689_v18 = vld [vmem:[%s2256_s1 + $0x88] ss:$16 sps:$4 sm:$0xff]  }
  0x1f   : > { %1096 = vmatpush1.bf16.msra.mxu1 %v1598_v19  ;;  %1054 = vmatprep.subr.bf16.mxu0 %v1599_v20  ;;  %v1625_v37 = vld [vmem:[%s2256_s1 + $0x3c4] ss:$16 sps:$4 sm:$0xff]   ;;  %v1628_v39 = vld [vmem:[%s2256_s1 + $0x3c0] ss:$16 sps:$4 sm:$0xff]   ;;  %v1692_v19 = vld [vmem:[%s2256_s1 + $0x288] ss:$16 sps:$4 sm:$0xff]  }
  0x20   : > { %1097 = vmatprep.subr.bf16.mxu1 %v1601_v21  ;;  %v1629_v40 = vld [vmem:[%s2256_s1 + $0x1a4] ss:$16 sps:$4 sm:$0xff]   ;;  %v1633_v42 = vld [vmem:[%s2256_s1 + $0x1a0] ss:$16 sps:$4 sm:$0xff]   ;;  %v1697_v20 = vld [vmem:[%s2256_s1 + $0x6c] ss:$16 sps:$4 sm:$0xff]  }
  0x21   : > { %v1631_v41 = vld [vmem:[%s2256_s1 + $0x3a4] ss:$16 sps:$4 sm:$0xff]   ;;  %v1634_v43 = vld [vmem:[%s2256_s1 + $0x3a0] ss:$16 sps:$4 sm:$0xff]   ;;  %v1700_v21 = vld [vmem:[%s2256_s1 + $0x26c] ss:$16 sps:$4 sm:$0xff]  }
  0x22   : > { %1055 = vmatpush1.bf16.msra.mxu0 %v1603_v22  ;;  %v1635_v44 = vld [vmem:[%s2256_s1 + $0x184] ss:$16 sps:$4 sm:$0xff]   ;;  %v1639_v46 = vld [vmem:[%s2256_s1 + $0x180] ss:$16 sps:$4 sm:$0xff]   ;;  %v1695_v22 = vld [vmem:[%s2256_s1 + $0x68] ss:$16 sps:$4 sm:$0xff]  }
  0x23   : > { %1098 = vmatpush1.bf16.msra.mxu1 %v1604_v23  ;;  %1056 = vmatprep.subr.bf16.mxu0 %v1605_v24  ;;  %v1637_v45 = vld [vmem:[%s2256_s1 + $0x384] ss:$16 sps:$4 sm:$0xff]   ;;  %v1640_v47 = vld [vmem:[%s2256_s1 + $0x380] ss:$16 sps:$4 sm:$0xff]   ;;  %v1698_v23 = vld [vmem:[%s2256_s1 + $0x268] ss:$16 sps:$4 sm:$0xff]  }
  0x24   : > { %1099 = vmatprep.subr.bf16.mxu1 %v1607_v25  ;;  %v1641_v48 = vld [vmem:[%s2256_s1 + $0x164] ss:$16 sps:$4 sm:$0xff]   ;;  %v1645_v52 = vld [vmem:[%s2256_s1 + $0x160] ss:$16 sps:$4 sm:$0xff]   ;;  %v1703_v24 = vld [vmem:[%s2256_s1 + $0x4c] ss:$16 sps:$4 sm:$0xff]  }
  0x25   : > { %v1667_v49 = vld [vmem:[%s1975_s17 + $0x4] ss:$16 sps:$4 sm:$0xff]   ;;  %v1646_v53 = vld [vmem:[%s2256_s1 + $0x360] ss:$16 sps:$4 sm:$0xff]   ;;  %v1706_v25 = vld [vmem:[%s2256_s1 + $0x24c] ss:$16 sps:$4 sm:$0xff]  }
  0x26   : > { %1057 = vmatpush1.bf16.msra.mxu0 %v1609_v26  ;;  %v1643_v50 = vld [vmem:[%s2256_s1 + $0x364] ss:$16 sps:$4 sm:$0xff]   ;;  %1076 = vmatprep.mubr.bf16.mxu0 %v1667_v49  ;;  %v1651_v56 = vld [vmem:[%s2256_s1 + $0x140] ss:$16 sps:$4 sm:$0xff]   ;;  %v1701_v26 = vld [vmem:[%s2256_s1 + $0x48] ss:$16 sps:$4 sm:$0xff]  }
  0x27   : > { %1100 = vmatpush1.bf16.msra.mxu1 %v1610_v27  ;;  %1058 = vmatprep.subr.bf16.mxu0 %v1611_v28  ;;  %v1647_v54 = vld [vmem:[%s2256_s1 + $0x144] ss:$16 sps:$4 sm:$0xff]   ;;  %v1652_v57 = vld [vmem:[%s2256_s1 + $0x340] ss:$16 sps:$4 sm:$0xff]   ;;  %v1704_v27 = vld [vmem:[%s2256_s1 + $0x248] ss:$16 sps:$4 sm:$0xff]  }
  0x28   : > { %1101 = vmatprep.subr.bf16.mxu1 %v1613_v29  ;;  %v1649_v55 = vld [vmem:[%s2256_s1 + $0x344] ss:$16 sps:$4 sm:$0xff]   ;;  %v1657_v60 = vld [vmem:[%s2256_s1 + $0x120] ss:$16 sps:$4 sm:$0xff]   ;;  %v1709_v28 = vld [vmem:[%s2256_s1 + $0x2c] ss:$16 sps:$4 sm:$0xff]  }
  0x29   : > { %v1653_v58 = vld [vmem:[%s2256_s1 + $0x124] ss:$16 sps:$4 sm:$0xff]   ;;  %v1658_v61 = vld [vmem:[%s2256_s1 + $0x320] ss:$16 sps:$4 sm:$0xff]   ;;  %v1712_v29 = vld [vmem:[%s2256_s1 + $0x22c] ss:$16 sps:$4 sm:$0xff]  }
  0x2a   : > { %1059 = vmatpush1.bf16.msra.mxu0 %v1615_v30  ;;  %v1655_v59 = vld [vmem:[%s2256_s1 + $0x324] ss:$16 sps:$4 sm:$0xff]   ;;  %v1663_v0 = vld [vmem:[%s2256_s1 + $0x100] ss:$16 sps:$4 sm:$0xff]   ;;  %v1707_v30 = vld [vmem:[%s2256_s1 + $0x28] ss:$16 sps:$4 sm:$0xff]  }
  0x2b   : > { %1102 = vmatpush1.bf16.msra.mxu1 %v1616_v31  ;;  %1060 = vmatprep.subr.bf16.mxu0 %v1617_v32  ;;  %v1659_v62 = vld [vmem:[%s2256_s1 + $0x104] ss:$16 sps:$4 sm:$0xff]   ;;  %v1664_v1 = vld [vmem:[%s2256_s1 + $0x300] ss:$16 sps:$4 sm:$0xff]   ;;  %v1710_v31 = vld [vmem:[%s2256_s1 + $0x228] ss:$16 sps:$4 sm:$0xff]  }
  0x2c   : > { %1103 = vmatprep.subr.bf16.mxu1 %v1619_v33  ;;  %v1661_v63 = vld [vmem:[%s2256_s1 + $0x304] ss:$16 sps:$4 sm:$0xff]   ;;  %v2043_v4 = vld [vmem:[%s1975_s17] ss:$16 sps:$4 sm:$0xff]   ;;  %v1715_v32 = vld [vmem:[%s2256_s1 + $0xc] ss:$16 sps:$4 sm:$0xff]  }
  0x2d   : > { %v1718_v33 = vld [vmem:[%s2256_s1 + $0x20c] ss:$16 sps:$4 sm:$0xff]  }
  0x2e   : > { %1061 = vmatpush2.bf16.msra.mxu0 %v1621_v34  ;;  %v1713_v34 = vld [vmem:[%s2256_s1 + $0x8] ss:$16 sps:$4 sm:$0xff]  }
  0x2f   : > { %1104 = vmatpush2.bf16.msra.mxu1 %v1622_v35  ;;  %1062 = vmatprep.subr.bf16.mxu0 %v1623_v36  ;;  %v1716_v35 = vld [vmem:[%s2256_s1 + $0x208] ss:$16 sps:$4 sm:$0xff]   ;;  %v1721_v36 = vld [vmem:[%s2256_s1 + $0x1ec] ss:$16 sps:$4 sm:$0xff]  }
  0x30   : > { %1105 = vmatprep.subr.bf16.mxu1 %v1625_v37  ;;  %v1724_v37 = vld [vmem:[%s2256_s1 + $0x3ec] ss:$16 sps:$4 sm:$0xff]  }
  0x32   : > { %1063 = vmatpush2.bf16.msra.mxu0 %v1627_v38  ;;  %v1719_v38 = vld [vmem:[%s2256_s1 + $0x1e8] ss:$16 sps:$4 sm:$0xff]  }
  0x33   : > { %1106 = vmatpush2.bf16.msra.mxu1 %v1628_v39  ;;  %1064 = vmatprep.subr.bf16.mxu0 %v1629_v40  ;;  %v1722_v39 = vld [vmem:[%s2256_s1 + $0x3e8] ss:$16 sps:$4 sm:$0xff]   ;;  %v1727_v40 = vld [vmem:[%s2256_s1 + $0x1cc] ss:$16 sps:$4 sm:$0xff]  }
  0x34   : > { %1107 = vmatprep.subr.bf16.mxu1 %v1631_v41  ;;  %v1730_v41 = vld [vmem:[%s2256_s1 + $0x3cc] ss:$16 sps:$4 sm:$0xff]  }
  0x36   : > { %1065 = vmatpush2.bf16.msra.mxu0 %v1633_v42  ;;  %v1725_v42 = vld [vmem:[%s2256_s1 + $0x1c8] ss:$16 sps:$4 sm:$0xff]  }
  0x37   : > { %1108 = vmatpush2.bf16.msra.mxu1 %v1634_v43  ;;  %1066 = vmatprep.subr.bf16.mxu0 %v1635_v44  ;;  %v1728_v43 = vld [vmem:[%s2256_s1 + $0x3c8] ss:$16 sps:$4 sm:$0xff]   ;;  %v1733_v44 = vld [vmem:[%s2256_s1 + $0x1ac] ss:$16 sps:$4 sm:$0xff]  }
  0x38   : > { %1109 = vmatprep.subr.bf16.mxu1 %v1637_v45  ;;  %v1736_v45 = vld [vmem:[%s2256_s1 + $0x3ac] ss:$16 sps:$4 sm:$0xff]  }
  0x3a   : > { %1067 = vmatpush2.bf16.msra.mxu0 %v1639_v46  ;;  %v1731_v46 = vld [vmem:[%s2256_s1 + $0x1a8] ss:$16 sps:$4 sm:$0xff]  }
  0x3b   : > { %1110 = vmatpush2.bf16.msra.mxu1 %v1640_v47  ;;  %1068 = vmatprep.subr.bf16.mxu0 %v1641_v48  ;;  %v1734_v47 = vld [vmem:[%s2256_s1 + $0x3a8] ss:$16 sps:$4 sm:$0xff]   ;;  %v1739_v48 = vld [vmem:[%s2256_s1 + $0x18c] ss:$16 sps:$4 sm:$0xff]  }
  0x3c   : > { %1111 = vmatprep.subr.bf16.mxu1 %v1643_v50  ;;  %v1737_v50 = vld [vmem:[%s2256_s1 + $0x188] ss:$16 sps:$4 sm:$0xff]  }
  0x3e   : > { %1069 = vmatpush2.bf16.msra.mxu0 %v1645_v52  ;;  %v1745_v52 = vld [vmem:[%s2256_s1 + $0x16c] ss:$16 sps:$4 sm:$0xff]  }
  0x3f   : > { %1112 = vmatpush2.bf16.msra.mxu1 %v1646_v53  ;;  %1070 = vmatprep.subr.bf16.mxu0 %v1647_v54  ;;  %v1748_v53 = vld [vmem:[%s2256_s1 + $0x36c] ss:$16 sps:$4 sm:$0xff]   ;;  %v1743_v54 = vld [vmem:[%s2256_s1 + $0x168] ss:$16 sps:$4 sm:$0xff]  }
  0x40   : > { %1113 = vmatprep.subr.bf16.mxu1 %v1649_v55  ;;  %v1746_v55 = vld [vmem:[%s2256_s1 + $0x368] ss:$16 sps:$4 sm:$0xff]  }
  0x42   : > { %1071 = vmatpush2.bf16.msra.mxu0 %v1651_v56  ;;  %v1751_v56 = vld [vmem:[%s2256_s1 + $0x14c] ss:$16 sps:$4 sm:$0xff]  }
  0x43   : > { %1114 = vmatpush2.bf16.msra.mxu1 %v1652_v57  ;;  %1072 = vmatprep.subr.bf16.mxu0 %v1653_v58  ;;  %v1754_v57 = vld [vmem:[%s2256_s1 + $0x34c] ss:$16 sps:$4 sm:$0xff]   ;;  %v1749_v58 = vld [vmem:[%s2256_s1 + $0x148] ss:$16 sps:$4 sm:$0xff]  }
  0x44   : > { %1115 = vmatprep.subr.bf16.mxu1 %v1655_v59  ;;  %v1752_v59 = vld [vmem:[%s2256_s1 + $0x348] ss:$16 sps:$4 sm:$0xff]  }
  0x46   : > { %1073 = vmatpush2.bf16.msra.mxu0 %v1657_v60  ;;  %v1757_v60 = vld [vmem:[%s2256_s1 + $0x12c] ss:$16 sps:$4 sm:$0xff]  }
  0x47   : > { %1116 = vmatpush2.bf16.msra.mxu1 %v1658_v61  ;;  %1074 = vmatprep.subr.bf16.mxu0 %v1659_v62  ;;  %v1760_v61 = vld [vmem:[%s2256_s1 + $0x32c] ss:$16 sps:$4 sm:$0xff]   ;;  %v1755_v62 = vld [vmem:[%s2256_s1 + $0x128] ss:$16 sps:$4 sm:$0xff]  }
  0x48   : > { %1117 = vmatprep.subr.bf16.mxu1 %v1661_v63  ;;  %v1758_v63 = vld [vmem:[%s2256_s1 + $0x328] ss:$16 sps:$4 sm:$0xff]  }
  0x4a   : > { %1075 = vmatpush2.bf16.msra.mxu0 %v1663_v0  ;;  %v1763_v0 = vld [vmem:[%s2256_s1 + $0x10c] ss:$16 sps:$4 sm:$0xff]  }
  0x4b   : > { %1118 = vmatpush2.bf16.msra.mxu1 %v1664_v1  ;;  %1130 = vmatprep.subr.bf16.mxu0 %v1673_v2  ;;  %v1766_v1 = vld [vmem:[%s2256_s1 + $0x30c] ss:$16 sps:$4 sm:$0xff]   ;;  %v1761_v2 = vld [vmem:[%s2256_s1 + $0x108] ss:$16 sps:$4 sm:$0xff]  }
  0x4c   : > { %1173 = vmatprep.subr.bf16.mxu1 %v1676_v3  ;;  %v1764_v3 = vld [vmem:[%s2256_s1 + $0x308] ss:$16 sps:$4 sm:$0xff]  }
  0x4d   : > { %1077 = vmatmul.mubr.bf16.vlgmr.msra.gmra.mxu0 %v2043_v4 }
  0x4e   : > { %1120 = vmatmul.mubr.bf16.vlgmr.msra.gmra.mxu1 %v2046_v5  ;;  %1131 = vmatpush1.bf16.msra.mxu0 %v1671_v6  ;;  %v1245_v6 = vlaneseq }
  0x4f   : > { %1174 = vmatpush1.bf16.msra.mxu1 %v1674_v7  ;;  %1132 = vmatprep.subr.bf16.mxu0 %v1679_v8 }
  0x50   : > { %1175 = vmatprep.subr.bf16.mxu1 %v1682_v9  ;;  %1162 = vmatprep.mubr.bf16.mxu0 %v1667_v49  ;;  %v1742_v49 = vld [vmem:[%s2256_s1 + $0x38c] ss:$16 sps:$4 sm:$0xff]   ;;  %v1246_v7 = vshrl.u32 %v1245_v6, 7  ;;  %v1243_v9 = vld [vmem:[%s2257_s2] sm:$0xf] }
  0x51   : > { %1205 = vmatprep.mubr.bf16.mxu1 %v1670_v51  ;;  %v1740_v51 = vld [vmem:[%s2256_s1 + $0x388] ss:$16 sps:$4 sm:$0xff]  }
  0x52   : > { %1133 = vmatpush1.bf16.msra.mxu0 %v1677_v10  ;;  %v1255_v8 = vsub.s32 2, %v1246_v7 }
  0x53   : > { %1176 = vmatpush1.bf16.msra.mxu1 %v1680_v11  ;;  %1134 = vmatprep.subr.bf16.mxu0 %v1685_v12  ;;  %v1259_v11 = vsub.s32 3, %v1246_v7 }
  0x54   : > { %1177 = vmatprep.subr.bf16.mxu1 %v1688_v13  ;;  %v1256_v10 = vrot.slane %v1243_v9, %v1255_v8  ;;  %v1247_v13 = vsub.s32 0, %v1246_v7 }
  0x55   : > { %v1260_v12 = vrot.slane %v1243_v9, %v1259_v11 }
  0x56   : > { %1135 = vmatpush1.bf16.msra.mxu0 %v1683_v14  ;;  %v1251_v14 = vsub.s32 1, %v1246_v7 }
  0x57   : > { %1178 = vmatpush1.bf16.msra.mxu1 %v1686_v15  ;;  %1136 = vmatprep.subr.bf16.mxu0 %v1691_v16  ;;  %v1248_v15 = vrot.slane %v1243_v9, %v1247_v13 }
  0x58   : > { %1179 = vmatprep.subr.bf16.mxu1 %v1694_v17 }
  0x5a   : > { %1137 = vmatpush1.bf16.msra.mxu0 %v1689_v18 }
  0x5b   : > { %1180 = vmatpush1.bf16.msra.mxu1 %v1692_v19  ;;  %1138 = vmatprep.subr.bf16.mxu0 %v1697_v20 }
  0x5c   : > { %1181 = vmatprep.subr.bf16.mxu1 %v1700_v21 }
  0x5e   : > { %1139 = vmatpush1.bf16.msra.mxu0 %v1695_v22 }
  0x5f   : > { %1182 = vmatpush1.bf16.msra.mxu1 %v1698_v23  ;;  %1140 = vmatprep.subr.bf16.mxu0 %v1703_v24 }
  0x60   : > { %1183 = vmatprep.subr.bf16.mxu1 %v1706_v25 }
  0x62   : > { %1141 = vmatpush1.bf16.msra.mxu0 %v1701_v26 }
  0x63   : > { %1184 = vmatpush1.bf16.msra.mxu1 %v1704_v27  ;;  %1142 = vmatprep.subr.bf16.mxu0 %v1709_v28 }
  0x64   : > { %1185 = vmatprep.subr.bf16.mxu1 %v1712_v29 }
  0x66   : > { %1143 = vmatpush1.bf16.msra.mxu0 %v1707_v30 }
  0x67   : > { %1186 = vmatpush1.bf16.msra.mxu1 %v1710_v31  ;;  %1144 = vmatprep.subr.bf16.mxu0 %v1715_v32 }
  0x68   : > { %1187 = vmatprep.subr.bf16.mxu1 %v1718_v33 }
  0x6a   : > { %1145 = vmatpush1.bf16.msra.mxu0 %v1713_v34 }
  0x6b   : > { %1188 = vmatpush1.bf16.msra.mxu1 %v1716_v35  ;;  %1146 = vmatprep.subr.bf16.mxu0 %v1721_v36 }
  0x6c   : > { %1189 = vmatprep.subr.bf16.mxu1 %v1724_v37 }
  0x6e   : > { %1147 = vmatpush2.bf16.msra.mxu0 %v1719_v38 }
  0x6f   : > { %1190 = vmatpush2.bf16.msra.mxu1 %v1722_v39  ;;  %1148 = vmatprep.subr.bf16.mxu0 %v1727_v40 }
  0x70   : > { %1191 = vmatprep.subr.bf16.mxu1 %v1730_v41 }
  0x72   : > { %1149 = vmatpush2.bf16.msra.mxu0 %v1725_v42 }
  0x73   : > { %1192 = vmatpush2.bf16.msra.mxu1 %v1728_v43  ;;  %1150 = vmatprep.subr.bf16.mxu0 %v1733_v44 }
  0x74   : > { %1193 = vmatprep.subr.bf16.mxu1 %v1736_v45 }
  0x76   : > { %1151 = vmatpush2.bf16.msra.mxu0 %v1731_v46 }
  0x77   : > { %1194 = vmatpush2.bf16.msra.mxu1 %v1734_v47  ;;  %1152 = vmatprep.subr.bf16.mxu0 %v1739_v48 }
  0x78   : > { %1195 = vmatprep.subr.bf16.mxu1 %v1742_v49 }
  0x7a   : > { %1153 = vmatpush2.bf16.msra.mxu0 %v1737_v50 }
  0x7b   : > { %1196 = vmatpush2.bf16.msra.mxu1 %v1740_v51  ;;  %1154 = vmatprep.subr.bf16.mxu0 %v1745_v52 }
  0x7c   : > { %1197 = vmatprep.subr.bf16.mxu1 %v1748_v53 }
  0x7e   : > { %1155 = vmatpush2.bf16.msra.mxu0 %v1743_v54 }
  0x7f   : > { %1198 = vmatpush2.bf16.msra.mxu1 %v1746_v55  ;;  %1156 = vmatprep.subr.bf16.mxu0 %v1751_v56 }
  0x80   : > { %1199 = vmatprep.subr.bf16.mxu1 %v1754_v57 }
  0x82   : > { %1157 = vmatpush2.bf16.msra.mxu0 %v1749_v58 }
  0x83   : > { %1200 = vmatpush2.bf16.msra.mxu1 %v1752_v59  ;;  %1158 = vmatprep.subr.bf16.mxu0 %v1757_v60 }
  0x84   : > { %1201 = vmatprep.subr.bf16.mxu1 %v1760_v61 }
  0x86   : > { %1159 = vmatpush2.bf16.msra.mxu0 %v1755_v62 }
  0x87   : > { %1202 = vmatpush2.bf16.msra.mxu1 %v1758_v63  ;;  %1160 = vmatprep.subr.bf16.mxu0 %v1763_v0 }
  0x88   : > { %1203 = vmatprep.subr.bf16.mxu1 %v1766_v1 }
  0x8a   : > { %1161 = vmatpush2.bf16.msra.mxu0 %v1761_v2 }
  0x8b   : > { %1204 = vmatpush2.bf16.msra.mxu1 %v1764_v3 }
  0x8d   : > { %1163 = vmatmul.mubr.bf16.vlgmr.msra.gmra.mxu0 %v2043_v4  ;;  %v1252_v4 = vrot.slane %v1243_v9, %v1251_v14 }
  0x8e   : > { %1206 = vmatmul.mubr.bf16.vlgmr.msra.gmra.mxu1 %v2046_v5 }
 0x10d   : > { %v1078_v16 = vpop.f32.mrf.mxu0 }
 0x10e   : > { %v1121_v17 = vpop.f32.mrf.mxu1 }
 0x10f   : > { %v1122_v18 = vadd.f32 %v1121_v17, %v1078_v16  ;;  %v1080_v19 = vpop.f32.mrf.mxu0 }
 0x110   : > { %v1123_v5 = vpop.f32.mrf.mxu1 }
 0x111   : > { %v1265_v20 = vadd.f32 %v1248_v15, %v1122_v18  ;;  %v1124_v21 = vadd.f32 %v1123_v5, %v1080_v19  ;;  %v1082_v22 = vpop.f32.mrf.mxu0 }
 0x112   : > { %v1125_v23 = vpop.f32.mrf.mxu1 }
 0x113   : > { %v1266_v24 = vadd.f32 %v1252_v4, %v1124_v21  ;;  %v1126_v25 = vadd.f32 %v1125_v23, %v1082_v22  ;;  %v1084_v26 = vpop.f32.mrf.mxu0 }
 0x114   : > { %v1127_v27 = vpop.f32.mrf.mxu1 }
 0x115   : > { %v1541_v28 = vpack.c.bf16 %v1266_v24, %v1265_v20  ;;  %v1128_v29 = vadd.f32 %v1127_v27, %v1084_v26  ;;  %v1269_v30 = vadd.f32 %v1248_v15, %v1126_v25 }
 0x117   : > { %1297 = vst [vmem:[%s230_s10] sm:$0xff] %v1541_v28  ;;  %v1270_v31 = vadd.f32 %v1252_v4, %v1128_v29 }
 0x119   : > { %v1543_v32 = vpack.c.bf16 %v1270_v31, %v1269_v30 }
 0x11b   : > { %1299 = vst [vmem:[%s230_s10 + $0x10] sm:$0xff] %v1543_v32 }
 0x14d   : > { %v1164_v33 = vpop.f32.mrf.mxu0 }
 0x14e   : > { %v1207_v34 = vpop.f32.mrf.mxu1 }
 0x14f   : > { %v1208_v35 = vadd.f32 %v1207_v34, %v1164_v33  ;;  %v1166_v36 = vpop.f32.mrf.mxu0 }
 0x150   : > { %v1209_v37 = vpop.f32.mrf.mxu1 }
 0x151   : > { %v1210_v38 = vadd.f32 %v1209_v37, %v1166_v36  ;;  %v1168_v39 = vpop.f32.mrf.mxu0  ;;  %v1267_v41 = vadd.f32 %v1256_v10, %v1208_v35 }
 0x152   : > { %v1211_v40 = vpop.f32.mrf.mxu1 }
 0x153   : > { %v1268_v42 = vadd.f32 %v1260_v12, %v1210_v38  ;;  %v1212_v43 = vadd.f32 %v1211_v40, %v1168_v39  ;;  %v1170_v44 = vpop.f32.mrf.mxu0 }
 0x154   : > { %v1213_v45 = vpop.f32.mrf.mxu1 }
 0x155   : > { %v1542_v46 = vpack.c.bf16 %v1268_v42, %v1267_v41  ;;  %v1214_v47 = vadd.f32 %v1213_v45, %v1170_v44  ;;  %v1271_v48 = vadd.f32 %v1256_v10, %v1212_v43 }
 0x157   : > { %1298 = vst [vmem:[%s230_s10 + $0x8] sm:$0xff] %v1542_v46  ;;  %v1272_v49 = vadd.f32 %v1260_v12, %v1214_v47 }
 0x159   : > { %v1544_v50 = vpack.c.bf16 %v1272_v49, %v1271_v48 }
 0x15b   : > { %1300 = vst [vmem:[%s230_s10 + $0x18] sm:$0xff] %v1544_v50 }
 0x15c PF: > { %s13_s14 = sadd.s32 1, %s1789_s14   ;;  %s2259_s12 = smov %s1785_s13 }
 0x15d   : > { %p10_p5 = scmp.ge.s32.totalorder %s13_s14, 4   ;;  %s2260_s13 = smov %s2262_s15 }
 0x15f   :  { %12 = sbr.rel (!%p10_p5) target bundleno = 2 (0x2), region = 73 }

// kernel: _lambda_.11
= control target key start
LH: loop header
LB: loop body
LE: loop exit
PB: predicated region body
PF: predicated region fallthrough
CT: control target
= control target key end

     0   :  { %s2854_s18 = smov 0   ;;  %s2856_s19 = smov 0   ;;  %s3378_s0 = inlined_call_operand.vmem [shape: bf16[32,1152], index: 0, kind: input, shape index: {}]   ;;  %s3379_s1 = inlined_call_operand.vmem [shape: bf16[1152,128], index: 1, kind: input, shape index: {}]   ;;  %s3380_s2 = inlined_call_operand.vmem [shape: bf16[32,1152], index: 2, kind: input, shape index: {}]   ;;  %s3381_s3 = inlined_call_operand.vmem [shape: bf16[1152,128], index: 3, kind: input, shape index: {}]   ;;  %s3382_s4 = inlined_call_operand.vmem [shape: f32[1,128], index: 4, kind: input, shape index: {}]   ;;  %s3383_s5 = inlined_call_operand.vmem [shape: bf16[32,128], index: 5, kind: output, shape index: {}]  }
   0x1   :  { %s2858_s20 = smov 0  }
   0x2 LB: > { %s27_s21 = sadd.s32 1, %s2816_s19  ;;  %p2186_p0 = scmp.ge.s32.totalorder %s2820_s20, 1  ;;  %s2820_s20 = sphi %s2858_s20, %s15_s20   ;;  %s2816_s19 = sphi %s2856_s19, %s3385_s19   ;;  %s2812_s18 = sphi %s2854_s18, %s3384_s18  }
   0x3   : > { %p29_p1 = scmp.ge.s32.totalorder %s27_s21, 2  ;;  %p249_p2 = scmp.lt.s32.totalorder %s2820_s20, 3 }
   0x5   : > { %s3387_s21 = smov (%p29_p1, %s27_s21), 0  ;;  %p250_p3 = pnand %p2186_p0, %p249_p2 }
   0x6   : > { %s2187_s6 = sshll.u32 (!%p250_p3), %s2812_s18, 1 }
   0x7   : > { %253 = sbr.rel (%p250_p3) target bundleno = 387 (0x183), region = 40  ;;  %p304_p4 = scmp.lt.s32.totalorder (!%p250_p3), %s2187_s6, 3 }
   0xc   : > { %v2628_v0 = vld [vmem:[%s3379_s1 + $0x78] sm:$0xff]   ;;  %v2632_v4 = vld [vmem:[%s3379_s1 + $0x70] sm:$0xff]   ;;  %v2636_v8 = vld [vmem:[%s3379_s1 + $0x68] sm:$0xff]   ;;  %s3389_s6 = smov (!%p304_p4, %s2187_s6), 3  ;;  %vm2823_vm0 = vmmov 0  }
   0xd   : > { %v2629_v1 = vld [vmem:[%s3379_s1 + $0xf8] sm:$0xff]   ;;  %2367 = vmatprep.subr.bf16.mxu0 %v2628_v0  ;;  %v2633_v5 = vld [vmem:[%s3379_s1 + $0xf0] sm:$0xff]   ;;  %v2637_v9 = vld [vmem:[%s3379_s1 + $0xe8] sm:$0xff]   ;;  %s2601_s8 = smul.u32 36, %s3389_s6  ;;  %s2192_s16 = sshll.u32 %s3389_s6, 2 }
   0xe   : > { %v2630_v2 = vld [vmem:[%s3379_s1 + $0x38] sm:$0xff]   ;;  %2389 = vmatprep.subr.bf16.mxu1 %v2629_v1  ;;  %v2634_v6 = vld [vmem:[%s3379_s1 + $0x30] sm:$0xff]   ;;  %v2638_v10 = vld [vmem:[%s3379_s1 + $0x28] sm:$0xff]  }
   0xf   : > { %v2631_v3 = vld [vmem:[%s3379_s1 + $0xb8] sm:$0xff]   ;;  %2368 = vmatpush3.bf16.msra.mxu0 %v2630_v2  ;;  %v2635_v7 = vld [vmem:[%s3379_s1 + $0xb0] sm:$0xff]   ;;  %v2639_v11 = vld [vmem:[%s3379_s1 + $0xa8] sm:$0xff]   ;;  %s2973_s22 = scalar_lea.vmem %s3378_s0, %s2601_s8  ;;  %s3155_s13 = scalar_lea.vmem %s3380_s2, %s2601_s8 }
  0x10   : > { %2390 = vmatpush3.bf16.msra.mxu1 %v2631_v3  ;;  %2369 = vmatprep.subr.bf16.mxu0 %v2632_v4  ;;  %v2640_v12 = vld [vmem:[%s3379_s1 + $0x60] sm:$0xff]   ;;  %v2644_v16 = vld [vmem:[%s3379_s1 + $0x58] sm:$0xff]   ;;  %v2648_v20 = vld [vmem:[%s3379_s1 + $0x50] sm:$0xff]   ;;  %s342_s8 = scalar_lea.vmem %s3383_s5, %s2192_s16 }
  0x11   : > { %2391 = vmatprep.subr.bf16.mxu1 %v2633_v5  ;;  %v2641_v13 = vld [vmem:[%s3379_s1 + $0xe0] sm:$0xff]   ;;  %v2645_v17 = vld [vmem:[%s3379_s1 + $0xd8] sm:$0xff]   ;;  %v2649_v21 = vld [vmem:[%s3379_s1 + $0xd0] sm:$0xff]  }
  0x12   : > { %v2642_v14 = vld [vmem:[%s3379_s1 + $0x20] sm:$0xff]   ;;  %v2646_v18 = vld [vmem:[%s3379_s1 + $0x18] sm:$0xff]   ;;  %v2650_v22 = vld [vmem:[%s3379_s1 + $0x10] sm:$0xff]  }
  0x13   : > { %2370 = vmatpush3.bf16.msra.mxu0 %v2634_v6  ;;  %v2643_v15 = vld [vmem:[%s3379_s1 + $0xa0] sm:$0xff]   ;;  %v2647_v19 = vld [vmem:[%s3379_s1 + $0x98] sm:$0xff]   ;;  %v2651_v23 = vld [vmem:[%s3379_s1 + $0x90] sm:$0xff]  }
  0x14   : > { %2392 = vmatpush3.bf16.msra.mxu1 %v2635_v7  ;;  %2371 = vmatprep.subr.bf16.mxu0 %v2636_v8  ;;  %v2652_v24 = vld [vmem:[%s3379_s1 + $0x48] sm:$0xff]   ;;  %v2656_v28 = vld [vmem:[%s3379_s1 + $0x40] sm:$0xff]   ;;  %v2666_v36 = vld [vmem:[%s3379_s1 + $0x178] sm:$0xff]   ;;  %v2822_v7 = vmov 0.0  }
  0x15   : > { %2393 = vmatprep.subr.bf16.mxu1 %v2637_v9  ;;  %v2653_v25 = vld [vmem:[%s3379_s1 + $0xc8] sm:$0xff]   ;;  %v2657_v29 = vld [vmem:[%s3379_s1 + $0xc0] sm:$0xff]   ;;  %v2667_v37 = vld [vmem:[%s3379_s1 + $0x1f8] sm:$0xff]  }
  0x16   : > { %v2654_v26 = vld [vmem:[%s3379_s1 + $0x8] sm:$0xff]   ;;  %v2658_v30 = vld [vmem:[%s3379_s1] sm:$0xff]   ;;  %v2668_v38 = vld [vmem:[%s3379_s1 + $0x138] sm:$0xff]  }
  0x17   : > { %2372 = vmatpush3.bf16.msra.mxu0 %v2638_v10  ;;  %v2655_v27 = vld [vmem:[%s3379_s1 + $0x88] sm:$0xff]   ;;  %v2659_v31 = vld [vmem:[%s3379_s1 + $0x80] sm:$0xff]   ;;  %v2669_v39 = vld [vmem:[%s3379_s1 + $0x1b8] sm:$0xff]  }
  0x18   : > { %2394 = vmatpush3.bf16.msra.mxu1 %v2639_v11  ;;  %2373 = vmatprep.subr.bf16.mxu0 %v2640_v12  ;;  %v2660_v32 = vld [vmem:[%s2973_s22] ss:$36 sps:$4 sm:$0xff]   ;;  %v2663_v34 = vld [vmem:[%s2973_s22 + $0x8] ss:$36 sps:$4 sm:$0xff]   ;;  %v2670_v40 = vld [vmem:[%s3379_s1 + $0x170] sm:$0xff]  }
  0x19   : > { %2395 = vmatprep.subr.bf16.mxu1 %v2641_v13  ;;  %v2662_v33 = vld [vmem:[%s2973_s22 + $0x4] ss:$36 sps:$4 sm:$0xff]   ;;  %v2665_v35 = vld [vmem:[%s2973_s22 + $0xc] ss:$36 sps:$4 sm:$0xff]   ;;  %v2682_v52 = vld [vmem:[%s3379_s1 + $0x158] sm:$0xff]  }
  0x1a   : > { %1017 = vmatprep.mubr.bf16.mxu0 %v2662_v33  ;;  %1058 = vmatprep.mubr.bf16.mxu1 %v2665_v35  ;;  %v2671_v41 = vld [vmem:[%s3379_s1 + $0x1f0] sm:$0xff]   ;;  %v2674_v44 = vld [vmem:[%s3379_s1 + $0x168] sm:$0xff]   ;;  %v2678_v48 = vld [vmem:[%s3379_s1 + $0x160] sm:$0xff]  }
  0x1b   : > { %2374 = vmatpush3.bf16.msra.mxu0 %v2642_v14  ;;  %v2672_v42 = vld [vmem:[%s3379_s1 + $0x130] sm:$0xff]   ;;  %v2675_v45 = vld [vmem:[%s3379_s1 + $0x1e8] sm:$0xff]   ;;  %v2679_v49 = vld [vmem:[%s3379_s1 + $0x1e0] sm:$0xff]  }
  0x1c   : > { %2396 = vmatpush3.bf16.msra.mxu1 %v2643_v15  ;;  %2375 = vmatprep.subr.bf16.mxu0 %v2644_v16  ;;  %v2673_v43 = vld [vmem:[%s3379_s1 + $0x1b0] sm:$0xff]   ;;  %v2676_v46 = vld [vmem:[%s3379_s1 + $0x128] sm:$0xff]   ;;  %v2680_v50 = vld [vmem:[%s3379_s1 + $0x120] sm:$0xff]  }
  0x1d   : > { %2397 = vmatprep.subr.bf16.mxu1 %v2645_v17  ;;  %v2677_v47 = vld [vmem:[%s3379_s1 + $0x1a8] sm:$0xff]   ;;  %v2681_v51 = vld [vmem:[%s3379_s1 + $0x1a0] sm:$0xff]   ;;  %v2683_v53 = vld [vmem:[%s3379_s1 + $0x1d8] sm:$0xff]  }
  0x1e   : > { %v2684_v54 = vld [vmem:[%s3379_s1 + $0x118] sm:$0xff]   ;;  %v2686_v56 = vld [vmem:[%s3379_s1 + $0x150] sm:$0xff]   ;;  %v2690_v60 = vld [vmem:[%s3379_s1 + $0x148] sm:$0xff]  }
  0x1f   : > { %2376 = vmatpush3.bf16.msra.mxu0 %v2646_v18  ;;  %v2685_v55 = vld [vmem:[%s3379_s1 + $0x198] sm:$0xff]   ;;  %v2687_v57 = vld [vmem:[%s3379_s1 + $0x1d0] sm:$0xff]   ;;  %v2691_v61 = vld [vmem:[%s3379_s1 + $0x1c8] sm:$0xff]  }
  0x20   : > { %2398 = vmatpush3.bf16.msra.mxu1 %v2647_v19  ;;  %2377 = vmatprep.subr.bf16.mxu0 %v2648_v20  ;;  %v2688_v58 = vld [vmem:[%s3379_s1 + $0x110] sm:$0xff]   ;;  %v2692_v62 = vld [vmem:[%s3379_s1 + $0x108] sm:$0xff]   ;;  %v2694_v0 = vld [vmem:[%s3379_s1 + $0x140] sm:$0xff]  }
  0x21   : > { %2399 = vmatprep.subr.bf16.mxu1 %v2649_v21  ;;  %v2689_v59 = vld [vmem:[%s3379_s1 + $0x190] sm:$0xff]   ;;  %v2693_v63 = vld [vmem:[%s3379_s1 + $0x188] sm:$0xff]   ;;  %v2695_v1 = vld [vmem:[%s3379_s1 + $0x1c0] sm:$0xff]  }
  0x22   : > { %v2696_v2 = vld [vmem:[%s3379_s1 + $0x100] sm:$0xff]   ;;  %v2698_v4 = vld [vmem:[%s2973_s22 + $0x10] ss:$36 sps:$4 sm:$0xff]   ;;  %v2701_v6 = vld [vmem:[%s2973_s22 + $0x18] ss:$36 sps:$4 sm:$0xff]  }
  0x23   : > { %2378 = vmatpush3.bf16.msra.mxu0 %v2650_v22  ;;  %v2697_v3 = vld [vmem:[%s3379_s1 + $0x180] sm:$0xff]   ;;  %v2700_v5 = vld [vmem:[%s2973_s22 + $0x14] ss:$36 sps:$4 sm:$0xff]   ;;  %v2710_v15 = vld [vmem:[%s3381_s3 + $0x68] sm:$0xff]  }
  0x24   : > { %2400 = vmatpush3.bf16.msra.mxu1 %v2651_v23  ;;  %2379 = vmatprep.subr.bf16.mxu0 %v2652_v24  ;;  %v2703_v8 = vld [vmem:[%s2973_s22 + $0x1c] ss:$36 sps:$4 sm:$0xff]   ;;  %v2707_v12 = vld [vmem:[%s3381_s3 + $0x70] sm:$0xff]   ;;  %v2711_v16 = vld [vmem:[%s3379_s1 + $0x228] sm:$0xff]  }
  0x25   : > { %2401 = vmatprep.subr.bf16.mxu1 %v2653_v25  ;;  %v2704_v9 = vld [vmem:[%s3381_s3 + $0x78] sm:$0xff]   ;;  %v2708_v13 = vld [vmem:[%s3379_s1 + $0x230] sm:$0xff]   ;;  %v2712_v17 = vld [vmem:[%s3381_s3 + $0x28] sm:$0xff]  }
  0x26   : > { %v2705_v10 = vld [vmem:[%s3379_s1 + $0x238] sm:$0xff]   ;;  %v2709_v14 = vld [vmem:[%s3381_s3 + $0x30] sm:$0xff]   ;;  %v2713_v18 = vld [vmem:[%s3381_s3 + $0x60] sm:$0xff]  }
  0x27   : > { %2380 = vmatpush3.bf16.msra.mxu0 %v2654_v26  ;;  %v2706_v11 = vld [vmem:[%s3381_s3 + $0x38] sm:$0xff]   ;;  %v2714_v19 = vld [vmem:[%s3379_s1 + $0x220] sm:$0xff]   ;;  %v2719_v24 = vld [vmem:[%s3381_s3 + $0x50] sm:$0xff]  }
  0x28   : > { %2402 = vmatpush3.bf16.msra.mxu1 %v2655_v27  ;;  %2381 = vmatprep.subr.bf16.mxu0 %v2656_v28  ;;  %v2715_v20 = vld [vmem:[%s3381_s3 + $0x20] sm:$0xff]   ;;  %v2716_v21 = vld [vmem:[%s3381_s3 + $0x58] sm:$0xff]   ;;  %v2720_v25 = vld [vmem:[%s3379_s1 + $0x210] sm:$0xff]  }
  0x29   : > { %2403 = vmatprep.subr.bf16.mxu1 %v2657_v29  ;;  %v2717_v22 = vld [vmem:[%s3379_s1 + $0x218] sm:$0xff]   ;;  %v2721_v26 = vld [vmem:[%s3381_s3 + $0x10] sm:$0xff]   ;;  %v2722_v27 = vld [vmem:[%s3381_s3 + $0x48] sm:$0xff]  }
  0x2a   : > { %v2718_v23 = vld [vmem:[%s3381_s3 + $0x18] sm:$0xff]   ;;  %v2723_v28 = vld [vmem:[%s3379_s1 + $0x208] sm:$0xff]   ;;  %v2727_v33 = vld [vmem:[%s3381_s3] sm:$0xff]  }
  0x2b   : > { %2382 = vmatpush3.bf16.msra.mxu0 %v2658_v30  ;;  %v2724_v29 = vld [vmem:[%s3381_s3 + $0x8] sm:$0xff]   ;;  %v2725_v30 = vld [vmem:[%s3381_s3 + $0x40] sm:$0xff]   ;;  %v2732_v35 = vld [vmem:[%s3381_s3 + $0xf8] sm:$0xff]  }
  0x2c   : > { %2404 = vmatpush3.bf16.msra.mxu1 %v2659_v31  ;;  %2411 = vmatprep.subr.bf16.mxu0 %v2666_v36  ;;  %v2731_v31 = vld [vmem:[%s3155_s13 + $0x4] ss:$36 sps:$4 sm:$0xff]  }
  0x2d   : > { %2433 = vmatprep.subr.bf16.mxu1 %v2667_v37  ;;  %v2729_v36 = vld [vmem:[%s3155_s13] ss:$36 sps:$4 sm:$0xff]   ;;  %v2733_v37 = vld [vmem:[%s3381_s3 + $0x178] sm:$0xff]  }
  0x2e   : > { %1018 = vmatmul.mubr.bf16.vlgmr.msra.gmra.mxu0 %v2660_v32  ;;  %v2726_v32 = vld [vmem:[%s3379_s1 + $0x200] sm:$0xff]  }
  0x2f   : > { %1059 = vmatmul.mubr.bf16.vlgmr.msra.gmra.mxu1 %v2663_v34  ;;  %2412 = vmatpush3.bf16.msra.mxu0 %v2668_v38  ;;  %v2728_v34 = vld [vmem:[%s2973_s22 + $0x20] ss:$36 sps:$4 sm:$0xff]   ;;  %v2734_v38 = vld [vmem:[%s3381_s3 + $0xb8] sm:$0xff]  }
  0x30   : > { %2434 = vmatpush3.bf16.msra.mxu1 %v2669_v39  ;;  %2413 = vmatprep.subr.bf16.mxu0 %v2670_v40  ;;  %v2735_v39 = vld [vmem:[%s3381_s3 + $0x138] sm:$0xff]   ;;  %v2736_v40 = vld [vmem:[%s3381_s3 + $0xf0] sm:$0xff]  }
  0x31   : > { %2435 = vmatprep.subr.bf16.mxu1 %v2671_v41  ;;  %1099 = vmatprep.mubr.bf16.mxu0 %v2700_v5  ;;  %v2737_v41 = vld [vmem:[%s3381_s3 + $0x170] sm:$0xff]   ;;  %v2764_v5 = vld [vmem:[%s3155_s13 + $0x8] ss:$36 sps:$4 sm:$0xff]  }
  0x32   : > { %1140 = vmatprep.mubr.bf16.mxu1 %v2703_v8  ;;  %v2767_v8 = vld [vmem:[%s3155_s13 + $0x10] ss:$36 sps:$4 sm:$0xff]  }
  0x33   : > { %2414 = vmatpush3.bf16.msra.mxu0 %v2672_v42  ;;  %v2738_v42 = vld [vmem:[%s3381_s3 + $0xb0] sm:$0xff]  }
  0x34   : > { %2436 = vmatpush3.bf16.msra.mxu1 %v2673_v43  ;;  %2415 = vmatprep.subr.bf16.mxu0 %v2674_v44  ;;  %v2739_v43 = vld [vmem:[%s3381_s3 + $0x130] sm:$0xff]   ;;  %v2740_v44 = vld [vmem:[%s3381_s3 + $0xe8] sm:$0xff]  }
  0x35   : > { %2437 = vmatprep.subr.bf16.mxu1 %v2675_v45  ;;  %v2741_v45 = vld [vmem:[%s3381_s3 + $0x168] sm:$0xff]  }
  0x37   : > { %2416 = vmatpush3.bf16.msra.mxu0 %v2676_v46  ;;  %v2742_v46 = vld [vmem:[%s3381_s3 + $0xa8] sm:$0xff]  }
  0x38   : > { %2438 = vmatpush3.bf16.msra.mxu1 %v2677_v47  ;;  %2417 = vmatprep.subr.bf16.mxu0 %v2678_v48  ;;  %v2743_v47 = vld [vmem:[%s3381_s3 + $0x128] sm:$0xff]   ;;  %v2744_v48 = vld [vmem:[%s3381_s3 + $0xe0] sm:$0xff]  }
  0x39   : > { %2439 = vmatprep.subr.bf16.mxu1 %v2679_v49  ;;  %v2745_v49 = vld [vmem:[%s3381_s3 + $0x160] sm:$0xff]  }
  0x3b   : > { %2418 = vmatpush3.bf16.msra.mxu0 %v2680_v50  ;;  %v2746_v50 = vld [vmem:[%s3381_s3 + $0xa0] sm:$0xff]  }
  0x3c   : > { %2440 = vmatpush3.bf16.msra.mxu1 %v2681_v51  ;;  %2419 = vmatprep.subr.bf16.mxu0 %v2682_v52  ;;  %v2747_v51 = vld [vmem:[%s3381_s3 + $0x120] sm:$0xff]   ;;  %v2748_v52 = vld [vmem:[%s3381_s3 + $0xd8] sm:$0xff]  }
  0x3d   : > { %2441 = vmatprep.subr.bf16.mxu1 %v2683_v53  ;;  %v2749_v53 = vld [vmem:[%s3381_s3 + $0x158] sm:$0xff]  }
  0x3f   : > { %2420 = vmatpush3.bf16.msra.mxu0 %v2684_v54  ;;  %v2750_v54 = vld [vmem:[%s3381_s3 + $0x98] sm:$0xff]  }
  0x40   : > { %2442 = vmatpush3.bf16.msra.mxu1 %v2685_v55  ;;  %2421 = vmatprep.subr.bf16.mxu0 %v2686_v56  ;;  %v2751_v55 = vld [vmem:[%s3381_s3 + $0x118] sm:$0xff]   ;;  %v2752_v56 = vld [vmem:[%s3381_s3 + $0xd0] sm:$0xff]  }
  0x41   : > { %2443 = vmatprep.subr.bf16.mxu1 %v2687_v57  ;;  %v2753_v57 = vld [vmem:[%s3381_s3 + $0x150] sm:$0xff]  }
  0x43   : > { %2422 = vmatpush3.bf16.msra.mxu0 %v2688_v58  ;;  %v2754_v58 = vld [vmem:[%s3381_s3 + $0x90] sm:$0xff]  }
  0x44   : > { %2444 = vmatpush3.bf16.msra.mxu1 %v2689_v59  ;;  %2423 = vmatprep.subr.bf16.mxu0 %v2690_v60  ;;  %v2755_v59 = vld [vmem:[%s3381_s3 + $0x110] sm:$0xff]   ;;  %v2756_v60 = vld [vmem:[%s3381_s3 + $0xc8] sm:$0xff]  }
  0x45   : > { %2445 = vmatprep.subr.bf16.mxu1 %v2691_v61  ;;  %v2757_v61 = vld [vmem:[%s3381_s3 + $0x148] sm:$0xff]  }
  0x47   : > { %2424 = vmatpush3.bf16.msra.mxu0 %v2692_v62  ;;  %v2758_v62 = vld [vmem:[%s3381_s3 + $0x88] sm:$0xff]  }
  0x48   : > { %2446 = vmatpush3.bf16.msra.mxu1 %v2693_v63  ;;  %2425 = vmatprep.subr.bf16.mxu0 %v2694_v0  ;;  %v2759_v63 = vld [vmem:[%s3381_s3 + $0x108] sm:$0xff]   ;;  %v2760_v0 = vld [vmem:[%s3381_s3 + $0xc0] sm:$0xff]  }
  0x49   : > { %2447 = vmatprep.subr.bf16.mxu1 %v2695_v1  ;;  %v2761_v1 = vld [vmem:[%s3381_s3 + $0x140] sm:$0xff]  }
  0x4b   : > { %2426 = vmatpush3.bf16.msra.mxu0 %v2696_v2  ;;  %v2762_v2 = vld [vmem:[%s3381_s3 + $0x80] sm:$0xff]  }
  0x4c   : > { %2448 = vmatpush3.bf16.msra.mxu1 %v2697_v3  ;;  %2561 = vmatprep.subr.bf16.mxu0 %v2822_v7  ;;  %v2766_v3 = vld [vmem:[%s3155_s13 + $0xc] ss:$36 sps:$4 sm:$0xff]  }
  0x4d   : > { %2464 = vmatprep.subr.bf16.mxu1 %v2704_v9  ;;  %v2770_v9 = vld [vmem:[%s3381_s3 + $0x1f8] sm:$0xff]  }
  0x4e   : > { %1100 = vmatmul.mubr.bf16.vlgmr.msra.gmra.mxu0 %v2698_v4  ;;  %v2763_v4 = vld [vmem:[%s3381_s3 + $0x100] sm:$0xff]  }
  0x4f   : > { %2577 = vmatprep.mubr.msk.bf16.mxu0 %vm2823_vm0, %v2822_v7  ;;  %1141 = vmatmul.mubr.bf16.vlgmr.msra.gmra.mxu1 %v2701_v6  ;;  %v2769_v6 = vld [vmem:[%s3155_s13 + $0x14] ss:$36 sps:$4 sm:$0xff]  }
  0x50   : > { %2562 = vmatpush3.bf16.msra.mxu0 %v2705_v10  ;;  %2465 = vmatpush3.bf16.msra.mxu1 %v2706_v11  ;;  %v2771_v10 = vld [vmem:[%s3381_s3 + $0x1b8] sm:$0xff]  }
  0x51   : > { %2563 = vmatprep.subr.bf16.mxu0 %v2822_v7  ;;  %2466 = vmatprep.subr.bf16.mxu1 %v2707_v12  ;;  %v2772_v11 = vld [vmem:[%s3381_s3 + $0x238] sm:$0xff]   ;;  %v2773_v12 = vld [vmem:[%s3381_s3 + $0x1f0] sm:$0xff]  }
  0x52   : > { %1860 = vmatprep.mubr.bf16.mxu1 %v2731_v31  ;;  %v2791_v31 = vld [vmem:[%s3381_s3 + $0x1c0] sm:$0xff]  }
  0x54   : > { %2564 = vmatpush3.bf16.msra.mxu0 %v2708_v13  ;;  %2467 = vmatpush3.bf16.msra.mxu1 %v2709_v14  ;;  %v2774_v13 = vld [vmem:[%s3381_s3 + $0x1b0] sm:$0xff]  }
  0x55   : > { %2565 = vmatprep.subr.bf16.mxu0 %v2822_v7  ;;  %2468 = vmatprep.subr.bf16.mxu1 %v2710_v15  ;;  %v2775_v14 = vld [vmem:[%s3381_s3 + $0x230] sm:$0xff]   ;;  %v2776_v15 = vld [vmem:[%s3381_s3 + $0x1e8] sm:$0xff]  }
  0x58   : > { %2566 = vmatpush3.bf16.msra.mxu0 %v2711_v16  ;;  %2469 = vmatpush3.bf16.msra.mxu1 %v2712_v17  ;;  %v2777_v16 = vld [vmem:[%s3381_s3 + $0x1a8] sm:$0xff]  }
  0x59   : > { %2567 = vmatprep.subr.bf16.mxu0 %v2822_v7  ;;  %2470 = vmatprep.subr.bf16.mxu1 %v2713_v18  ;;  %v2778_v17 = vld [vmem:[%s3381_s3 + $0x228] sm:$0xff]   ;;  %v2779_v18 = vld [vmem:[%s3381_s3 + $0x1e0] sm:$0xff]  }
  0x5c   : > { %2568 = vmatpush3.bf16.msra.mxu0 %v2714_v19  ;;  %2471 = vmatpush3.bf16.msra.mxu1 %v2715_v20  ;;  %v2780_v19 = vld [vmem:[%s3381_s3 + $0x1a0] sm:$0xff]  }
  0x5d   : > { %2569 = vmatprep.subr.bf16.mxu0 %v2822_v7  ;;  %2472 = vmatprep.subr.bf16.mxu1 %v2716_v21  ;;  %v2781_v20 = vld [vmem:[%s3381_s3 + $0x220] sm:$0xff]   ;;  %v2782_v21 = vld [vmem:[%s3381_s3 + $0x1d8] sm:$0xff]  }
  0x60   : > { %2570 = vmatpush3.bf16.msra.mxu0 %v2717_v22  ;;  %2473 = vmatpush3.bf16.msra.mxu1 %v2718_v23  ;;  %v2783_v22 = vld [vmem:[%s3381_s3 + $0x198] sm:$0xff]  }
  0x61   : > { %2571 = vmatprep.subr.bf16.mxu0 %v2822_v7  ;;  %2474 = vmatprep.subr.bf16.mxu1 %v2719_v24  ;;  %v2784_v23 = vld [vmem:[%s3381_s3 + $0x218] sm:$0xff]   ;;  %v2785_v24 = vld [vmem:[%s3381_s3 + $0x1d0] sm:$0xff]  }
  0x64   : > { %2572 = vmatpush3.bf16.msra.mxu0 %v2720_v25  ;;  %2475 = vmatpush3.bf16.msra.mxu1 %v2721_v26  ;;  %v2786_v25 = vld [vmem:[%s3381_s3 + $0x190] sm:$0xff]  }
  0x65   : > { %2573 = vmatprep.subr.bf16.mxu0 %v2822_v7  ;;  %2476 = vmatprep.subr.bf16.mxu1 %v2722_v27  ;;  %v2787_v26 = vld [vmem:[%s3381_s3 + $0x210] sm:$0xff]   ;;  %v2788_v27 = vld [vmem:[%s3381_s3 + $0x1c8] sm:$0xff]  }
  0x68   : > { %2574 = vmatpush3.bf16.msra.mxu0 %v2723_v28  ;;  %2477 = vmatpush3.bf16.msra.mxu1 %v2724_v29  ;;  %v2796_v28 = vld [vmem:[%s3155_s13 + $0x1c] ss:$36 sps:$4 sm:$0xff]   ;;  %v2789_v29 = vld [vmem:[%s3381_s3 + $0x188] sm:$0xff]  }
  0x69   : > { %2575 = vmatprep.subr.bf16.mxu0 %v2822_v7  ;;  %2478 = vmatprep.subr.bf16.mxu1 %v2725_v30  ;;  %v2790_v30 = vld [vmem:[%s3381_s3 + $0x208] sm:$0xff]  }
  0x6c   : > { %2576 = vmatpush3.bf16.msra.mxu0 %v2726_v32  ;;  %2479 = vmatpush3.bf16.msra.mxu1 %v2727_v33  ;;  %v2792_v32 = vld [vmem:[%s3381_s3 + $0x180] sm:$0xff]  }
  0x6d   : > { %2486 = vmatprep.subr.bf16.mxu0 %v2732_v35  ;;  %2508 = vmatprep.subr.bf16.mxu1 %v2733_v37  ;;  %v2793_v33 = vld [vmem:[%s3381_s3 + $0x200] sm:$0xff]  }
  0x6e   : > { %v2797_v35 = vld [vmem:[%s3155_s13 + $0x20] ss:$36 sps:$4 sm:$0xff]  }
  0x6f   : > { %2578 = vmatmul.mubr.bf16.vlgmr.msra.gmra.mxu0 %v2728_v34  ;;  %1861 = vmatmul.mubr.bf16.vlgmr.msra.gmra.mxu1 %v2729_v36  ;;  %v2794_v34 = vld [vmem:[%s3155_s13 + $0x18] ss:$36 sps:$4 sm:$0xff]  }
  0x70   : > { %2487 = vmatpush3.bf16.msra.mxu0 %v2734_v38  ;;  %2509 = vmatpush3.bf16.msra.mxu1 %v2735_v39 }
  0x71   : > { %2488 = vmatprep.subr.bf16.mxu0 %v2736_v40  ;;  %2510 = vmatprep.subr.bf16.mxu1 %v2737_v41 }
  0x72   : > { %1901 = vmatprep.mubr.bf16.mxu0 %v2766_v3  ;;  %1942 = vmatprep.mubr.bf16.mxu1 %v2769_v6 }
  0x74   : > { %2489 = vmatpush3.bf16.msra.mxu0 %v2738_v42  ;;  %2511 = vmatpush3.bf16.msra.mxu1 %v2739_v43 }
  0x75   : > { %2490 = vmatprep.subr.bf16.mxu0 %v2740_v44  ;;  %2512 = vmatprep.subr.bf16.mxu1 %v2741_v45 }
  0x78   : > { %2491 = vmatpush3.bf16.msra.mxu0 %v2742_v46  ;;  %2513 = vmatpush3.bf16.msra.mxu1 %v2743_v47 }
  0x79   : > { %2492 = vmatprep.subr.bf16.mxu0 %v2744_v48  ;;  %2514 = vmatprep.subr.bf16.mxu1 %v2745_v49 }
  0x7c   : > { %2493 = vmatpush3.bf16.msra.mxu0 %v2746_v50  ;;  %2515 = vmatpush3.bf16.msra.mxu1 %v2747_v51 }
  0x7d   : > { %2494 = vmatprep.subr.bf16.mxu0 %v2748_v52  ;;  %2516 = vmatprep.subr.bf16.mxu1 %v2749_v53 }
  0x80   : > { %2495 = vmatpush3.bf16.msra.mxu0 %v2750_v54  ;;  %2517 = vmatpush3.bf16.msra.mxu1 %v2751_v55 }
  0x81   : > { %2496 = vmatprep.subr.bf16.mxu0 %v2752_v56  ;;  %2518 = vmatprep.subr.bf16.mxu1 %v2753_v57 }
  0x84   : > { %2497 = vmatpush3.bf16.msra.mxu0 %v2754_v58  ;;  %2519 = vmatpush3.bf16.msra.mxu1 %v2755_v59 }
  0x85   : > { %2498 = vmatprep.subr.bf16.mxu0 %v2756_v60  ;;  %2520 = vmatprep.subr.bf16.mxu1 %v2757_v61 }
  0x88   : > { %2499 = vmatpush3.bf16.msra.mxu0 %v2758_v62  ;;  %2521 = vmatpush3.bf16.msra.mxu1 %v2759_v63 }
  0x89   : > { %2500 = vmatprep.subr.bf16.mxu0 %v2760_v0  ;;  %2522 = vmatprep.subr.bf16.mxu1 %v2761_v1 }
  0x8c   : > { %2501 = vmatpush3.bf16.msra.mxu0 %v2762_v2  ;;  %2523 = vmatpush3.bf16.msra.mxu1 %v2763_v4 }
  0x8d   : > { %2530 = vmatprep.subr.bf16.mxu0 %v2770_v9  ;;  %2581 = vmatprep.subr.bf16.mxu1 %v2822_v7 }
  0x8f   : > { %1902 = vmatmul.mubr.bf16.vlgmr.msra.gmra.mxu0 %v2764_v5  ;;  %1943 = vmatmul.mubr.bf16.vlgmr.msra.gmra.mxu1 %v2767_v8 }
  0x90   : > { %2531 = vmatpush3.bf16.msra.mxu0 %v2771_v10  ;;  %2582 = vmatpush3.bf16.msra.mxu1 %v2772_v11 }
  0x91   : > { %2532 = vmatprep.subr.bf16.mxu0 %v2773_v12  ;;  %2583 = vmatprep.subr.bf16.mxu1 %v2822_v7 }
  0x92   : > { %2597 = vmatprep.mubr.msk.bf16.mxu1 %vm2823_vm0, %v2822_v7  ;;  %1983 = vmatprep.mubr.bf16.mxu0 %v2796_v28 }
  0x94   : > { %2533 = vmatpush3.bf16.msra.mxu0 %v2774_v13  ;;  %2584 = vmatpush3.bf16.msra.mxu1 %v2775_v14 }
  0x95   : > { %2534 = vmatprep.subr.bf16.mxu0 %v2776_v15  ;;  %2585 = vmatprep.subr.bf16.mxu1 %v2822_v7 }
  0x98   : > { %2535 = vmatpush3.bf16.msra.mxu0 %v2777_v16  ;;  %2586 = vmatpush3.bf16.msra.mxu1 %v2778_v17 }
  0x99   : > { %2536 = vmatprep.subr.bf16.mxu0 %v2779_v18  ;;  %2587 = vmatprep.subr.bf16.mxu1 %v2822_v7 }
  0x9c   : > { %2537 = vmatpush3.bf16.msra.mxu0 %v2780_v19  ;;  %2588 = vmatpush3.bf16.msra.mxu1 %v2781_v20 }
  0x9d   : > { %2538 = vmatprep.subr.bf16.mxu0 %v2782_v21  ;;  %2589 = vmatprep.subr.bf16.mxu1 %v2822_v7 }
  0xa0   : > { %2539 = vmatpush3.bf16.msra.mxu0 %v2783_v22  ;;  %2590 = vmatpush3.bf16.msra.mxu1 %v2784_v23 }
  0xa1   : > { %2540 = vmatprep.subr.bf16.mxu0 %v2785_v24  ;;  %2591 = vmatprep.subr.bf16.mxu1 %v2822_v7 }
  0xa4   : > { %2541 = vmatpush3.bf16.msra.mxu0 %v2786_v25  ;;  %2592 = vmatpush3.bf16.msra.mxu1 %v2787_v26 }
  0xa5   : > { %2542 = vmatprep.subr.bf16.mxu0 %v2788_v27  ;;  %2593 = vmatprep.subr.bf16.mxu1 %v2822_v7 }
  0xa8   : > { %2543 = vmatpush3.bf16.msra.mxu0 %v2789_v29  ;;  %2594 = vmatpush3.bf16.msra.mxu1 %v2790_v30 }
  0xa9   : > { %2544 = vmatprep.subr.bf16.mxu0 %v2791_v31  ;;  %2595 = vmatprep.subr.bf16.mxu1 %v2822_v7 }
  0xac   : > { %2545 = vmatpush3.bf16.msra.mxu0 %v2792_v32  ;;  %2596 = vmatpush3.bf16.msra.mxu1 %v2793_v33 }
  0xaf   : > { %1984 = vmatmul.mubr.bf16.vlgmr.msra.gmra.mxu0 %v2794_v34  ;;  %2598 = vmatmul.mubr.bf16.vlgmr.msra.gmra.mxu1 %v2797_v35 }
  0xee   : > { %v2383_v36 = vpop.f32.mrf.mxu0 }
  0xef   : > { %v2405_v42 = vpop.f32.mrf.mxu1 }
  0xf0   : > { %v2384_v37 = vpop.f32.mrf.mxu0 }
  0xf1   : > { %v2385_v38 = vadd.f32 %v2384_v37, %v2383_v36  ;;  %v2406_v43 = vpop.f32.mrf.mxu1 }
  0xf2   : > { %v2386_v39 = vpop.f32.mrf.mxu0  ;;  %v2407_v45 = vadd.f32 %v2406_v43, %v2405_v42 }
  0xf3   : > { %v2408_v44 = vpop.f32.mrf.mxu1 }
  0xf4   : > { %v2387_v40 = vpop.f32.mrf.mxu0  ;;  %v1061_v7 = vadd.f32 %v2407_v45, %v2385_v38  ;;  %v2355_v45 = vld [vmem:[%s3382_s4] ss:$0 sm:$0xff] }
  0xf5   : > { %v2388_v41 = vadd.f32 %v2387_v40, %v2386_v39  ;;  %v2409_v46 = vpop.f32.mrf.mxu1 }
  0xf6   : > { %v2410_v49 = vadd.f32 %v2409_v46, %v2408_v44 }
  0xf8   : > { %v1064_v54 = vadd.f32 %v2410_v49, %v2388_v41 }
 0x10e   : > { %v2427_v47 = vpop.f32.mrf.mxu0 }
 0x10f   : > { %v2449_v57 = vpop.f32.mrf.mxu1 }
 0x110   : > { %v2428_v48 = vpop.f32.mrf.mxu0 }
 0x111   : > { %v2429_v50 = vadd.f32 %v2428_v48, %v2427_v47  ;;  %v2450_v58 = vpop.f32.mrf.mxu1 }
 0x112   : > { %v2430_v51 = vpop.f32.mrf.mxu0  ;;  %v2451_v60 = vadd.f32 %v2450_v58, %v2449_v57 }
 0x113   : > { %v1102_v52 = vadd.f32 %v2429_v50, %v1061_v7  ;;  %v2452_v59 = vpop.f32.mrf.mxu1 }
 0x114   : > { %v2431_v53 = vpop.f32.mrf.mxu0 }
 0x115   : > { %v2432_v55 = vadd.f32 %v2431_v53, %v2430_v51  ;;  %v2453_v61 = vpop.f32.mrf.mxu1  ;;  %v1143_v63 = vadd.f32 %v2451_v60, %v1102_v52 }
 0x116   : > { %v2454_v62 = vadd.f32 %v2453_v61, %v2452_v59 }
 0x117   : > { %v1105_v56 = vadd.f32 %v2432_v55, %v1064_v54 }
 0x119   : > { %v1146_v3 = vadd.f32 %v2454_v62, %v1105_v56 }
 0x12f   : > { %v1183_v0 = vpop.f32.mrf.mxu0  ;;  %v2480_v8 = vpop.f32.mrf.mxu1 }
 0x130   : > { %v1184_v1 = vadd.f32 %v1183_v0, %v1143_v63 }
 0x131   : > { %v2579_v2 = vpop.f32.mrf.mxu0  ;;  %v2481_v9 = vpop.f32.mrf.mxu1 }
 0x132   : > { %v2482_v20 = vadd.f32 %v2481_v9, %v2480_v8 }
 0x133   : > { %v1186_v4 = vpop.f32.mrf.mxu0  ;;  %v2483_v10 = vpop.f32.mrf.mxu1 }
 0x134   : > { %v1187_v5 = vadd.f32 %v1186_v4, %v1146_v3 }
 0x135   : > { %v2580_v6 = vpop.f32.mrf.mxu0  ;;  %v2484_v12 = vpop.f32.mrf.mxu1 }
 0x136   : > { %v2485_v26 = vadd.f32 %v2484_v12, %v2483_v10 }
 0x14f   : > { %v2502_v11 = vpop.f32.mrf.mxu0  ;;  %v2524_v13 = vpop.f32.mrf.mxu1 }
 0x151   : > { %v2503_v14 = vpop.f32.mrf.mxu0  ;;  %v2525_v15 = vpop.f32.mrf.mxu1 }
 0x152   : > { %v2504_v17 = vadd.f32 %v2503_v14, %v2502_v11  ;;  %v2526_v22 = vadd.f32 %v2525_v15, %v2524_v13 }
 0x153   : > { %v2505_v16 = vpop.f32.mrf.mxu0  ;;  %v2527_v18 = vpop.f32.mrf.mxu1 }
 0x154   : > { %v1904_v21 = vadd.f32 %v2504_v17, %v2482_v20 }
 0x155   : > { %v2506_v19 = vpop.f32.mrf.mxu0  ;;  %v2528_v24 = vpop.f32.mrf.mxu1 }
 0x156   : > { %v2507_v23 = vadd.f32 %v2506_v19, %v2505_v16  ;;  %v1945_v29 = vadd.f32 %v2526_v22, %v1904_v21  ;;  %v2529_v31 = vadd.f32 %v2528_v24, %v2527_v18 }
 0x158   : > { %v1907_v30 = vadd.f32 %v2507_v23, %v2485_v26 }
 0x15a   : > { %v1948_v38 = vadd.f32 %v2529_v31, %v1907_v30 }
 0x16f   : > { %v2546_v25 = vpop.f32.mrf.mxu0  ;;  %v2026_v27 = vpop.f32.mrf.mxu1 }
 0x171   : > { %v2547_v28 = vpop.f32.mrf.mxu0  ;;  %v2599_v33 = vpop.f32.mrf.mxu1 }
 0x172   : > { %v2548_v32 = vadd.f32 %v2547_v28, %v2546_v25 }
 0x173   : > { %v2549_v34 = vpop.f32.mrf.mxu0  ;;  %v2029_v36 = vpop.f32.mrf.mxu1 }
 0x174   : > { %v1986_v35 = vadd.f32 %v2548_v32, %v1945_v29 }
 0x175   : > { %v2550_v37 = vpop.f32.mrf.mxu0  ;;  %v2600_v41 = vpop.f32.mrf.mxu1 }
 0x176   : > { %v2027_v39 = vadd.f32 %v2026_v27, %v1986_v35  ;;  %v2551_v40 = vadd.f32 %v2550_v37, %v2549_v34 }
 0x178   : > { %v1989_v42 = vadd.f32 %v2551_v40, %v1948_v38  ;;  %v2033_v43 = vadd.f32 %v2027_v39, %v1184_v1 }
 0x17a   : > { %v2030_v44 = vadd.f32 %v2029_v36, %v1989_v42  ;;  %v2049_v47 = vadd.f32 %v2355_v45, %v2033_v43 }
 0x17c   : > { %v2034_v46 = vadd.f32 %v2030_v44, %v1187_v5 }
 0x17e   : > { %v2050_v48 = vadd.f32 %v2355_v45, %v2034_v46 }
 0x180   : > { %v2365_v7 = vpack.c.bf16 %v2050_v48, %v2049_v47 }
 0x182   : > { %2366 = vst [vmem:[%s342_s8] sm:$0xff] %v2365_v7  }
 0x183 PF: > { %s15_s20 = sadd.s32 1, %s2820_s20   ;;  %s3384_s18 = smov %s2816_s19 }
 0x184   : > { %p12_p5 = scmp.ge.s32.totalorder %s15_s20, 4   ;;  %s3385_s19 = smov %s3387_s21 }
 0x186   :  { %14 = sbr.rel (!%p12_p5) target bundleno = 2 (0x2), region = 87 }

// kernel: _lambda_.15
= control target key start
LH: loop header
LB: loop body
LE: loop exit
PB: predicated region body
PF: predicated region fallthrough
CT: control target
= control target key end

     0   :  { %s2115_s12 = smov 0   ;;  %s2117_s13 = smov 0   ;;  %s2460_s0 = inlined_call_operand.vmem [shape: bf16[128,1152], index: 0, kind: input, shape index: {}]   ;;  %s2461_s1 = inlined_call_operand.vmem [shape: bf16[1152,128], index: 1, kind: input, shape index: {}]   ;;  %s2462_s2 = inlined_call_operand.vmem [shape: f32[1,128], index: 2, kind: input, shape index: {}]   ;;  %s2463_s3 = inlined_call_operand.vmem [shape: f32[128,128], index: 3, kind: output, shape index: {}]  }
   0x1   :  { %s2119_s14 = smov 0  }
   0x2 LB: > { %s25_s15 = sadd.s32 1, %s2089_s13  ;;  %p1562_p0 = scmp.ge.s32.totalorder %s2093_s14, 1  ;;  %s2093_s14 = sphi %s2119_s14, %s13_s14   ;;  %s2089_s13 = sphi %s2117_s13, %s2481_s13   ;;  %s2085_s12 = sphi %s2115_s12, %s2480_s12  }
   0x3   : > { %p27_p1 = scmp.ge.s32.totalorder %s25_s15, 2  ;;  %p169_p2 = scmp.lt.s32.totalorder %s2093_s14, 3 }
   0x5   : > { %s2483_s15 = smov (%p27_p1, %s25_s15), 0  ;;  %p170_p3 = pnand %p1562_p0, %p169_p2 }
   0x7   : > { %173 = sbr.rel (%p170_p3) target bundleno = 350 (0x15e), region = 32 }
   0xc   : > { %v1915_v0 = vld [vmem:[%s2461_s1 + $0x78] sm:$0xff]   ;;  %v1919_v4 = vld [vmem:[%s2461_s1 + $0x70] sm:$0xff]   ;;  %v1923_v8 = vld [vmem:[%s2461_s1 + $0x68] sm:$0xff]   ;;  %s1563_s23 = sshll.u32 %s2085_s12, 3 }
   0xd   : > { %v1916_v1 = vld [vmem:[%s2461_s1 + $0xf8] sm:$0xff]   ;;  %1678 = vmatprep.subr.bf16.mxu0 %v1915_v0  ;;  %v1920_v5 = vld [vmem:[%s2461_s1 + $0xf0] sm:$0xff]   ;;  %v1924_v9 = vld [vmem:[%s2461_s1 + $0xe8] sm:$0xff]   ;;  %p205_p4 = scmp.lt.s32.totalorder %s1563_s23, 15 }
   0xe   : > { %v1917_v2 = vld [vmem:[%s2461_s1 + $0x38] sm:$0xff]   ;;  %1718 = vmatprep.subr.bf16.mxu1 %v1916_v1  ;;  %v1921_v6 = vld [vmem:[%s2461_s1 + $0x30] sm:$0xff]   ;;  %v1925_v10 = vld [vmem:[%s2461_s1 + $0x28] sm:$0xff]  }
   0xf   : > { %v1918_v3 = vld [vmem:[%s2461_s1 + $0xb8] sm:$0xff]   ;;  %1679 = vmatpush3.bf16.msra.mxu0 %v1917_v2  ;;  %v1922_v7 = vld [vmem:[%s2461_s1 + $0xb0] sm:$0xff]   ;;  %v1926_v11 = vld [vmem:[%s2461_s1 + $0xa8] sm:$0xff]   ;;  %s2485_s23 = smov (!%p205_p4, %s1563_s23), 15 }
  0x10   : > { %1719 = vmatpush3.bf16.msra.mxu1 %v1918_v3  ;;  %1680 = vmatprep.subr.bf16.mxu0 %v1919_v4  ;;  %v1927_v12 = vld [vmem:[%s2461_s1 + $0x60] sm:$0xff]   ;;  %v1931_v16 = vld [vmem:[%s2461_s1 + $0x58] sm:$0xff]   ;;  %v1935_v20 = vld [vmem:[%s2461_s1 + $0x50] sm:$0xff]   ;;  %s1890_s22 = smul.u32 36, %s2485_s23  ;;  %s1566_s4 = sshll.u32 %s2485_s23, 3 }
  0x11   : > { %1720 = vmatprep.subr.bf16.mxu1 %v1920_v5  ;;  %v1928_v13 = vld [vmem:[%s2461_s1 + $0xe0] sm:$0xff]   ;;  %v1932_v17 = vld [vmem:[%s2461_s1 + $0xd8] sm:$0xff]   ;;  %v1936_v21 = vld [vmem:[%s2461_s1 + $0xd0] sm:$0xff]   ;;  %s225_s7 = scalar_lea.vmem %s2463_s3, %s1566_s4 }
  0x12   : > { %v1929_v14 = vld [vmem:[%s2461_s1 + $0x20] sm:$0xff]   ;;  %v1933_v18 = vld [vmem:[%s2461_s1 + $0x18] sm:$0xff]   ;;  %v1937_v22 = vld [vmem:[%s2461_s1 + $0x10] sm:$0xff]   ;;  %s2232_s6 = scalar_lea.vmem %s2460_s0, %s1890_s22 }
  0x13   : > { %1681 = vmatpush3.bf16.msra.mxu0 %v1921_v6  ;;  %v1930_v15 = vld [vmem:[%s2461_s1 + $0xa0] sm:$0xff]   ;;  %v1934_v19 = vld [vmem:[%s2461_s1 + $0x98] sm:$0xff]   ;;  %v1938_v23 = vld [vmem:[%s2461_s1 + $0x90] sm:$0xff]  }
  0x14   : > { %1721 = vmatpush3.bf16.msra.mxu1 %v1922_v7  ;;  %1682 = vmatprep.subr.bf16.mxu0 %v1923_v8  ;;  %v1939_v24 = vld [vmem:[%s2461_s1 + $0x48] sm:$0xff]   ;;  %v1943_v28 = vld [vmem:[%s2461_s1 + $0x40] sm:$0xff]   ;;  %v1953_v36 = vld [vmem:[%s2461_s1 + $0x178] sm:$0xff]  }
  0x15   : > { %1722 = vmatprep.subr.bf16.mxu1 %v1924_v9  ;;  %v1940_v25 = vld [vmem:[%s2461_s1 + $0xc8] sm:$0xff]   ;;  %v1944_v29 = vld [vmem:[%s2461_s1 + $0xc0] sm:$0xff]   ;;  %v1954_v37 = vld [vmem:[%s2461_s1 + $0x1f8] sm:$0xff]  }
  0x16   : > { %v1941_v26 = vld [vmem:[%s2461_s1 + $0x8] sm:$0xff]   ;;  %v1945_v30 = vld [vmem:[%s2461_s1] sm:$0xff]   ;;  %v1955_v38 = vld [vmem:[%s2461_s1 + $0x138] sm:$0xff]  }
  0x17   : > { %1683 = vmatpush3.bf16.msra.mxu0 %v1925_v10  ;;  %v1942_v27 = vld [vmem:[%s2461_s1 + $0x88] sm:$0xff]   ;;  %v1946_v31 = vld [vmem:[%s2461_s1 + $0x80] sm:$0xff]   ;;  %v1956_v39 = vld [vmem:[%s2461_s1 + $0x1b8] sm:$0xff]  }
  0x18   : > { %1723 = vmatpush3.bf16.msra.mxu1 %v1926_v11  ;;  %1684 = vmatprep.subr.bf16.mxu0 %v1927_v12  ;;  %v1947_v32 = vld [vmem:[%s2232_s6] ss:$36 sps:$4 sm:$0xff]   ;;  %v1950_v34 = vld [vmem:[%s2232_s6 + $0x8] ss:$36 sps:$4 sm:$0xff]   ;;  %v1957_v40 = vld [vmem:[%s2461_s1 + $0x170] sm:$0xff]  }
  0x19   : > { %1724 = vmatprep.subr.bf16.mxu1 %v1928_v13  ;;  %v1949_v33 = vld [vmem:[%s2232_s6 + $0x4] ss:$36 sps:$4 sm:$0xff]   ;;  %v1952_v35 = vld [vmem:[%s2232_s6 + $0xc] ss:$36 sps:$4 sm:$0xff]   ;;  %v1963_v45 = vld [vmem:[%s2232_s6 + $0x54] ss:$36 sps:$4 sm:$0xff]  }
  0x1a   : > { %1080 = vmatprep.mubr.bf16.mxu0 %v1949_v33  ;;  %1145 = vmatprep.mubr.bf16.mxu1 %v1952_v35  ;;  %v1958_v41 = vld [vmem:[%s2461_s1 + $0x1f0] sm:$0xff]   ;;  %v1965_v46 = vld [vmem:[%s2232_s6 + $0x48] ss:$36 sps:$4 sm:$0xff]   ;;  %v1971_v52 = vld [vmem:[%s2461_s1 + $0x160] sm:$0xff]  }
  0x1b   : > { %1685 = vmatpush3.bf16.msra.mxu0 %v1929_v14  ;;  %v1959_v42 = vld [vmem:[%s2461_s1 + $0x130] sm:$0xff]   ;;  %v1967_v48 = vld [vmem:[%s2461_s1 + $0x168] sm:$0xff]   ;;  %v1972_v53 = vld [vmem:[%s2461_s1 + $0x1e0] sm:$0xff]  }
  0x1c   : > { %1725 = vmatpush3.bf16.msra.mxu1 %v1930_v15  ;;  %1686 = vmatprep.subr.bf16.mxu0 %v1931_v16  ;;  %v1960_v43 = vld [vmem:[%s2461_s1 + $0x1b0] sm:$0xff]   ;;  %v1968_v49 = vld [vmem:[%s2461_s1 + $0x1e8] sm:$0xff]   ;;  %v1973_v54 = vld [vmem:[%s2461_s1 + $0x120] sm:$0xff]  }
  0x1d   : > { %1726 = vmatprep.subr.bf16.mxu1 %v1932_v17  ;;  %v1961_v44 = vld [vmem:[%s2232_s6 + $0x4c] ss:$36 sps:$4 sm:$0xff]   ;;  %v1974_v55 = vld [vmem:[%s2461_s1 + $0x1a0] sm:$0xff]   ;;  %v1975_v56 = vld [vmem:[%s2232_s6 + $0x94] ss:$36 sps:$4 sm:$0xff]  }
  0x1e   : > { %v1966_v47 = vld [vmem:[%s2232_s6 + $0x50] ss:$36 sps:$4 sm:$0xff]   ;;  %v1969_v50 = vld [vmem:[%s2461_s1 + $0x128] sm:$0xff]   ;;  %v1977_v57 = vld [vmem:[%s2232_s6 + $0x9c] ss:$36 sps:$4 sm:$0xff]  }
  0x1f   : > { %1687 = vmatpush3.bf16.msra.mxu0 %v1933_v18  ;;  %v1970_v51 = vld [vmem:[%s2461_s1 + $0x1a8] sm:$0xff]   ;;  %v1979_v58 = vld [vmem:[%s2232_s6 + $0x90] ss:$36 sps:$4 sm:$0xff]   ;;  %v1980_v59 = vld [vmem:[%s2232_s6 + $0x98] ss:$36 sps:$4 sm:$0xff]  }
  0x20   : > { %1727 = vmatpush3.bf16.msra.mxu1 %v1934_v19  ;;  %1688 = vmatprep.subr.bf16.mxu0 %v1935_v20  ;;  %v1981_v60 = vld [vmem:[%s2461_s1 + $0x158] sm:$0xff]   ;;  %v1985_v0 = vld [vmem:[%s2461_s1 + $0x150] sm:$0xff]   ;;  %v1991_v5 = vld [vmem:[%s2232_s6 + $0xe4] ss:$36 sps:$4 sm:$0xff]  }
  0x21   : > { %1728 = vmatprep.subr.bf16.mxu1 %v1936_v21  ;;  %v1982_v61 = vld [vmem:[%s2461_s1 + $0x1d8] sm:$0xff]   ;;  %v1986_v1 = vld [vmem:[%s2461_s1 + $0x1d0] sm:$0xff]   ;;  %v1994_v7 = vld [vmem:[%s2232_s6 + $0xe0] ss:$36 sps:$4 sm:$0xff]  }
  0x22   : > { %v1983_v62 = vld [vmem:[%s2461_s1 + $0x118] sm:$0xff]   ;;  %v1987_v2 = vld [vmem:[%s2461_s1 + $0x110] sm:$0xff]   ;;  %v1995_v8 = vld [vmem:[%s2461_s1 + $0x148] sm:$0xff]  }
  0x23   : > { %1689 = vmatpush3.bf16.msra.mxu0 %v1937_v22  ;;  %v1984_v63 = vld [vmem:[%s2461_s1 + $0x198] sm:$0xff]   ;;  %v1988_v3 = vld [vmem:[%s2461_s1 + $0x190] sm:$0xff]   ;;  %v1996_v9 = vld [vmem:[%s2461_s1 + $0x1c8] sm:$0xff]  }
  0x24   : > { %1729 = vmatpush3.bf16.msra.mxu1 %v1938_v23  ;;  %1690 = vmatprep.subr.bf16.mxu0 %v1939_v24  ;;  %v1989_v4 = vld [vmem:[%s2232_s6 + $0xdc] ss:$36 sps:$4 sm:$0xff]   ;;  %v1997_v10 = vld [vmem:[%s2461_s1 + $0x108] sm:$0xff]   ;;  %v2003_v16 = vld [vmem:[%s2232_s6 + $0x10] ss:$36 sps:$4 sm:$0xff]  }
  0x25   : > { %1730 = vmatprep.subr.bf16.mxu1 %v1940_v25  ;;  %v1993_v6 = vld [vmem:[%s2232_s6 + $0xd8] ss:$36 sps:$4 sm:$0xff]   ;;  %v1998_v11 = vld [vmem:[%s2461_s1 + $0x188] sm:$0xff]   ;;  %v1999_v12 = vld [vmem:[%s2461_s1 + $0x140] sm:$0xff]  }
  0x26   : > { %v2000_v13 = vld [vmem:[%s2461_s1 + $0x1c0] sm:$0xff]   ;;  %v2005_v17 = vld [vmem:[%s2232_s6 + $0x14] ss:$36 sps:$4 sm:$0xff]   ;;  %v2027_v33 = vld [vmem:[%s2232_s6 + $0xec] ss:$36 sps:$4 sm:$0xff]  }
  0x27   : > { %1691 = vmatpush3.bf16.msra.mxu0 %v1941_v26  ;;  %v2001_v14 = vld [vmem:[%s2461_s1 + $0x100] sm:$0xff]   ;;  %v2006_v18 = vld [vmem:[%s2232_s6 + $0x18] ss:$36 sps:$4 sm:$0xff]   ;;  %v2010_v21 = vld [vmem:[%s2461_s1 + $0x230] sm:$0xff]  }
  0x28   : > { %1731 = vmatpush3.bf16.msra.mxu1 %v1942_v27  ;;  %1692 = vmatprep.subr.bf16.mxu0 %v1943_v28  ;;  %v2002_v15 = vld [vmem:[%s2461_s1 + $0x180] sm:$0xff]   ;;  %v2009_v20 = vld [vmem:[%s2461_s1 + $0x238] sm:$0xff]   ;;  %v2017_v26 = vld [vmem:[%s2461_s1 + $0x228] sm:$0xff]  }
  0x29   : > { %1732 = vmatprep.subr.bf16.mxu1 %v1944_v29  ;;  %v2008_v19 = vld [vmem:[%s2232_s6 + $0x1c] ss:$36 sps:$4 sm:$0xff]   ;;  %v2013_v23 = vld [vmem:[%s2232_s6 + $0x64] ss:$36 sps:$4 sm:$0xff]   ;;  %v2021_v28 = vld [vmem:[%s2232_s6 + $0xac] ss:$36 sps:$4 sm:$0xff]  }
  0x2a   : > { %v2011_v22 = vld [vmem:[%s2232_s6 + $0x5c] ss:$36 sps:$4 sm:$0xff]   ;;  %v2019_v27 = vld [vmem:[%s2232_s6 + $0xa4] ss:$36 sps:$4 sm:$0xff]   ;;  %v2026_v35 = vld [vmem:[%s2461_s1 + $0x210] sm:$0xff]  }
  0x2b   : > { %1693 = vmatpush3.bf16.msra.mxu0 %v1945_v30  ;;  %v2015_v24 = vld [vmem:[%s2232_s6 + $0x58] ss:$36 sps:$4 sm:$0xff]   ;;  %v2016_v25 = vld [vmem:[%s2232_s6 + $0x60] ss:$36 sps:$4 sm:$0xff]  }
  0x2c   : > { %1733 = vmatpush3.bf16.msra.mxu1 %v1946_v31  ;;  %1758 = vmatprep.subr.bf16.mxu0 %v1953_v36  ;;  %v2018_v29 = vld [vmem:[%s2461_s1 + $0x220] sm:$0xff]   ;;  %v2024_v31 = vld [vmem:[%s2232_s6 + $0xa8] ss:$36 sps:$4 sm:$0xff]  }
  0x2d   : > { %1798 = vmatprep.subr.bf16.mxu1 %v1954_v37  ;;  %v2023_v30 = vld [vmem:[%s2232_s6 + $0xa0] ss:$36 sps:$4 sm:$0xff]   ;;  %v2031_v36 = vld [vmem:[%s2232_s6 + $0xe8] ss:$36 sps:$4 sm:$0xff]  }
  0x2e   : > { %1081 = vmatmul.mubr.bf16.vlgmr.msra.gmra.mxu0 %v1947_v32  ;;  %v2025_v32 = vld [vmem:[%s2461_s1 + $0x218] sm:$0xff]   ;;  %v2033_v37 = vld [vmem:[%s2461_s1 + $0x208] sm:$0xff]  }
  0x2f   : > { %1146 = vmatmul.mubr.bf16.vlgmr.msra.gmra.mxu1 %v1950_v34  ;;  %1759 = vmatpush3.bf16.msra.mxu0 %v1955_v38  ;;  %v2029_v34 = vld [vmem:[%s2232_s6 + $0xf4] ss:$36 sps:$4 sm:$0xff]  }
  0x30   : > { %1799 = vmatpush3.bf16.msra.mxu1 %v1956_v39  ;;  %1760 = vmatprep.subr.bf16.mxu0 %v1957_v40  ;;  %v2032_v38 = vld [vmem:[%s2232_s6 + $0xf0] ss:$36 sps:$4 sm:$0xff]   ;;  %v2035_v39 = vld [vmem:[%s2232_s6 + $0x20] ss:$36 sps:$4 sm:$0xff]  }
  0x31   : > { %1800 = vmatprep.subr.bf16.mxu1 %v1958_v41  ;;  %1088 = vmatprep.mubr.bf16.mxu0 %v1961_v44  ;;  %v2036_v40 = vld [vmem:[%s2232_s6 + $0xb0] ss:$36 sps:$4 sm:$0xff]   ;;  %v2034_v41 = vld [vmem:[%s2461_s1 + $0x200] sm:$0xff]  }
  0x32   : > { %1153 = vmatprep.mubr.bf16.mxu1 %v1963_v45 }
  0x33   : > { %1761 = vmatpush3.bf16.msra.mxu0 %v1959_v42  ;;  %v2037_v42 = vld [vmem:[%s2232_s6 + $0x68] ss:$36 sps:$4 sm:$0xff]  }
  0x34   : > { %1801 = vmatpush3.bf16.msra.mxu1 %v1960_v43  ;;  %1762 = vmatprep.subr.bf16.mxu0 %v1967_v48  ;;  %v2038_v43 = vld [vmem:[%s2232_s6 + $0xf8] ss:$36 sps:$4 sm:$0xff]  }
  0x35   : > { %1802 = vmatprep.subr.bf16.mxu1 %v1968_v49 }
  0x36   : > { %1089 = vmatmul.mubr.bf16.gmra.mxu0 %v1965_v46 }
  0x37   : > { %1154 = vmatmul.mubr.bf16.gmra.mxu1 %v1966_v47  ;;  %1763 = vmatpush3.bf16.msra.mxu0 %v1969_v50 }
  0x38   : > { %1803 = vmatpush3.bf16.msra.mxu1 %v1970_v51  ;;  %1764 = vmatprep.subr.bf16.mxu0 %v1971_v52 }
  0x39   : > { %1804 = vmatprep.subr.bf16.mxu1 %v1972_v53  ;;  %1096 = vmatprep.mubr.bf16.mxu0 %v1975_v56 }
  0x3a   : > { %1161 = vmatprep.mubr.bf16.mxu1 %v1977_v57 }
  0x3b   : > { %1765 = vmatpush3.bf16.msra.mxu0 %v1973_v54 }
  0x3c   : > { %1805 = vmatpush3.bf16.msra.mxu1 %v1974_v55  ;;  %1766 = vmatprep.subr.bf16.mxu0 %v1981_v60 }
  0x3d   : > { %1806 = vmatprep.subr.bf16.mxu1 %v1982_v61 }
  0x3e   : > { %1097 = vmatmul.mubr.bf16.gmra.mxu0 %v1979_v58 }
  0x3f   : > { %1162 = vmatmul.mubr.bf16.gmra.mxu1 %v1980_v59  ;;  %1767 = vmatpush3.bf16.msra.mxu0 %v1983_v62 }
  0x40   : > { %1807 = vmatpush3.bf16.msra.mxu1 %v1984_v63  ;;  %1768 = vmatprep.subr.bf16.mxu0 %v1985_v0 }
  0x41   : > { %1808 = vmatprep.subr.bf16.mxu1 %v1986_v1  ;;  %1104 = vmatprep.mubr.bf16.mxu0 %v1989_v4 }
  0x42   : > { %1169 = vmatprep.mubr.bf16.mxu1 %v1991_v5 }
  0x43   : > { %1769 = vmatpush3.bf16.msra.mxu0 %v1987_v2 }
  0x44   : > { %1809 = vmatpush3.bf16.msra.mxu1 %v1988_v3  ;;  %1770 = vmatprep.subr.bf16.mxu0 %v1995_v8 }
  0x45   : > { %1810 = vmatprep.subr.bf16.mxu1 %v1996_v9 }
  0x46   : > { %1105 = vmatmul.mubr.bf16.gmra.mxu0 %v1993_v6 }
  0x47   : > { %1170 = vmatmul.mubr.bf16.gmra.mxu1 %v1994_v7  ;;  %1771 = vmatpush3.bf16.msra.mxu0 %v1997_v10 }
  0x48   : > { %1811 = vmatpush3.bf16.msra.mxu1 %v1998_v11  ;;  %1772 = vmatprep.subr.bf16.mxu0 %v1999_v12 }
  0x49   : > { %1812 = vmatprep.subr.bf16.mxu1 %v2000_v13  ;;  %1210 = vmatprep.mubr.bf16.mxu0 %v2005_v17 }
  0x4a   : > { %1275 = vmatprep.mubr.bf16.mxu1 %v2008_v19 }
  0x4b   : > { %1773 = vmatpush3.bf16.msra.mxu0 %v2001_v14 }
  0x4c   : > { %1813 = vmatpush3.bf16.msra.mxu1 %v2002_v15  ;;  %1850 = vmatprep.subr.bf16.mxu0 %v2009_v20 }
  0x4d   : > { %1874 = vmatprep.subr.bf16.mxu1 %v2009_v20 }
  0x4e   : > { %1211 = vmatmul.mubr.bf16.vlgmr.msra.gmra.mxu0 %v2003_v16 }
  0x4f   : > { %1276 = vmatmul.mubr.bf16.vlgmr.msra.gmra.mxu1 %v2006_v18  ;;  %1851 = vmatpush3.bf16.msra.mxu0 %v2009_v20 }
  0x50   : > { %1882 = vmatpush3.bf16.msra.mxu1 %v2009_v20  ;;  %1852 = vmatprep.subr.bf16.mxu0 %v2010_v21 }
  0x51   : > { %1875 = vmatprep.subr.bf16.mxu1 %v2010_v21  ;;  %1218 = vmatprep.mubr.bf16.mxu0 %v2011_v22 }
  0x52   : > { %1283 = vmatprep.mubr.bf16.mxu1 %v2013_v23 }
  0x53   : > { %1853 = vmatpush3.bf16.msra.mxu0 %v2010_v21 }
  0x54   : > { %1883 = vmatpush3.bf16.msra.mxu1 %v2010_v21  ;;  %1854 = vmatprep.subr.bf16.mxu0 %v2017_v26 }
  0x55   : > { %1876 = vmatprep.subr.bf16.mxu1 %v2017_v26 }
  0x56   : > { %1219 = vmatmul.mubr.bf16.gmra.mxu0 %v2015_v24 }
  0x57   : > { %1284 = vmatmul.mubr.bf16.gmra.mxu1 %v2016_v25  ;;  %1226 = vmatprep.mubr.bf16.mxu0 %v2019_v27 }
  0x58   : > { %1855 = vmatpush3.bf16.msra.mxu0 %v2017_v26  ;;  %1291 = vmatprep.mubr.bf16.mxu1 %v2021_v28 }
  0x59   : > { %1884 = vmatpush3.bf16.msra.mxu1 %v2017_v26  ;;  %1856 = vmatprep.subr.bf16.mxu0 %v2018_v29 }
  0x5a   : > { %1877 = vmatprep.subr.bf16.mxu1 %v2018_v29 }
  0x5c   : > { %1857 = vmatpush3.bf16.msra.mxu0 %v2018_v29 }
  0x5d   : > { %1885 = vmatpush3.bf16.msra.mxu1 %v2018_v29  ;;  %1858 = vmatprep.subr.bf16.mxu0 %v2025_v32 }
  0x5e   : > { %1227 = vmatmul.mubr.bf16.gmra.mxu0 %v2023_v30  ;;  %1878 = vmatprep.subr.bf16.mxu1 %v2025_v32 }
  0x5f   : > { %1292 = vmatmul.mubr.bf16.gmra.mxu1 %v2024_v31  ;;  %1234 = vmatprep.mubr.bf16.mxu0 %v2027_v33 }
  0x60   : > { %1859 = vmatpush3.bf16.msra.mxu0 %v2025_v32  ;;  %1299 = vmatprep.mubr.bf16.mxu1 %v2029_v34 }
  0x61   : > { %1886 = vmatpush3.bf16.msra.mxu1 %v2025_v32  ;;  %1860 = vmatprep.subr.bf16.mxu0 %v2026_v35 }
  0x62   : > { %1879 = vmatprep.subr.bf16.mxu1 %v2026_v35 }
  0x64   : > { %1861 = vmatpush3.bf16.msra.mxu0 %v2026_v35 }
  0x65   : > { %1887 = vmatpush3.bf16.msra.mxu1 %v2026_v35  ;;  %1862 = vmatprep.subr.bf16.mxu0 %v2033_v37 }
  0x66   : > { %1235 = vmatmul.mubr.bf16.gmra.mxu0 %v2031_v36  ;;  %1880 = vmatprep.subr.bf16.mxu1 %v2033_v37 }
  0x67   : > { %1300 = vmatmul.mubr.bf16.gmra.mxu1 %v2032_v38  ;;  %1866 = vmatprep.mubr.bf16.mxu0 %v2035_v39 }
  0x68   : > { %1863 = vmatpush3.bf16.msra.mxu0 %v2033_v37  ;;  %1870 = vmatprep.mubr.bf16.mxu1 %v2036_v40 }
  0x69   : > { %1888 = vmatpush3.bf16.msra.mxu1 %v2033_v37  ;;  %1864 = vmatprep.subr.bf16.mxu0 %v2034_v41 }
  0x6a   : > { %1881 = vmatprep.subr.bf16.mxu1 %v2034_v41 }
  0x6c   : > { %1865 = vmatpush3.bf16.msra.mxu0 %v2034_v41 }
  0x6d   : > { %1889 = vmatpush3.bf16.msra.mxu1 %v2034_v41 }
  0x6f   : > { %1867 = vmatmul.mubr.bf16.vlgmr.msra.gmra.mxu0 %v2037_v42 }
  0x70   : > { %1871 = vmatmul.mubr.bf16.vlgmr.msra.gmra.mxu1 %v2038_v43 }
  0xee   : > { %v1694_v44 = vpop.f32.mrf.mxu0 }
  0xef   : > { %v1734_v45 = vpop.f32.mrf.mxu1 }
  0xf0   : > { %v1695_v46 = vpop.f32.mrf.mxu0 }
  0xf1   : > { %v1735_v47 = vpop.f32.mrf.mxu1  ;;  %v1696_v33 = vadd.f32 %v1695_v46, %v1694_v44 }
  0xf2   : > { %v2396_v48 = vpop.f32.mrf.mxu0  ;;  %v1736_v34 = vadd.f32 %v1735_v47, %v1734_v45 }
  0xf3   : > { %v2398_v49 = vpop.f32.mrf.mxu1 }
  0xf4   : > { %v2400_v50 = vpop.f32.mrf.mxu0 }
  0xf5   : > { %v2402_v51 = vpop.f32.mrf.mxu1 }
  0xf6   : > { %v1700_v52 = vpop.f32.mrf.mxu0 }
  0xf7   : > { %v1740_v53 = vpop.f32.mrf.mxu1 }
  0xf8   : > { %v1701_v54 = vpop.f32.mrf.mxu0 }
  0xf9   : > { %v1741_v55 = vpop.f32.mrf.mxu1  ;;  %v1702_v37 = vadd.f32 %v1701_v54, %v1700_v52  ;;  %v1739_v54 = vadd.f32 %v2402_v51, %v2398_v49 }
  0xfa   : > { %v1703_v56 = vpop.f32.mrf.mxu0  ;;  %v1742_v38 = vadd.f32 %v1741_v55, %v1740_v53  ;;  %v1699_v53 = vadd.f32 %v2400_v50, %v2396_v48 }
  0xfb   : > { %v1743_v57 = vpop.f32.mrf.mxu1 }
  0xfc   : > { %v1704_v58 = vpop.f32.mrf.mxu0  ;;  %v1156_v46 = vadd.f32 %v1742_v38, %v1702_v37 }
  0xfd   : > { %v1744_v59 = vpop.f32.mrf.mxu1  ;;  %v1705_v41 = vadd.f32 %v1704_v58, %v1703_v56 }
  0xfe   : > { %v1706_v60 = vpop.f32.mrf.mxu0  ;;  %v1745_v42 = vadd.f32 %v1744_v59, %v1743_v57 }
  0xff   : > { %v1746_v61 = vpop.f32.mrf.mxu1 }
 0x100   : > { %v1707_v62 = vpop.f32.mrf.mxu0  ;;  %v1159_v55 = vadd.f32 %v1745_v42, %v1705_v41 }
 0x101   : > { %v1747_v63 = vpop.f32.mrf.mxu1 }
 0x102   : > { %v2404_v0 = vpop.f32.mrf.mxu0 }
 0x103   : > { %v2406_v1 = vpop.f32.mrf.mxu1 }
 0x104   : > { %v2408_v2 = vpop.f32.mrf.mxu0 }
 0x105   : > { %v2410_v3 = vpop.f32.mrf.mxu1 }
 0x106   : > { %2464 = vst [vmem:[#allocation3_spill] sm:$0xff] %v2410_v3  ;;  %v1712_v4 = vpop.f32.mrf.mxu0 }
 0x107   : > { %v1752_v5 = vpop.f32.mrf.mxu1 }
 0x108   : > { %v1713_v6 = vpop.f32.mrf.mxu0 }
 0x109   : > { %v1753_v7 = vpop.f32.mrf.mxu1  ;;  %v1714_v39 = vadd.f32 %v1713_v6, %v1712_v4 }
 0x10a   : > { %v1715_v8 = vpop.f32.mrf.mxu0  ;;  %v1754_v40 = vadd.f32 %v1753_v7, %v1752_v5 }
 0x10b   : > { %v1755_v9 = vpop.f32.mrf.mxu1 }
 0x10c   : > { %v1716_v10 = vpop.f32.mrf.mxu0  ;;  %v1172_v47 = vadd.f32 %v1754_v40, %v1714_v39 }
 0x10d   : > { %v1756_v11 = vpop.f32.mrf.mxu1  ;;  %v2472_v4 = vld [vmem:[#allocation3_spill] sm:$0xff] }
 0x10e   : > { %v1774_v12 = vpop.f32.mrf.mxu0  ;;  %v1757_v3 = vadd.f32 %v1756_v11, %v1755_v9  ;;  %v1751_v5 = vadd.f32 %v2472_v4, %v2406_v1 }
 0x10f   : > { %v2412_v13 = vpop.f32.mrf.mxu1 }
 0x110   : > { %2465 = vst [vmem:[#allocation4_spill] sm:$0xff] %v2412_v13  ;;  %v1775_v14 = vpop.f32.mrf.mxu0  ;;  %v1717_v13 = vadd.f32 %v1716_v10, %v1715_v8  ;;  %v1151_v10 = vadd.f32 %v1739_v54, %v1699_v53 }
 0x111   : > { %v2414_v15 = vpop.f32.mrf.mxu1 }
 0x112   : > { %2466 = vst [vmem:[#allocation5_spill] sm:$0xff] %v2414_v15  ;;  %v1777_v16 = vpop.f32.mrf.mxu0  ;;  %v1148_v15 = vadd.f32 %v1736_v34, %v1696_v33  ;;  %v1175_v6 = vadd.f32 %v1757_v3, %v1717_v13 }
 0x113   : > { %v2416_v17 = vpop.f32.mrf.mxu1 }
 0x114   : > { %2467 = vst [vmem:[#allocation6_spill] sm:$0xff] %v2416_v17  ;;  %v1778_v18 = vpop.f32.mrf.mxu0  ;;  %v1708_v17 = vadd.f32 %v1707_v62, %v1706_v60 }
 0x115   : > { %v2418_v19 = vpop.f32.mrf.mxu1  ;;  %v1779_v49 = vadd.f32 %v1778_v18, %v1777_v16 }
 0x116   : > { %2468 = vst [vmem:[#allocation7_spill] sm:$0xff] %v2418_v19  ;;  %v1780_v20 = vpop.f32.mrf.mxu0 }
 0x117   : > { %v1820_v21 = vpop.f32.mrf.mxu1  ;;  %v1216_v16 = vadd.f32 %v1779_v49, %v1151_v10 }
 0x118   : > { %v1781_v22 = vpop.f32.mrf.mxu0 }
 0x119   : > { %v1821_v23 = vpop.f32.mrf.mxu1 }
 0x11a   : > { %v1783_v24 = vpop.f32.mrf.mxu0  ;;  %v1822_v51 = vadd.f32 %v1821_v23, %v1820_v21 }
 0x11b   : > { %v2420_v25 = vpop.f32.mrf.mxu1 }
 0x11c   : > { %2469 = vst [vmem:[#allocation8_spill] sm:$0xff] %v2420_v25  ;;  %v1784_v26 = vpop.f32.mrf.mxu0  ;;  %v1782_v25 = vadd.f32 %v1781_v22, %v1780_v20  ;;  %v2474_v20 = vld [vmem:[#allocation5_spill] sm:$0xff] }
 0x11d   : > { %v2422_v27 = vpop.f32.mrf.mxu1 }
 0x11e   : > { %2470 = vst [vmem:[#allocation9_spill] sm:$0xff] %v2422_v27  ;;  %v1786_v28 = vpop.f32.mrf.mxu0  ;;  %v1748_v27 = vadd.f32 %v1747_v63, %v1746_v61  ;;  %v1221_v60 = vadd.f32 %v1782_v25, %v1156_v46  ;;  %v1785_v61 = vadd.f32 %v1784_v26, %v1783_v24  ;;  %v1711_v63 = vadd.f32 %v2408_v2, %v2404_v0 }
 0x11f   : > { %v1826_v29 = vpop.f32.mrf.mxu1 }
 0x120   : > { %v1787_v30 = vpop.f32.mrf.mxu0  ;;  %v1164_v59 = vadd.f32 %v1748_v27, %v1708_v17  ;;  %v1224_v0 = vadd.f32 %v1785_v61, %v1159_v55  ;;  %v1286_v24 = vadd.f32 %v1822_v51, %v1221_v60  ;;  %v1167_v1 = vadd.f32 %v1751_v5, %v1711_v63 }
 0x121   : > { %v1827_v31 = vpop.f32.mrf.mxu1  ;;  %v1788_v56 = vadd.f32 %v1787_v30, %v1786_v28 }
 0x122   : > { %v1789_v32 = vpop.f32.mrf.mxu0  ;;  %v1828_v3 = vadd.f32 %v1827_v31, %v1826_v29  ;;  %v2478_v29 = vld [vmem:[#allocation7_spill] sm:$0xff] }
 0x123   : > { %v2424_v35 = vpop.f32.mrf.mxu1  ;;  %v1229_v11 = vadd.f32 %v1788_v56, %v1164_v59  ;;  %v2475_v18 = vld [vmem:[#allocation8_spill] sm:$0xff] }
 0x124   : > { %2471 = vst [vmem:[#allocation10_spill] sm:$0xff] %v2424_v35  ;;  %v1790_v36 = vpop.f32.mrf.mxu0  ;;  %v1776_v35 = vadd.f32 %v1775_v14, %v1774_v12 }
 0x125   : > { %v2426_v43 = vpop.f32.mrf.mxu1  ;;  %v1791_v12 = vadd.f32 %v1790_v36, %v1789_v32  ;;  %v2476_v21 = vld [vmem:[#allocation9_spill] sm:$0xff]  ;;  %v1294_v34 = vadd.f32 %v1828_v3, %v1229_v11  ;;  %v2477_v36 = vld [vmem:[#allocation6_spill] sm:$0xff] }
 0x126   : > { %v1792_v19 = vpop.f32.mrf.mxu0  ;;  %v1213_v8 = vadd.f32 %v1776_v35, %v1148_v15  ;;  %v1675_v15 = vld [vmem:[%s2462_s2] ss:$0 sm:$0xff]  ;;  %v1825_v23 = vadd.f32 %v2476_v21, %v2475_v18  ;;  %v1819_v31 = vadd.f32 %v2478_v29, %v2477_v36 }
 0x127   : > { %v1832_v44 = vpop.f32.mrf.mxu1  ;;  %v1232_v30 = vadd.f32 %v1791_v12, %v1167_v1 }
 0x128   : > { %v1793_v45 = vpop.f32.mrf.mxu0  ;;  %v1289_v40 = vadd.f32 %v1825_v23, %v1224_v0  ;;  %v1281_v55 = vadd.f32 %v1819_v31, %v1216_v16 }
 0x129   : > { %v1794_v52 = vadd.f32 %v1793_v45, %v1792_v19  ;;  %v1833_v57 = vpop.f32.mrf.mxu1  ;;  %v2473_v19 = vld [vmem:[#allocation4_spill] sm:$0xff] }
 0x12a   : > { %v1795_v58 = vpop.f32.mrf.mxu0  ;;  %v1834_v7 = vadd.f32 %v1833_v57, %v1832_v44  ;;  %v1816_v22 = vadd.f32 %v2474_v20, %v2473_v19 }
 0x12b   : > { %v1237_v62 = vadd.f32 %v1794_v52, %v1172_v47  ;;  %v1835_v48 = vpop.f32.mrf.mxu1  ;;  %v2479_v41 = vld [vmem:[#allocation10_spill] sm:$0xff] }
 0x12c   : > { %v1796_v50 = vpop.f32.mrf.mxu0  ;;  %v1278_v28 = vadd.f32 %v1816_v22, %v1213_v8  ;;  %v1831_v42 = vadd.f32 %v2426_v43, %v2479_v41 }
 0x12d   : > { %v1797_v9 = vadd.f32 %v1796_v50, %v1795_v58  ;;  %v1836_v14 = vpop.f32.mrf.mxu1  ;;  %v1302_v17 = vadd.f32 %v1834_v7, %v1237_v62 }
 0x12e   : > { %v1837_v13 = vadd.f32 %v1836_v14, %v1835_v48  ;;  %v1297_v60 = vadd.f32 %v1831_v42, %v1232_v30 }
 0x12f   : > { %v1240_v2 = vadd.f32 %v1797_v9, %v1175_v6  ;;  %v1868_v25 = vpop.f32.mrf.mxu0 }
 0x130   : > { %v1351_v26 = vadd.f32 %v1868_v25, %v1286_v24  ;;  %v1872_v27 = vpop.f32.mrf.mxu1 }
 0x131   : > { %v1367_v32 = vadd.f32 %v1872_v27, %v1302_v17  ;;  %v1342_v33 = vpop.f32.mrf.mxu0  ;;  %v1305_v35 = vadd.f32 %v1837_v13, %v1240_v2 }
 0x132   : > { %v1409_v37 = vadd.f32 %v1675_v15, %v1351_v26  ;;  %v1343_v38 = vadd.f32 %v1342_v33, %v1278_v28  ;;  %v1358_v39 = vpop.f32.mrf.mxu1 }
 0x133   : > { %v1413_v44 = vadd.f32 %v1675_v15, %v1367_v32  ;;  %v1359_v45 = vadd.f32 %v1358_v39, %v1294_v34  ;;  %v1869_v46 = vpop.f32.mrf.mxu0 }
 0x134   : > { %v1417_v47 = vsub.f32 0.0, %v1409_v37  ;;  %v1407_v52 = vadd.f32 %v1675_v15, %v1343_v38  ;;  %v1354_v53 = vadd.f32 %v1869_v46, %v1289_v40  ;;  %v1873_v54 = vpop.f32.mrf.mxu1 }
 0x135   : > { %v1421_v56 = vsub.f32 0.0, %v1413_v44  ;;  %v1411_v57 = vadd.f32 %v1675_v15, %v1359_v45  ;;  %v1370_v58 = vadd.f32 %v1873_v54, %v1305_v35  ;;  %v1345_v59 = vpop.f32.mrf.mxu0 }
 0x136   : > { %v1427_v61 = vmul.f32 1.442695, %v1417_v47  ;;  %v1415_v62 = vsub.f32 0.0, %v1407_v52  ;;  %v1410_v63 = vadd.f32 %v1675_v15, %v1354_v53  ;;  %v1346_v4 = vadd.f32 %v1345_v59, %v1281_v55  ;;  %v1361_v5 = vpop.f32.mrf.mxu1 }
 0x137   : > { %v1435_v6 = vmul.f32 1.442695, %v1421_v56  ;;  %v1419_v43 = vsub.f32 0.0, %v1411_v57  ;;  %v1414_v7 = vadd.f32 %v1675_v15, %v1370_v58  ;;  %v1362_v48 = vadd.f32 %v1361_v5, %v1297_v60 }
 0x138   : > { %2039 = vpow2.f32 %v1427_v61  ;;  %v1423_v50 = vmul.f32 1.442695, %v1415_v62  ;;  %v1418_v8 = vsub.f32 0.0, %v1410_v63  ;;  %v1408_v49 = vadd.f32 %v1675_v15, %v1346_v4 }
 0x139   : > { %2041 = vpow2.f32 %v1435_v6  ;;  %v1431_v51 = vmul.f32 1.442695, %v1419_v43  ;;  %v1422_v9 = vsub.f32 0.0, %v1414_v7  ;;  %v1412_v10 = vadd.f32 %v1675_v15, %v1362_v48 }
 0x13a   : > { %2043 = vpow2.f32 %v1423_v50  ;;  %v1429_v11 = vmul.f32 1.442695, %v1418_v8  ;;  %v1416_v12 = vsub.f32 0.0, %v1408_v49 }
 0x13b   : > { %2045 = vpow2.f32 %v1431_v51  ;;  %v1437_v14 = vmul.f32 1.442695, %v1422_v9  ;;  %v1420_v17 = vsub.f32 0.0, %v1412_v10 }
 0x13c   : > { %2047 = vpow2.f32 %v1429_v11  ;;  %v1425_v19 = vmul.f32 1.442695, %v1416_v12 }
 0x13d   : > { %2049 = vpow2.f32 %v1437_v14  ;;  %v1433_v20 = vmul.f32 1.442695, %v1420_v17 }
 0x13e   : > { %2051 = vpow2.f32 %v1425_v19 }
 0x13f   : > { %2053 = vpow2.f32 %v1433_v20 }
 0x145   : > { %v2040_v22 = vpop.eup %2039 }
 0x146   : > { %v2042_v0 = vpop.eup %2041  ;;  %v1441_v2 = vadd.f32 1.0, %v2040_v22 }
 0x147   : > { %v2044_v24 = vpop.eup %2043  ;;  %v1445_v1 = vadd.f32 1.0, %v2042_v0 }
 0x148   : > { %v2046_v3 = vpop.eup %2045  ;;  %2055 = vrcp.f32 %v1441_v2  ;;  %v1439_v13 = vadd.f32 1.0, %v2044_v24 }
 0x149   : > { %v2048_v25 = vpop.eup %2047  ;;  %2057 = vrcp.f32 %v1445_v1  ;;  %v1443_v15 = vadd.f32 1.0, %v2046_v3 }
 0x14a   : > { %v2050_v16 = vpop.eup %2049  ;;  %2059 = vrcp.f32 %v1439_v13  ;;  %v1442_v18 = vadd.f32 1.0, %v2048_v25 }
 0x14b   : > { %v2052_v21 = vpop.eup %2051  ;;  %2061 = vrcp.f32 %v1443_v15  ;;  %v1446_v23 = vadd.f32 1.0, %v2050_v16 }
 0x14c   : > { %v2054_v26 = vpop.eup %2053  ;;  %2063 = vrcp.f32 %v1442_v18  ;;  %v1440_v27 = vadd.f32 1.0, %v2052_v21 }
 0x14d   : > { %2065 = vrcp.f32 %v1446_v23  ;;  %v1444_v28 = vadd.f32 1.0, %v2054_v26 }
 0x14e   : > { %2067 = vrcp.f32 %v1440_v27 }
 0x14f   : > { %2069 = vrcp.f32 %v1444_v28 }
 0x155   : > { %v2056_v30 = vpop.eup %2055 }
 0x156   : > { %v2058_v32 = vpop.eup %2057  ;;  %1465 = vst [vmem:[%s225_s7 + $0x10] sm:$0xff] %v2056_v30 }
 0x157   : > { %v2060_v33 = vpop.eup %2059  ;;  %1469 = vst [vmem:[%s225_s7 + $0x30] sm:$0xff] %v2058_v32 }
 0x158   : > { %v2062_v34 = vpop.eup %2061  ;;  %1463 = vst [vmem:[%s225_s7] sm:$0xff] %v2060_v33 }
 0x159   : > { %v2064_v35 = vpop.eup %2063  ;;  %1467 = vst [vmem:[%s225_s7 + $0x20] sm:$0xff] %v2062_v34 }
 0x15a   : > { %v2066_v36 = vpop.eup %2065  ;;  %1466 = vst [vmem:[%s225_s7 + $0x18] sm:$0xff] %v2064_v35 }
 0x15b   : > { %v2068_v29 = vpop.eup %2067  ;;  %1470 = vst [vmem:[%s225_s7 + $0x38] sm:$0xff] %v2066_v36 }
 0x15c   : > { %v2070_v31 = vpop.eup %2069  ;;  %1464 = vst [vmem:[%s225_s7 + $0x8] sm:$0xff] %v2068_v29 }
 0x15d   : > { %1468 = vst [vmem:[%s225_s7 + $0x28] sm:$0xff] %v2070_v31 }
 0x15e PF: > { %s13_s14 = sadd.s32 1, %s2093_s14   ;;  %s2480_s12 = smov %s2089_s13 }
 0x15f   : > { %p10_p5 = scmp.ge.s32.totalorder %s13_s14, 4   ;;  %s2481_s13 = smov %s2483_s15 }
 0x161   :  { %12 = sbr.rel (!%p10_p5) target bundleno = 2 (0x2), region = 73 }

// kernel: _lambda_.13
= control target key start
LH: loop header
LB: loop body
LE: loop exit
PB: predicated region body
PF: predicated region fallthrough
CT: control target
= control target key end

     0   :  { %s2210_s18 = smov 0   ;;  %s2212_s19 = smov 0   ;;  %s2561_s0 = inlined_call_operand.vmem [shape: bf16[128,1152], index: 0, kind: input, shape index: {}]   ;;  %s2562_s1 = inlined_call_operand.vmem [shape: bf16[1152,128], index: 1, kind: input, shape index: {}]   ;;  %s2563_s2 = inlined_call_operand.vmem [shape: f32[1,128], index: 2, kind: input, shape index: {}]   ;;  %s2564_s3 = inlined_call_operand.vmem [shape: f32[1,128], index: 3, kind: input, shape index: {}]   ;;  %s2565_s4 = inlined_call_operand.vmem [shape: f32[1,128], index: 4, kind: input, shape index: {}]   ;;  %s2566_s5 = inlined_call_operand.vmem [shape: bf16[128,128], index: 5, kind: output, shape index: {}]  }
   0x1   :  { %s2214_s20 = smov 0  }
   0x2 LB: > { %s27_s21 = sadd.s32 1, %s2174_s19  ;;  %p1638_p0 = scmp.ge.s32.totalorder %s2178_s20, 1  ;;  %s2178_s20 = sphi %s2214_s20, %s15_s20   ;;  %s2174_s19 = sphi %s2212_s19, %s2584_s19   ;;  %s2170_s18 = sphi %s2210_s18, %s2583_s18  }
   0x3   : > { %p29_p1 = scmp.ge.s32.totalorder %s27_s21, 2  ;;  %p219_p2 = scmp.lt.s32.totalorder %s2178_s20, 3 }
   0x5   : > { %s2586_s21 = smov (%p29_p1, %s27_s21), 0  ;;  %p220_p3 = pnand %p1638_p0, %p219_p2 }
   0x7   : > { %223 = sbr.rel (%p220_p3) target bundleno = 324 (0x144), region = 40 }
   0xc   : > { %v2032_v0 = vld [vmem:[%s2562_s1 + $0x78] sm:$0xff]   ;;  %v2036_v4 = vld [vmem:[%s2562_s1 + $0x70] sm:$0xff]   ;;  %v2040_v8 = vld [vmem:[%s2562_s1 + $0x68] sm:$0xff]   ;;  %s1639_s6 = sshll.u32 %s2170_s18, 3 }
   0xd   : > { %v2033_v1 = vld [vmem:[%s2562_s1 + $0xf8] sm:$0xff]   ;;  %1795 = vmatprep.subr.bf16.mxu0 %v2032_v0  ;;  %v2037_v5 = vld [vmem:[%s2562_s1 + $0xf0] sm:$0xff]   ;;  %v2041_v9 = vld [vmem:[%s2562_s1 + $0xe8] sm:$0xff]   ;;  %p259_p4 = scmp.lt.s32.totalorder %s1639_s6, 15 }
   0xe   : > { %v2034_v2 = vld [vmem:[%s2562_s1 + $0x38] sm:$0xff]   ;;  %1835 = vmatprep.subr.bf16.mxu1 %v2033_v1  ;;  %v2038_v6 = vld [vmem:[%s2562_s1 + $0x30] sm:$0xff]   ;;  %v2042_v10 = vld [vmem:[%s2562_s1 + $0x28] sm:$0xff]  }
   0xf   : > { %v2035_v3 = vld [vmem:[%s2562_s1 + $0xb8] sm:$0xff]   ;;  %1796 = vmatpush3.bf16.msra.mxu0 %v2034_v2  ;;  %v2039_v7 = vld [vmem:[%s2562_s1 + $0xb0] sm:$0xff]   ;;  %v2043_v11 = vld [vmem:[%s2562_s1 + $0xa8] sm:$0xff]   ;;  %s2588_s6 = smov (!%p259_p4, %s1639_s6), 15 }
  0x10   : > { %1836 = vmatpush3.bf16.msra.mxu1 %v2035_v3  ;;  %1797 = vmatprep.subr.bf16.mxu0 %v2036_v4  ;;  %v2044_v12 = vld [vmem:[%s2562_s1 + $0x60] sm:$0xff]   ;;  %v2048_v16 = vld [vmem:[%s2562_s1 + $0x58] sm:$0xff]   ;;  %v2052_v20 = vld [vmem:[%s2562_s1 + $0x50] sm:$0xff]   ;;  %s2007_s8 = smul.u32 36, %s2588_s6 }
  0x11   : > { %1837 = vmatprep.subr.bf16.mxu1 %v2037_v5  ;;  %v2045_v13 = vld [vmem:[%s2562_s1 + $0xe0] sm:$0xff]   ;;  %v2049_v17 = vld [vmem:[%s2562_s1 + $0xd8] sm:$0xff]   ;;  %v2053_v21 = vld [vmem:[%s2562_s1 + $0xd0] sm:$0xff]  }
  0x12   : > { %v2046_v14 = vld [vmem:[%s2562_s1 + $0x20] sm:$0xff]   ;;  %v2050_v18 = vld [vmem:[%s2562_s1 + $0x18] sm:$0xff]   ;;  %v2054_v22 = vld [vmem:[%s2562_s1 + $0x10] sm:$0xff]   ;;  %s2327_s22 = scalar_lea.vmem %s2561_s0, %s2007_s8  ;;  %s1642_s8 = sshll.u32 %s2588_s6, 2 }
  0x13   : > { %1798 = vmatpush3.bf16.msra.mxu0 %v2038_v6  ;;  %v2047_v15 = vld [vmem:[%s2562_s1 + $0xa0] sm:$0xff]   ;;  %v2051_v19 = vld [vmem:[%s2562_s1 + $0x98] sm:$0xff]   ;;  %v2055_v23 = vld [vmem:[%s2562_s1 + $0x90] sm:$0xff]   ;;  %s279_s11 = scalar_lea.vmem %s2566_s5, %s1642_s8 }
  0x14   : > { %1838 = vmatpush3.bf16.msra.mxu1 %v2039_v7  ;;  %1799 = vmatprep.subr.bf16.mxu0 %v2040_v8  ;;  %v2056_v24 = vld [vmem:[%s2562_s1 + $0x48] sm:$0xff]   ;;  %v2060_v28 = vld [vmem:[%s2562_s1 + $0x40] sm:$0xff]   ;;  %v2070_v36 = vld [vmem:[%s2562_s1 + $0x178] sm:$0xff]  }
  0x15   : > { %1839 = vmatprep.subr.bf16.mxu1 %v2041_v9  ;;  %v2057_v25 = vld [vmem:[%s2562_s1 + $0xc8] sm:$0xff]   ;;  %v2061_v29 = vld [vmem:[%s2562_s1 + $0xc0] sm:$0xff]   ;;  %v2071_v37 = vld [vmem:[%s2562_s1 + $0x1f8] sm:$0xff]  }
  0x16   : > { %v2058_v26 = vld [vmem:[%s2562_s1 + $0x8] sm:$0xff]   ;;  %v2062_v30 = vld [vmem:[%s2562_s1] sm:$0xff]   ;;  %v2072_v38 = vld [vmem:[%s2562_s1 + $0x138] sm:$0xff]  }
  0x17   : > { %1800 = vmatpush3.bf16.msra.mxu0 %v2042_v10  ;;  %v2059_v27 = vld [vmem:[%s2562_s1 + $0x88] sm:$0xff]   ;;  %v2063_v31 = vld [vmem:[%s2562_s1 + $0x80] sm:$0xff]   ;;  %v2073_v39 = vld [vmem:[%s2562_s1 + $0x1b8] sm:$0xff]  }
  0x18   : > { %1840 = vmatpush3.bf16.msra.mxu1 %v2043_v11  ;;  %1801 = vmatprep.subr.bf16.mxu0 %v2044_v12  ;;  %v2064_v32 = vld [vmem:[%s2327_s22] ss:$36 sps:$4 sm:$0xff]   ;;  %v2067_v34 = vld [vmem:[%s2327_s22 + $0x8] ss:$36 sps:$4 sm:$0xff]   ;;  %v2074_v40 = vld [vmem:[%s2562_s1 + $0x170] sm:$0xff]  }
  0x19   : > { %1841 = vmatprep.subr.bf16.mxu1 %v2045_v13  ;;  %v2066_v33 = vld [vmem:[%s2327_s22 + $0x4] ss:$36 sps:$4 sm:$0xff]   ;;  %v2069_v35 = vld [vmem:[%s2327_s22 + $0xc] ss:$36 sps:$4 sm:$0xff]   ;;  %v2080_v45 = vld [vmem:[%s2327_s22 + $0x54] ss:$36 sps:$4 sm:$0xff]  }
  0x1a   : > { %1134 = vmatprep.mubr.bf16.mxu0 %v2066_v33  ;;  %1199 = vmatprep.mubr.bf16.mxu1 %v2069_v35  ;;  %v2075_v41 = vld [vmem:[%s2562_s1 + $0x1f0] sm:$0xff]   ;;  %v2082_v46 = vld [vmem:[%s2327_s22 + $0x48] ss:$36 sps:$4 sm:$0xff]   ;;  %v2088_v52 = vld [vmem:[%s2562_s1 + $0x160] sm:$0xff]  }
  0x1b   : > { %1802 = vmatpush3.bf16.msra.mxu0 %v2046_v14  ;;  %v2076_v42 = vld [vmem:[%s2562_s1 + $0x130] sm:$0xff]   ;;  %v2084_v48 = vld [vmem:[%s2562_s1 + $0x168] sm:$0xff]   ;;  %v2089_v53 = vld [vmem:[%s2562_s1 + $0x1e0] sm:$0xff]  }
  0x1c   : > { %1842 = vmatpush3.bf16.msra.mxu1 %v2047_v15  ;;  %1803 = vmatprep.subr.bf16.mxu0 %v2048_v16  ;;  %v2077_v43 = vld [vmem:[%s2562_s1 + $0x1b0] sm:$0xff]   ;;  %v2085_v49 = vld [vmem:[%s2562_s1 + $0x1e8] sm:$0xff]   ;;  %v2090_v54 = vld [vmem:[%s2562_s1 + $0x120] sm:$0xff]  }
  0x1d   : > { %1843 = vmatprep.subr.bf16.mxu1 %v2049_v17  ;;  %v2078_v44 = vld [vmem:[%s2327_s22 + $0x4c] ss:$36 sps:$4 sm:$0xff]   ;;  %v2091_v55 = vld [vmem:[%s2562_s1 + $0x1a0] sm:$0xff]   ;;  %v2092_v56 = vld [vmem:[%s2327_s22 + $0x94] ss:$36 sps:$4 sm:$0xff]  }
  0x1e   : > { %v2083_v47 = vld [vmem:[%s2327_s22 + $0x50] ss:$36 sps:$4 sm:$0xff]   ;;  %v2086_v50 = vld [vmem:[%s2562_s1 + $0x128] sm:$0xff]   ;;  %v2094_v57 = vld [vmem:[%s2327_s22 + $0x9c] ss:$36 sps:$4 sm:$0xff]  }
  0x1f   : > { %1804 = vmatpush3.bf16.msra.mxu0 %v2050_v18  ;;  %v2087_v51 = vld [vmem:[%s2562_s1 + $0x1a8] sm:$0xff]   ;;  %v2096_v58 = vld [vmem:[%s2327_s22 + $0x90] ss:$36 sps:$4 sm:$0xff]   ;;  %v2097_v59 = vld [vmem:[%s2327_s22 + $0x98] ss:$36 sps:$4 sm:$0xff]  }
  0x20   : > { %1844 = vmatpush3.bf16.msra.mxu1 %v2051_v19  ;;  %1805 = vmatprep.subr.bf16.mxu0 %v2052_v20  ;;  %v2098_v60 = vld [vmem:[%s2562_s1 + $0x158] sm:$0xff]   ;;  %v2102_v0 = vld [vmem:[%s2562_s1 + $0x150] sm:$0xff]   ;;  %v2108_v5 = vld [vmem:[%s2327_s22 + $0xe4] ss:$36 sps:$4 sm:$0xff]  }
  0x21   : > { %1845 = vmatprep.subr.bf16.mxu1 %v2053_v21  ;;  %v2099_v61 = vld [vmem:[%s2562_s1 + $0x1d8] sm:$0xff]   ;;  %v2103_v1 = vld [vmem:[%s2562_s1 + $0x1d0] sm:$0xff]   ;;  %v2111_v7 = vld [vmem:[%s2327_s22 + $0xe0] ss:$36 sps:$4 sm:$0xff]  }
  0x22   : > { %v2100_v62 = vld [vmem:[%s2562_s1 + $0x118] sm:$0xff]   ;;  %v2104_v2 = vld [vmem:[%s2562_s1 + $0x110] sm:$0xff]   ;;  %v2112_v8 = vld [vmem:[%s2562_s1 + $0x148] sm:$0xff]  }
  0x23   : > { %1806 = vmatpush3.bf16.msra.mxu0 %v2054_v22  ;;  %v2101_v63 = vld [vmem:[%s2562_s1 + $0x198] sm:$0xff]   ;;  %v2105_v3 = vld [vmem:[%s2562_s1 + $0x190] sm:$0xff]   ;;  %v2113_v9 = vld [vmem:[%s2562_s1 + $0x1c8] sm:$0xff]  }
  0x24   : > { %1846 = vmatpush3.bf16.msra.mxu1 %v2055_v23  ;;  %1807 = vmatprep.subr.bf16.mxu0 %v2056_v24  ;;  %v2106_v4 = vld [vmem:[%s2327_s22 + $0xdc] ss:$36 sps:$4 sm:$0xff]   ;;  %v2114_v10 = vld [vmem:[%s2562_s1 + $0x108] sm:$0xff]   ;;  %v2120_v16 = vld [vmem:[%s2327_s22 + $0x10] ss:$36 sps:$4 sm:$0xff]  }
  0x25   : > { %1847 = vmatprep.subr.bf16.mxu1 %v2057_v25  ;;  %v2110_v6 = vld [vmem:[%s2327_s22 + $0xd8] ss:$36 sps:$4 sm:$0xff]   ;;  %v2115_v11 = vld [vmem:[%s2562_s1 + $0x188] sm:$0xff]   ;;  %v2116_v12 = vld [vmem:[%s2562_s1 + $0x140] sm:$0xff]  }
  0x26   : > { %v2117_v13 = vld [vmem:[%s2562_s1 + $0x1c0] sm:$0xff]   ;;  %v2122_v17 = vld [vmem:[%s2327_s22 + $0x14] ss:$36 sps:$4 sm:$0xff]   ;;  %v2144_v33 = vld [vmem:[%s2327_s22 + $0xec] ss:$36 sps:$4 sm:$0xff]  }
  0x27   : > { %1808 = vmatpush3.bf16.msra.mxu0 %v2058_v26  ;;  %v2118_v14 = vld [vmem:[%s2562_s1 + $0x100] sm:$0xff]   ;;  %v2123_v18 = vld [vmem:[%s2327_s22 + $0x18] ss:$36 sps:$4 sm:$0xff]   ;;  %v2127_v21 = vld [vmem:[%s2562_s1 + $0x230] sm:$0xff]  }
  0x28   : > { %1848 = vmatpush3.bf16.msra.mxu1 %v2059_v27  ;;  %1809 = vmatprep.subr.bf16.mxu0 %v2060_v28  ;;  %v2119_v15 = vld [vmem:[%s2562_s1 + $0x180] sm:$0xff]   ;;  %v2126_v20 = vld [vmem:[%s2562_s1 + $0x238] sm:$0xff]   ;;  %v2134_v26 = vld [vmem:[%s2562_s1 + $0x228] sm:$0xff]  }
  0x29   : > { %1849 = vmatprep.subr.bf16.mxu1 %v2061_v29  ;;  %v2125_v19 = vld [vmem:[%s2327_s22 + $0x1c] ss:$36 sps:$4 sm:$0xff]   ;;  %v2130_v23 = vld [vmem:[%s2327_s22 + $0x64] ss:$36 sps:$4 sm:$0xff]   ;;  %v2138_v28 = vld [vmem:[%s2327_s22 + $0xac] ss:$36 sps:$4 sm:$0xff]  }
  0x2a   : > { %v2128_v22 = vld [vmem:[%s2327_s22 + $0x5c] ss:$36 sps:$4 sm:$0xff]   ;;  %v2136_v27 = vld [vmem:[%s2327_s22 + $0xa4] ss:$36 sps:$4 sm:$0xff]   ;;  %v2143_v35 = vld [vmem:[%s2562_s1 + $0x210] sm:$0xff]  }
  0x2b   : > { %1810 = vmatpush3.bf16.msra.mxu0 %v2062_v30  ;;  %v2132_v24 = vld [vmem:[%s2327_s22 + $0x58] ss:$36 sps:$4 sm:$0xff]   ;;  %v2133_v25 = vld [vmem:[%s2327_s22 + $0x60] ss:$36 sps:$4 sm:$0xff]  }
  0x2c   : > { %1850 = vmatpush3.bf16.msra.mxu1 %v2063_v31  ;;  %1875 = vmatprep.subr.bf16.mxu0 %v2070_v36  ;;  %v2135_v29 = vld [vmem:[%s2562_s1 + $0x220] sm:$0xff]   ;;  %v2141_v31 = vld [vmem:[%s2327_s22 + $0xa8] ss:$36 sps:$4 sm:$0xff]  }
  0x2d   : > { %1915 = vmatprep.subr.bf16.mxu1 %v2071_v37  ;;  %v2140_v30 = vld [vmem:[%s2327_s22 + $0xa0] ss:$36 sps:$4 sm:$0xff]   ;;  %v2148_v36 = vld [vmem:[%s2327_s22 + $0xe8] ss:$36 sps:$4 sm:$0xff]  }
  0x2e   : > { %1135 = vmatmul.mubr.bf16.vlgmr.msra.gmra.mxu0 %v2064_v32  ;;  %v2142_v32 = vld [vmem:[%s2562_s1 + $0x218] sm:$0xff]   ;;  %v2150_v37 = vld [vmem:[%s2562_s1 + $0x208] sm:$0xff]  }
  0x2f   : > { %1200 = vmatmul.mubr.bf16.vlgmr.msra.gmra.mxu1 %v2067_v34  ;;  %1876 = vmatpush3.bf16.msra.mxu0 %v2072_v38  ;;  %v2146_v34 = vld [vmem:[%s2327_s22 + $0xf4] ss:$36 sps:$4 sm:$0xff]  }
  0x30   : > { %1916 = vmatpush3.bf16.msra.mxu1 %v2073_v39  ;;  %1877 = vmatprep.subr.bf16.mxu0 %v2074_v40  ;;  %v2149_v38 = vld [vmem:[%s2327_s22 + $0xf0] ss:$36 sps:$4 sm:$0xff]   ;;  %v2152_v39 = vld [vmem:[%s2327_s22 + $0x20] ss:$36 sps:$4 sm:$0xff]  }
  0x31   : > { %1917 = vmatprep.subr.bf16.mxu1 %v2075_v41  ;;  %1142 = vmatprep.mubr.bf16.mxu0 %v2078_v44  ;;  %v2153_v40 = vld [vmem:[%s2327_s22 + $0xb0] ss:$36 sps:$4 sm:$0xff]   ;;  %v2151_v41 = vld [vmem:[%s2562_s1 + $0x200] sm:$0xff]  }
  0x32   : > { %1207 = vmatprep.mubr.bf16.mxu1 %v2080_v45 }
  0x33   : > { %1878 = vmatpush3.bf16.msra.mxu0 %v2076_v42  ;;  %v2154_v42 = vld [vmem:[%s2327_s22 + $0x68] ss:$36 sps:$4 sm:$0xff]  }
  0x34   : > { %1918 = vmatpush3.bf16.msra.mxu1 %v2077_v43  ;;  %1879 = vmatprep.subr.bf16.mxu0 %v2084_v48  ;;  %v2155_v43 = vld [vmem:[%s2327_s22 + $0xf8] ss:$36 sps:$4 sm:$0xff]  }
  0x35   : > { %1919 = vmatprep.subr.bf16.mxu1 %v2085_v49 }
  0x36   : > { %1143 = vmatmul.mubr.bf16.gmra.mxu0 %v2082_v46 }
  0x37   : > { %1208 = vmatmul.mubr.bf16.gmra.mxu1 %v2083_v47  ;;  %1880 = vmatpush3.bf16.msra.mxu0 %v2086_v50 }
  0x38   : > { %1920 = vmatpush3.bf16.msra.mxu1 %v2087_v51  ;;  %1881 = vmatprep.subr.bf16.mxu0 %v2088_v52 }
  0x39   : > { %1921 = vmatprep.subr.bf16.mxu1 %v2089_v53  ;;  %1150 = vmatprep.mubr.bf16.mxu0 %v2092_v56 }
  0x3a   : > { %1215 = vmatprep.mubr.bf16.mxu1 %v2094_v57 }
  0x3b   : > { %1882 = vmatpush3.bf16.msra.mxu0 %v2090_v54 }
  0x3c   : > { %1922 = vmatpush3.bf16.msra.mxu1 %v2091_v55  ;;  %1883 = vmatprep.subr.bf16.mxu0 %v2098_v60 }
  0x3d   : > { %1923 = vmatprep.subr.bf16.mxu1 %v2099_v61 }
  0x3e   : > { %1151 = vmatmul.mubr.bf16.gmra.mxu0 %v2096_v58 }
  0x3f   : > { %1216 = vmatmul.mubr.bf16.gmra.mxu1 %v2097_v59  ;;  %1884 = vmatpush3.bf16.msra.mxu0 %v2100_v62 }
  0x40   : > { %1924 = vmatpush3.bf16.msra.mxu1 %v2101_v63  ;;  %1885 = vmatprep.subr.bf16.mxu0 %v2102_v0 }
  0x41   : > { %1925 = vmatprep.subr.bf16.mxu1 %v2103_v1  ;;  %1158 = vmatprep.mubr.bf16.mxu0 %v2106_v4 }
  0x42   : > { %1223 = vmatprep.mubr.bf16.mxu1 %v2108_v5 }
  0x43   : > { %1886 = vmatpush3.bf16.msra.mxu0 %v2104_v2 }
  0x44   : > { %1926 = vmatpush3.bf16.msra.mxu1 %v2105_v3  ;;  %1887 = vmatprep.subr.bf16.mxu0 %v2112_v8 }
  0x45   : > { %1927 = vmatprep.subr.bf16.mxu1 %v2113_v9 }
  0x46   : > { %1159 = vmatmul.mubr.bf16.gmra.mxu0 %v2110_v6 }
  0x47   : > { %1224 = vmatmul.mubr.bf16.gmra.mxu1 %v2111_v7  ;;  %1888 = vmatpush3.bf16.msra.mxu0 %v2114_v10 }
  0x48   : > { %1928 = vmatpush3.bf16.msra.mxu1 %v2115_v11  ;;  %1889 = vmatprep.subr.bf16.mxu0 %v2116_v12 }
  0x49   : > { %1929 = vmatprep.subr.bf16.mxu1 %v2117_v13  ;;  %1264 = vmatprep.mubr.bf16.mxu0 %v2122_v17 }
  0x4a   : > { %1329 = vmatprep.mubr.bf16.mxu1 %v2125_v19 }
  0x4b   : > { %1890 = vmatpush3.bf16.msra.mxu0 %v2118_v14 }
  0x4c   : > { %1930 = vmatpush3.bf16.msra.mxu1 %v2119_v15  ;;  %1967 = vmatprep.subr.bf16.mxu0 %v2126_v20 }
  0x4d   : > { %1991 = vmatprep.subr.bf16.mxu1 %v2126_v20 }
  0x4e   : > { %1265 = vmatmul.mubr.bf16.vlgmr.msra.gmra.mxu0 %v2120_v16 }
  0x4f   : > { %1330 = vmatmul.mubr.bf16.vlgmr.msra.gmra.mxu1 %v2123_v18  ;;  %1968 = vmatpush3.bf16.msra.mxu0 %v2126_v20 }
  0x50   : > { %1999 = vmatpush3.bf16.msra.mxu1 %v2126_v20  ;;  %1969 = vmatprep.subr.bf16.mxu0 %v2127_v21 }
  0x51   : > { %1992 = vmatprep.subr.bf16.mxu1 %v2127_v21  ;;  %1272 = vmatprep.mubr.bf16.mxu0 %v2128_v22 }
  0x52   : > { %1337 = vmatprep.mubr.bf16.mxu1 %v2130_v23 }
  0x53   : > { %1970 = vmatpush3.bf16.msra.mxu0 %v2127_v21 }
  0x54   : > { %2000 = vmatpush3.bf16.msra.mxu1 %v2127_v21  ;;  %1971 = vmatprep.subr.bf16.mxu0 %v2134_v26 }
  0x55   : > { %1993 = vmatprep.subr.bf16.mxu1 %v2134_v26 }
  0x56   : > { %1273 = vmatmul.mubr.bf16.gmra.mxu0 %v2132_v24 }
  0x57   : > { %1338 = vmatmul.mubr.bf16.gmra.mxu1 %v2133_v25  ;;  %1280 = vmatprep.mubr.bf16.mxu0 %v2136_v27 }
  0x58   : > { %1972 = vmatpush3.bf16.msra.mxu0 %v2134_v26  ;;  %1345 = vmatprep.mubr.bf16.mxu1 %v2138_v28 }
  0x59   : > { %2001 = vmatpush3.bf16.msra.mxu1 %v2134_v26  ;;  %1973 = vmatprep.subr.bf16.mxu0 %v2135_v29 }
  0x5a   : > { %1994 = vmatprep.subr.bf16.mxu1 %v2135_v29 }
  0x5c   : > { %1974 = vmatpush3.bf16.msra.mxu0 %v2135_v29 }
  0x5d   : > { %2002 = vmatpush3.bf16.msra.mxu1 %v2135_v29  ;;  %1975 = vmatprep.subr.bf16.mxu0 %v2142_v32 }
  0x5e   : > { %1281 = vmatmul.mubr.bf16.gmra.mxu0 %v2140_v30  ;;  %1995 = vmatprep.subr.bf16.mxu1 %v2142_v32 }
  0x5f   : > { %1346 = vmatmul.mubr.bf16.gmra.mxu1 %v2141_v31  ;;  %1288 = vmatprep.mubr.bf16.mxu0 %v2144_v33 }
  0x60   : > { %1976 = vmatpush3.bf16.msra.mxu0 %v2142_v32  ;;  %1353 = vmatprep.mubr.bf16.mxu1 %v2146_v34 }
  0x61   : > { %2003 = vmatpush3.bf16.msra.mxu1 %v2142_v32  ;;  %1977 = vmatprep.subr.bf16.mxu0 %v2143_v35 }
  0x62   : > { %1996 = vmatprep.subr.bf16.mxu1 %v2143_v35 }
  0x64   : > { %1978 = vmatpush3.bf16.msra.mxu0 %v2143_v35 }
  0x65   : > { %2004 = vmatpush3.bf16.msra.mxu1 %v2143_v35  ;;  %1979 = vmatprep.subr.bf16.mxu0 %v2150_v37 }
  0x66   : > { %1289 = vmatmul.mubr.bf16.gmra.mxu0 %v2148_v36  ;;  %1997 = vmatprep.subr.bf16.mxu1 %v2150_v37 }
  0x67   : > { %1354 = vmatmul.mubr.bf16.gmra.mxu1 %v2149_v38  ;;  %1983 = vmatprep.mubr.bf16.mxu0 %v2152_v39 }
  0x68   : > { %1980 = vmatpush3.bf16.msra.mxu0 %v2150_v37  ;;  %1987 = vmatprep.mubr.bf16.mxu1 %v2153_v40 }
  0x69   : > { %2005 = vmatpush3.bf16.msra.mxu1 %v2150_v37  ;;  %1981 = vmatprep.subr.bf16.mxu0 %v2151_v41 }
  0x6a   : > { %1998 = vmatprep.subr.bf16.mxu1 %v2151_v41 }
  0x6c   : > { %1982 = vmatpush3.bf16.msra.mxu0 %v2151_v41 }
  0x6d   : > { %2006 = vmatpush3.bf16.msra.mxu1 %v2151_v41 }
  0x6f   : > { %1984 = vmatmul.mubr.bf16.vlgmr.msra.gmra.mxu0 %v2154_v42 }
  0x70   : > { %1988 = vmatmul.mubr.bf16.vlgmr.msra.gmra.mxu1 %v2155_v43 }
  0xee   : > { %v1811_v44 = vpop.f32.mrf.mxu0 }
  0xef   : > { %v1851_v45 = vpop.f32.mrf.mxu1 }
  0xf0   : > { %v1812_v46 = vpop.f32.mrf.mxu0 }
  0xf1   : > { %v1852_v47 = vpop.f32.mrf.mxu1  ;;  %v1813_v33 = vadd.f32 %v1812_v46, %v1811_v44 }
  0xf2   : > { %v2491_v48 = vpop.f32.mrf.mxu0  ;;  %v1853_v34 = vadd.f32 %v1852_v47, %v1851_v45 }
  0xf3   : > { %v2493_v49 = vpop.f32.mrf.mxu1 }
  0xf4   : > { %v2495_v50 = vpop.f32.mrf.mxu0 }
  0xf5   : > { %v2497_v51 = vpop.f32.mrf.mxu1 }
  0xf6   : > { %v1817_v52 = vpop.f32.mrf.mxu0 }
  0xf7   : > { %v1857_v53 = vpop.f32.mrf.mxu1 }
  0xf8   : > { %v1818_v54 = vpop.f32.mrf.mxu0 }
  0xf9   : > { %v1858_v55 = vpop.f32.mrf.mxu1  ;;  %v1819_v37 = vadd.f32 %v1818_v54, %v1817_v52  ;;  %v1856_v54 = vadd.f32 %v2497_v51, %v2493_v49 }
  0xfa   : > { %v1820_v56 = vpop.f32.mrf.mxu0  ;;  %v1859_v38 = vadd.f32 %v1858_v55, %v1857_v53  ;;  %v1816_v53 = vadd.f32 %v2495_v50, %v2491_v48 }
  0xfb   : > { %v1860_v57 = vpop.f32.mrf.mxu1 }
  0xfc   : > { %v1821_v58 = vpop.f32.mrf.mxu0  ;;  %v1210_v46 = vadd.f32 %v1859_v38, %v1819_v37 }
  0xfd   : > { %v1861_v59 = vpop.f32.mrf.mxu1  ;;  %v1822_v41 = vadd.f32 %v1821_v58, %v1820_v56 }
  0xfe   : > { %v1823_v60 = vpop.f32.mrf.mxu0  ;;  %v1862_v42 = vadd.f32 %v1861_v59, %v1860_v57 }
  0xff   : > { %v1863_v61 = vpop.f32.mrf.mxu1 }
 0x100   : > { %v1824_v62 = vpop.f32.mrf.mxu0  ;;  %v1213_v55 = vadd.f32 %v1862_v42, %v1822_v41 }
 0x101   : > { %v1864_v63 = vpop.f32.mrf.mxu1 }
 0x102   : > { %v2499_v0 = vpop.f32.mrf.mxu0 }
 0x103   : > { %v2501_v1 = vpop.f32.mrf.mxu1 }
 0x104   : > { %v2503_v2 = vpop.f32.mrf.mxu0 }
 0x105   : > { %v2505_v3 = vpop.f32.mrf.mxu1 }
 0x106   : > { %2567 = vst [vmem:[#allocation3_spill] sm:$0xff] %v2505_v3  ;;  %v1829_v4 = vpop.f32.mrf.mxu0 }
 0x107   : > { %v1869_v5 = vpop.f32.mrf.mxu1 }
 0x108   : > { %v1830_v6 = vpop.f32.mrf.mxu0 }
 0x109   : > { %v1870_v7 = vpop.f32.mrf.mxu1  ;;  %v1831_v39 = vadd.f32 %v1830_v6, %v1829_v4 }
 0x10a   : > { %v1832_v8 = vpop.f32.mrf.mxu0  ;;  %v1871_v40 = vadd.f32 %v1870_v7, %v1869_v5 }
 0x10b   : > { %v1872_v9 = vpop.f32.mrf.mxu1 }
 0x10c   : > { %v1833_v10 = vpop.f32.mrf.mxu0  ;;  %v1226_v47 = vadd.f32 %v1871_v40, %v1831_v39 }
 0x10d   : > { %v1873_v11 = vpop.f32.mrf.mxu1  ;;  %v2575_v4 = vld [vmem:[#allocation3_spill] sm:$0xff] }
 0x10e   : > { %v1891_v12 = vpop.f32.mrf.mxu0  ;;  %v1874_v3 = vadd.f32 %v1873_v11, %v1872_v9  ;;  %v1868_v5 = vadd.f32 %v2575_v4, %v2501_v1 }
 0x10f   : > { %v2507_v13 = vpop.f32.mrf.mxu1 }
 0x110   : > { %2568 = vst [vmem:[#allocation4_spill] sm:$0xff] %v2507_v13  ;;  %v1892_v14 = vpop.f32.mrf.mxu0  ;;  %v1834_v13 = vadd.f32 %v1833_v10, %v1832_v8  ;;  %v1205_v10 = vadd.f32 %v1856_v54, %v1816_v53 }
 0x111   : > { %v2509_v15 = vpop.f32.mrf.mxu1 }
 0x112   : > { %2569 = vst [vmem:[#allocation5_spill] sm:$0xff] %v2509_v15  ;;  %v1894_v16 = vpop.f32.mrf.mxu0  ;;  %v1202_v15 = vadd.f32 %v1853_v34, %v1813_v33  ;;  %v1229_v6 = vadd.f32 %v1874_v3, %v1834_v13 }
 0x113   : > { %v2511_v17 = vpop.f32.mrf.mxu1 }
 0x114   : > { %2570 = vst [vmem:[#allocation6_spill] sm:$0xff] %v2511_v17  ;;  %v1895_v18 = vpop.f32.mrf.mxu0  ;;  %v1825_v17 = vadd.f32 %v1824_v62, %v1823_v60 }
 0x115   : > { %v2513_v19 = vpop.f32.mrf.mxu1  ;;  %v1896_v49 = vadd.f32 %v1895_v18, %v1894_v16 }
 0x116   : > { %2571 = vst [vmem:[#allocation7_spill] sm:$0xff] %v2513_v19  ;;  %v1897_v20 = vpop.f32.mrf.mxu0 }
 0x117   : > { %v1937_v21 = vpop.f32.mrf.mxu1  ;;  %v1270_v16 = vadd.f32 %v1896_v49, %v1205_v10 }
 0x118   : > { %v1898_v22 = vpop.f32.mrf.mxu0 }
 0x119   : > { %v1938_v23 = vpop.f32.mrf.mxu1 }
 0x11a   : > { %v1900_v24 = vpop.f32.mrf.mxu0  ;;  %v1939_v51 = vadd.f32 %v1938_v23, %v1937_v21 }
 0x11b   : > { %v2515_v25 = vpop.f32.mrf.mxu1 }
 0x11c   : > { %2572 = vst [vmem:[#allocation8_spill] sm:$0xff] %v2515_v25  ;;  %v1901_v26 = vpop.f32.mrf.mxu0  ;;  %v1899_v25 = vadd.f32 %v1898_v22, %v1897_v20  ;;  %v2577_v20 = vld [vmem:[#allocation5_spill] sm:$0xff] }
 0x11d   : > { %v2517_v27 = vpop.f32.mrf.mxu1 }
 0x11e   : > { %2573 = vst [vmem:[#allocation9_spill] sm:$0xff] %v2517_v27  ;;  %v1903_v28 = vpop.f32.mrf.mxu0  ;;  %v1865_v27 = vadd.f32 %v1864_v63, %v1863_v61  ;;  %v1275_v60 = vadd.f32 %v1899_v25, %v1210_v46  ;;  %v1902_v61 = vadd.f32 %v1901_v26, %v1900_v24  ;;  %v1828_v63 = vadd.f32 %v2503_v2, %v2499_v0 }
 0x11f   : > { %v1943_v29 = vpop.f32.mrf.mxu1 }
 0x120   : > { %v1904_v30 = vpop.f32.mrf.mxu0  ;;  %v1218_v59 = vadd.f32 %v1865_v27, %v1825_v17  ;;  %v1278_v0 = vadd.f32 %v1902_v61, %v1213_v55  ;;  %v1340_v24 = vadd.f32 %v1939_v51, %v1275_v60  ;;  %v1221_v1 = vadd.f32 %v1868_v5, %v1828_v63 }
 0x121   : > { %v1944_v31 = vpop.f32.mrf.mxu1  ;;  %v1905_v56 = vadd.f32 %v1904_v30, %v1903_v28 }
 0x122   : > { %v1906_v32 = vpop.f32.mrf.mxu0  ;;  %v1945_v3 = vadd.f32 %v1944_v31, %v1943_v29 }
 0x123   : > { %v2519_v35 = vpop.f32.mrf.mxu1  ;;  %v1283_v11 = vadd.f32 %v1905_v56, %v1218_v59  ;;  %v2578_v18 = vld [vmem:[#allocation8_spill] sm:$0xff] }
 0x124   : > { %2574 = vst [vmem:[#allocation10_spill] sm:$0xff] %v2519_v35  ;;  %v1907_v36 = vpop.f32.mrf.mxu0  ;;  %v1893_v35 = vadd.f32 %v1892_v14, %v1891_v12 }
 0x125   : > { %v2521_v43 = vpop.f32.mrf.mxu1  ;;  %v1908_v12 = vadd.f32 %v1907_v36, %v1906_v32  ;;  %v2579_v21 = vld [vmem:[#allocation9_spill] sm:$0xff]  ;;  %v1752_v32 = vld [vmem:[%s2564_s3] ss:$0 sm:$0xff]  ;;  %v1348_v31 = vadd.f32 %v1945_v3, %v1283_v11 }
 0x126   : > { %v1909_v19 = vpop.f32.mrf.mxu0  ;;  %v1267_v8 = vadd.f32 %v1893_v35, %v1202_v15  ;;  %v1751_v15 = vld [vmem:[%s2563_s2] ss:$0 sm:$0xff]  ;;  %v1942_v23 = vadd.f32 %v2579_v21, %v2578_v18  ;;  %v2580_v35 = vld [vmem:[#allocation6_spill] sm:$0xff] }
 0x127   : > { %v1949_v44 = vpop.f32.mrf.mxu1  ;;  %v1286_v30 = vadd.f32 %v1908_v12, %v1221_v1  ;;  %v2581_v36 = vld [vmem:[#allocation7_spill] sm:$0xff] }
 0x128   : > { %v1910_v45 = vpop.f32.mrf.mxu0  ;;  %v1936_v37 = vadd.f32 %v2581_v36, %v2580_v35  ;;  %v1343_v41 = vadd.f32 %v1942_v23, %v1278_v0 }
 0x129   : > { %v1911_v52 = vadd.f32 %v1910_v45, %v1909_v19  ;;  %v1950_v57 = vpop.f32.mrf.mxu1  ;;  %v2576_v19 = vld [vmem:[#allocation4_spill] sm:$0xff] }
 0x12a   : > { %v1912_v58 = vpop.f32.mrf.mxu0  ;;  %v1951_v7 = vadd.f32 %v1950_v57, %v1949_v44  ;;  %v1933_v22 = vadd.f32 %v2577_v20, %v2576_v19  ;;  %v1335_v56 = vadd.f32 %v1936_v37, %v1270_v16  ;;  %v1753_v57 = vld [vmem:[%s2565_s4] ss:$0 sm:$0xff] }
 0x12b   : > { %v1291_v62 = vadd.f32 %v1911_v52, %v1226_v47  ;;  %v1952_v48 = vpop.f32.mrf.mxu1  ;;  %v2582_v42 = vld [vmem:[#allocation10_spill] sm:$0xff] }
 0x12c   : > { %v1913_v50 = vpop.f32.mrf.mxu0  ;;  %v1332_v28 = vadd.f32 %v1933_v22, %v1267_v8  ;;  %v1948_v44 = vadd.f32 %v2521_v43, %v2582_v42 }
 0x12d   : > { %v1914_v9 = vadd.f32 %v1913_v50, %v1912_v58  ;;  %v1953_v14 = vpop.f32.mrf.mxu1  ;;  %v1356_v17 = vadd.f32 %v1951_v7, %v1291_v62 }
 0x12e   : > { %v1954_v13 = vadd.f32 %v1953_v14, %v1952_v48  ;;  %v1351_v62 = vadd.f32 %v1948_v44, %v1286_v30 }
 0x12f   : > { %v1294_v2 = vadd.f32 %v1914_v9, %v1229_v6  ;;  %v1985_v25 = vpop.f32.mrf.mxu0 }
 0x130   : > { %v1405_v26 = vadd.f32 %v1985_v25, %v1340_v24  ;;  %v1989_v27 = vpop.f32.mrf.mxu1 }
 0x131   : > { %v1421_v33 = vadd.f32 %v1989_v27, %v1356_v17  ;;  %v1396_v29 = vpop.f32.mrf.mxu0  ;;  %v1359_v34 = vadd.f32 %v1954_v13, %v1294_v2 }
 0x132   : > { %v1463_v38 = vadd.f32 %v1751_v15, %v1405_v26  ;;  %v1397_v39 = vadd.f32 %v1396_v29, %v1332_v28  ;;  %v1412_v40 = vpop.f32.mrf.mxu1 }
 0x133   : > { %v1467_v45 = vadd.f32 %v1751_v15, %v1421_v33  ;;  %v1413_v46 = vadd.f32 %v1412_v40, %v1348_v31  ;;  %v1986_v47 = vpop.f32.mrf.mxu0 }
 0x134   : > { %v1478_v52 = vmul.f32 %v1752_v32, %v1463_v38  ;;  %v1461_v53 = vadd.f32 %v1751_v15, %v1397_v39  ;;  %v1408_v54 = vadd.f32 %v1986_v47, %v1343_v41  ;;  %v1990_v55 = vpop.f32.mrf.mxu1 }
 0x135   : > { %v1482_v58 = vmul.f32 %v1752_v32, %v1467_v45  ;;  %v1465_v59 = vadd.f32 %v1751_v15, %v1413_v46  ;;  %v1424_v60 = vadd.f32 %v1990_v55, %v1359_v34  ;;  %v1399_v61 = vpop.f32.mrf.mxu0 }
 0x136   : > { %v1476_v63 = vmul.f32 %v1752_v32, %v1461_v53  ;;  %v1464_v43 = vadd.f32 %v1751_v15, %v1408_v54  ;;  %v1400_v4 = vadd.f32 %v1399_v61, %v1335_v56  ;;  %v1415_v5 = vpop.f32.mrf.mxu1  ;;  %v1493_v50 = vadd.f32 %v1753_v57, %v1478_v52 }
 0x137   : > { %v1480_v6 = vmul.f32 %v1752_v32, %v1465_v59  ;;  %v1468_v7 = vadd.f32 %v1751_v15, %v1424_v60  ;;  %v1416_v48 = vadd.f32 %v1415_v5, %v1351_v62  ;;  %v1497_v51 = vadd.f32 %v1753_v57, %v1482_v58 }
 0x138   : > { %v1479_v8 = vmul.f32 %v1752_v32, %v1464_v43  ;;  %v1462_v49 = vadd.f32 %v1751_v15, %v1400_v4  ;;  %v1491_v11 = vadd.f32 %v1753_v57, %v1476_v63  ;;  %v1501_v22 = vmax.f32 %v1493_v50, 0.0 }
 0x139   : > { %v1483_v9 = vmul.f32 %v1752_v32, %v1468_v7  ;;  %v1466_v10 = vadd.f32 %v1751_v15, %v1416_v48  ;;  %v1495_v17 = vadd.f32 %v1753_v57, %v1480_v6  ;;  %v1505_v24 = vmax.f32 %v1497_v51, 0.0 }
 0x13a   : > { %v1494_v12 = vadd.f32 %v1753_v57, %v1479_v8  ;;  %v1477_v14 = vmul.f32 %v1752_v32, %v1462_v49  ;;  %v1499_v13 = vmax.f32 %v1491_v11, 0.0 }
 0x13b   : > { %v1498_v19 = vadd.f32 %v1753_v57, %v1483_v9  ;;  %v1481_v20 = vmul.f32 %v1752_v32, %v1466_v10  ;;  %v1503_v16 = vmax.f32 %v1495_v17, 0.0 }
 0x13c   : > { %v1502_v0 = vmax.f32 %v1494_v12, 0.0  ;;  %v1492_v2 = vadd.f32 %v1753_v57, %v1477_v14 }
 0x13d   : > { %v1506_v1 = vmax.f32 %v1498_v19, 0.0  ;;  %v1496_v3 = vadd.f32 %v1753_v57, %v1481_v20 }
 0x13e   : > { %v1780_v25 = vpack.c.bf16 %v1502_v0, %v1501_v22  ;;  %v1500_v15 = vmax.f32 %v1492_v2, 0.0 }
 0x13f   : > { %v1790_v18 = vpack.c.bf16 %v1506_v1, %v1505_v24  ;;  %v1504_v21 = vmax.f32 %v1496_v3, 0.0 }
 0x140   : > { %1792 = vst [vmem:[%s279_s11 + $0x8] sm:$0xff] %v1780_v25   ;;  %v1775_v23 = vpack.c.bf16 %v1500_v15, %v1499_v13 }
 0x141   : > { %1794 = vst [vmem:[%s279_s11 + $0x18] sm:$0xff] %v1790_v18   ;;  %v1785_v26 = vpack.c.bf16 %v1504_v21, %v1503_v16 }
 0x142   : > { %1776 = vst [vmem:[%s279_s11] sm:$0xff] %v1775_v23  }
 0x143   : > { %1793 = vst [vmem:[%s279_s11 + $0x10] sm:$0xff] %v1785_v26  }
 0x144 PF: > { %s15_s20 = sadd.s32 1, %s2178_s20   ;;  %s2583_s18 = smov %s2174_s19 }
 0x145   : > { %p12_p5 = scmp.ge.s32.totalorder %s15_s20, 4   ;;  %s2584_s19 = smov %s2586_s21 }
 0x147   :  { %14 = sbr.rel (!%p12_p5) target bundleno = 2 (0x2), region = 81 }

// kernel: _lambda_.14
= control target key start
LH: loop header
LB: loop body
LE: loop exit
PB: predicated region body
PF: predicated region fallthrough
CT: control target
= control target key end

     0   :  { %s3830_s18 = smov 0   ;;  %s3832_s19 = smov 0   ;;  %s4509_s0 = inlined_call_operand.vmem [shape: bf16[128,1152], index: 0, kind: input, shape index: {}]   ;;  %s4510_s1 = inlined_call_operand.vmem [shape: bf16[1152,128], index: 1, kind: input, shape index: {}]   ;;  %s4511_s2 = inlined_call_operand.vmem [shape: bf16[128,1152], index: 2, kind: input, shape index: {}]   ;;  %s4512_s3 = inlined_call_operand.vmem [shape: bf16[1152,128], index: 3, kind: input, shape index: {}]   ;;  %s4513_s4 = inlined_call_operand.vmem [shape: f32[1,128], index: 4, kind: input, shape index: {}]   ;;  %s4514_s5 = inlined_call_operand.vmem [shape: bf16[128,128], index: 5, kind: output, shape index: {}]  }
   0x1   :  { %s3834_s20 = smov 0  }
   0x2 LB: > { %s27_s21 = sadd.s32 1, %s3794_s19  ;;  %p2846_p0 = scmp.ge.s32.totalorder %s3798_s20, 1  ;;  %s3798_s20 = sphi %s3834_s20, %s15_s20   ;;  %s3794_s19 = sphi %s3832_s19, %s4538_s19   ;;  %s3790_s18 = sphi %s3830_s18, %s4537_s18  }
   0x3   : > { %p29_p1 = scmp.ge.s32.totalorder %s27_s21, 2  ;;  %p249_p2 = scmp.lt.s32.totalorder %s3798_s20, 3 }
   0x5   : > { %s4540_s21 = smov (%p29_p1, %s27_s21), 0  ;;  %p250_p3 = pnand %p2846_p0, %p249_p2 }
   0x7   : > { %253 = sbr.rel (%p250_p3) target bundleno = 410 (0x19a), region = 40 }
   0xc   : > { %v3528_v0 = vld [vmem:[%s4510_s1 + $0x78] sm:$0xff]   ;;  %v3532_v4 = vld [vmem:[%s4510_s1 + $0x70] sm:$0xff]   ;;  %v3536_v8 = vld [vmem:[%s4510_s1 + $0x68] sm:$0xff]   ;;  %s2847_s6 = sshll.u32 %s3790_s18, 3 }
   0xd   : > { %v3529_v1 = vld [vmem:[%s4510_s1 + $0xf8] sm:$0xff]   ;;  %3111 = vmatprep.subr.bf16.mxu0 %v3528_v0  ;;  %v3533_v5 = vld [vmem:[%s4510_s1 + $0xf0] sm:$0xff]   ;;  %v3537_v9 = vld [vmem:[%s4510_s1 + $0xe8] sm:$0xff]   ;;  %p304_p4 = scmp.lt.s32.totalorder %s2847_s6, 15 }
   0xe   : > { %v3530_v2 = vld [vmem:[%s4510_s1 + $0x38] sm:$0xff]   ;;  %3151 = vmatprep.subr.bf16.mxu1 %v3529_v1  ;;  %v3534_v6 = vld [vmem:[%s4510_s1 + $0x30] sm:$0xff]   ;;  %v3538_v10 = vld [vmem:[%s4510_s1 + $0x28] sm:$0xff]  }
   0xf   : > { %v3531_v3 = vld [vmem:[%s4510_s1 + $0xb8] sm:$0xff]   ;;  %3112 = vmatpush3.bf16.msra.mxu0 %v3530_v2  ;;  %v3535_v7 = vld [vmem:[%s4510_s1 + $0xb0] sm:$0xff]   ;;  %v3539_v11 = vld [vmem:[%s4510_s1 + $0xa8] sm:$0xff]   ;;  %s4542_s6 = smov (!%p304_p4, %s2847_s6), 15 }
  0x10   : > { %3152 = vmatpush3.bf16.msra.mxu1 %v3531_v3  ;;  %3113 = vmatprep.subr.bf16.mxu0 %v3532_v4  ;;  %v3540_v12 = vld [vmem:[%s4510_s1 + $0x60] sm:$0xff]   ;;  %v3544_v16 = vld [vmem:[%s4510_s1 + $0x58] sm:$0xff]   ;;  %v3548_v20 = vld [vmem:[%s4510_s1 + $0x50] sm:$0xff]   ;;  %s3503_s8 = smul.u32 36, %s4542_s6  ;;  %s2852_s16 = sshll.u32 %s4542_s6, 2 }
  0x11   : > { %3153 = vmatprep.subr.bf16.mxu1 %v3533_v5  ;;  %v3541_v13 = vld [vmem:[%s4510_s1 + $0xe0] sm:$0xff]   ;;  %v3545_v17 = vld [vmem:[%s4510_s1 + $0xd8] sm:$0xff]   ;;  %v3549_v21 = vld [vmem:[%s4510_s1 + $0xd0] sm:$0xff]   ;;  %s4465_s6 = scalar_lea.vmem %s4514_s5, %s2852_s16 }
  0x12   : > { %v3542_v14 = vld [vmem:[%s4510_s1 + $0x20] sm:$0xff]   ;;  %v3546_v18 = vld [vmem:[%s4510_s1 + $0x18] sm:$0xff]   ;;  %v3550_v22 = vld [vmem:[%s4510_s1 + $0x10] sm:$0xff]   ;;  %s3949_s22 = scalar_lea.vmem %s4509_s0, %s3503_s8  ;;  %s4163_s27 = scalar_lea.vmem %s4511_s2, %s3503_s8 }
  0x13   : > { %3114 = vmatpush3.bf16.msra.mxu0 %v3534_v6  ;;  %v3543_v15 = vld [vmem:[%s4510_s1 + $0xa0] sm:$0xff]   ;;  %v3547_v19 = vld [vmem:[%s4510_s1 + $0x98] sm:$0xff]   ;;  %v3551_v23 = vld [vmem:[%s4510_s1 + $0x90] sm:$0xff]  }
  0x14   : > { %3154 = vmatpush3.bf16.msra.mxu1 %v3535_v7  ;;  %3115 = vmatprep.subr.bf16.mxu0 %v3536_v8  ;;  %v3552_v24 = vld [vmem:[%s4510_s1 + $0x48] sm:$0xff]   ;;  %v3556_v28 = vld [vmem:[%s4510_s1 + $0x40] sm:$0xff]   ;;  %v3566_v36 = vld [vmem:[%s4510_s1 + $0x178] sm:$0xff]  }
  0x15   : > { %3155 = vmatprep.subr.bf16.mxu1 %v3537_v9  ;;  %v3553_v25 = vld [vmem:[%s4510_s1 + $0xc8] sm:$0xff]   ;;  %v3557_v29 = vld [vmem:[%s4510_s1 + $0xc0] sm:$0xff]   ;;  %v3567_v37 = vld [vmem:[%s4510_s1 + $0x138] sm:$0xff]  }
  0x16   : > { %v3554_v26 = vld [vmem:[%s4510_s1 + $0x8] sm:$0xff]   ;;  %v3558_v30 = vld [vmem:[%s4510_s1] sm:$0xff]   ;;  %v3568_v38 = vld [vmem:[%s4510_s1 + $0x1f8] sm:$0xff]  }
  0x17   : > { %3116 = vmatpush3.bf16.msra.mxu0 %v3538_v10  ;;  %v3555_v27 = vld [vmem:[%s4510_s1 + $0x88] sm:$0xff]   ;;  %v3559_v31 = vld [vmem:[%s4510_s1 + $0x80] sm:$0xff]   ;;  %v3569_v39 = vld [vmem:[%s4510_s1 + $0x1b8] sm:$0xff]  }
  0x18   : > { %3156 = vmatpush3.bf16.msra.mxu1 %v3539_v11  ;;  %3117 = vmatprep.subr.bf16.mxu0 %v3540_v12  ;;  %v3560_v32 = vld [vmem:[%s3949_s22] ss:$36 sps:$4 sm:$0xff]   ;;  %v3563_v34 = vld [vmem:[%s3949_s22 + $0x8] ss:$36 sps:$4 sm:$0xff]   ;;  %v3570_v40 = vld [vmem:[%s4510_s1 + $0x170] sm:$0xff]  }
  0x19   : > { %3157 = vmatprep.subr.bf16.mxu1 %v3541_v13  ;;  %v3562_v33 = vld [vmem:[%s3949_s22 + $0x4] ss:$36 sps:$4 sm:$0xff]   ;;  %v3565_v35 = vld [vmem:[%s3949_s22 + $0xc] ss:$36 sps:$4 sm:$0xff]   ;;  %v3575_v44 = vld [vmem:[%s3949_s22 + $0x54] ss:$36 sps:$4 sm:$0xff]  }
  0x1a   : > { %1197 = vmatprep.mubr.bf16.mxu0 %v3562_v33  ;;  %1262 = vmatprep.mubr.bf16.mxu1 %v3565_v35  ;;  %v3571_v41 = vld [vmem:[%s4510_s1 + $0x130] sm:$0xff]   ;;  %v3578_v46 = vld [vmem:[%s3949_s22 + $0x48] ss:$36 sps:$4 sm:$0xff]   ;;  %v3584_v52 = vld [vmem:[%s4510_s1 + $0x160] sm:$0xff]  }
  0x1b   : > { %3118 = vmatpush3.bf16.msra.mxu0 %v3542_v14  ;;  %v3572_v42 = vld [vmem:[%s4510_s1 + $0x1f0] sm:$0xff]   ;;  %v3580_v48 = vld [vmem:[%s4510_s1 + $0x168] sm:$0xff]   ;;  %v3585_v53 = vld [vmem:[%s4510_s1 + $0x120] sm:$0xff]  }
  0x1c   : > { %3158 = vmatpush3.bf16.msra.mxu1 %v3543_v15  ;;  %3119 = vmatprep.subr.bf16.mxu0 %v3544_v16  ;;  %v3573_v43 = vld [vmem:[%s3949_s22 + $0x4c] ss:$36 sps:$4 sm:$0xff]   ;;  %v3586_v54 = vld [vmem:[%s4510_s1 + $0x1e0] sm:$0xff]   ;;  %v3587_v55 = vld [vmem:[%s3949_s22 + $0x94] ss:$36 sps:$4 sm:$0xff]  }
  0x1d   : > { %3159 = vmatprep.subr.bf16.mxu1 %v3545_v17  ;;  %v3577_v45 = vld [vmem:[%s4510_s1 + $0x1b0] sm:$0xff]   ;;  %v3581_v49 = vld [vmem:[%s4510_s1 + $0x128] sm:$0xff]   ;;  %v3589_v56 = vld [vmem:[%s3949_s22 + $0x9c] ss:$36 sps:$4 sm:$0xff]  }
  0x1e   : > { %v3579_v47 = vld [vmem:[%s3949_s22 + $0x50] ss:$36 sps:$4 sm:$0xff]   ;;  %v3582_v50 = vld [vmem:[%s4510_s1 + $0x1e8] sm:$0xff]   ;;  %v3591_v57 = vld [vmem:[%s4510_s1 + $0x1a0] sm:$0xff]  }
  0x1f   : > { %3120 = vmatpush3.bf16.msra.mxu0 %v3546_v18  ;;  %v3583_v51 = vld [vmem:[%s4510_s1 + $0x1a8] sm:$0xff]   ;;  %v3592_v58 = vld [vmem:[%s3949_s22 + $0x90] ss:$36 sps:$4 sm:$0xff]   ;;  %v3593_v59 = vld [vmem:[%s3949_s22 + $0x98] ss:$36 sps:$4 sm:$0xff]  }
  0x20   : > { %3160 = vmatpush3.bf16.msra.mxu1 %v3547_v19  ;;  %3121 = vmatprep.subr.bf16.mxu0 %v3548_v20  ;;  %v3594_v60 = vld [vmem:[%s4510_s1 + $0x158] sm:$0xff]   ;;  %v3598_v0 = vld [vmem:[%s4510_s1 + $0x150] sm:$0xff]   ;;  %v3603_v4 = vld [vmem:[%s3949_s22 + $0xe4] ss:$36 sps:$4 sm:$0xff]  }
  0x21   : > { %3161 = vmatprep.subr.bf16.mxu1 %v3549_v21  ;;  %v3595_v61 = vld [vmem:[%s4510_s1 + $0x118] sm:$0xff]   ;;  %v3599_v1 = vld [vmem:[%s4510_s1 + $0x110] sm:$0xff]   ;;  %v3607_v7 = vld [vmem:[%s3949_s22 + $0xe0] ss:$36 sps:$4 sm:$0xff]  }
  0x22   : > { %v3596_v62 = vld [vmem:[%s4510_s1 + $0x1d8] sm:$0xff]   ;;  %v3600_v2 = vld [vmem:[%s4510_s1 + $0x1d0] sm:$0xff]   ;;  %v3608_v8 = vld [vmem:[%s4510_s1 + $0x148] sm:$0xff]  }
  0x23   : > { %3122 = vmatpush3.bf16.msra.mxu0 %v3550_v22  ;;  %v3597_v63 = vld [vmem:[%s4510_s1 + $0x198] sm:$0xff]   ;;  %v3605_v5 = vld [vmem:[%s4510_s1 + $0x190] sm:$0xff]   ;;  %v3609_v9 = vld [vmem:[%s4510_s1 + $0x108] sm:$0xff]  }
  0x24   : > { %3162 = vmatpush3.bf16.msra.mxu1 %v3551_v23  ;;  %3123 = vmatprep.subr.bf16.mxu0 %v3552_v24  ;;  %v3601_v3 = vld [vmem:[%s3949_s22 + $0xdc] ss:$36 sps:$4 sm:$0xff]   ;;  %v3610_v10 = vld [vmem:[%s4510_s1 + $0x1c8] sm:$0xff]   ;;  %v3615_v15 = vld [vmem:[%s3949_s22 + $0x10] ss:$36 sps:$4 sm:$0xff]  }
  0x25   : > { %3163 = vmatprep.subr.bf16.mxu1 %v3553_v25  ;;  %v3606_v6 = vld [vmem:[%s3949_s22 + $0xd8] ss:$36 sps:$4 sm:$0xff]   ;;  %v3611_v11 = vld [vmem:[%s4510_s1 + $0x188] sm:$0xff]   ;;  %v3612_v12 = vld [vmem:[%s4510_s1 + $0x140] sm:$0xff]  }
  0x26   : > { %v3613_v13 = vld [vmem:[%s4510_s1 + $0x100] sm:$0xff]   ;;  %v3617_v16 = vld [vmem:[%s3949_s22 + $0x14] ss:$36 sps:$4 sm:$0xff]  }
  0x27   : > { %3124 = vmatpush3.bf16.msra.mxu0 %v3554_v26  ;;  %v3614_v14 = vld [vmem:[%s4510_s1 + $0x1c0] sm:$0xff]   ;;  %v3619_v18 = vld [vmem:[%s4510_s1 + $0x238] sm:$0xff]   ;;  %v3625_v23 = vld [vmem:[%s4510_s1 + $0x230] sm:$0xff]  }
  0x28   : > { %3164 = vmatpush3.bf16.msra.mxu1 %v3555_v27  ;;  %3125 = vmatprep.subr.bf16.mxu0 %v3556_v28  ;;  %v3618_v17 = vld [vmem:[%s4510_s1 + $0x180] sm:$0xff]   ;;  %v3620_v19 = vld [vmem:[%s3949_s22 + $0x18] ss:$36 sps:$4 sm:$0xff]   ;;  %v3626_v24 = vld [vmem:[%s4512_s3 + $0x70] sm:$0xff]  }
  0x29   : > { %3165 = vmatprep.subr.bf16.mxu1 %v3557_v29  ;;  %v3622_v20 = vld [vmem:[%s3949_s22 + $0x1c] ss:$36 sps:$4 sm:$0xff]   ;;  %v3629_v26 = vld [vmem:[%s4512_s3 + $0x30] sm:$0xff]   ;;  %v3631_v28 = vld [vmem:[%s4510_s1 + $0x228] sm:$0xff]  }
  0x2a   : > { %v3623_v21 = vld [vmem:[%s4512_s3 + $0x78] sm:$0xff]   ;;  %v3632_v29 = vld [vmem:[%s3949_s22 + $0x64] ss:$36 sps:$4 sm:$0xff]  }
  0x2b   : > { %3126 = vmatpush3.bf16.msra.mxu0 %v3558_v30  ;;  %v3624_v22 = vld [vmem:[%s4512_s3 + $0x38] sm:$0xff]   ;;  %v3634_v30 = vld [vmem:[%s3949_s22 + $0x60] ss:$36 sps:$4 sm:$0xff]  }
  0x2c   : > { %3166 = vmatpush3.bf16.msra.mxu1 %v3559_v31  ;;  %3191 = vmatprep.subr.bf16.mxu0 %v3566_v36  ;;  %v3627_v25 = vld [vmem:[%s3949_s22 + $0x5c] ss:$36 sps:$4 sm:$0xff]   ;;  %v3635_v31 = vld [vmem:[%s4512_s3 + $0x68] sm:$0xff]  }
  0x2d   : > { %3231 = vmatprep.subr.bf16.mxu1 %v3568_v38  ;;  %v3630_v27 = vld [vmem:[%s3949_s22 + $0x58] ss:$36 sps:$4 sm:$0xff]   ;;  %v3637_v33 = vld [vmem:[%s4510_s1 + $0x220] sm:$0xff]  }
  0x2e   : > { %1198 = vmatmul.mubr.bf16.vlgmr.msra.gmra.mxu0 %v3560_v32  ;;  %v3636_v32 = vld [vmem:[%s4512_s3 + $0x28] sm:$0xff]   ;;  %v3641_v36 = vld [vmem:[%s4512_s3 + $0x20] sm:$0xff]   ;;  %v3643_v38 = vld [vmem:[%s4510_s1 + $0x218] sm:$0xff]  }
  0x2f   : > { %1263 = vmatmul.mubr.bf16.vlgmr.msra.gmra.mxu1 %v3563_v34  ;;  %3192 = vmatpush3.bf16.msra.mxu0 %v3567_v37  ;;  %v3638_v34 = vld [vmem:[%s4512_s3 + $0x60] sm:$0xff]  }
  0x30   : > { %3232 = vmatpush3.bf16.msra.mxu1 %v3569_v39  ;;  %3193 = vmatprep.subr.bf16.mxu0 %v3570_v40  ;;  %v3639_v35 = vld [vmem:[%s3949_s22 + $0xa4] ss:$36 sps:$4 sm:$0xff]   ;;  %v3644_v39 = vld [vmem:[%s3949_s22 + $0xac] ss:$36 sps:$4 sm:$0xff]  }
  0x31   : > { %3233 = vmatprep.subr.bf16.mxu1 %v3572_v42  ;;  %1205 = vmatprep.mubr.bf16.mxu0 %v3573_v43  ;;  %v3642_v37 = vld [vmem:[%s3949_s22 + $0xa0] ss:$36 sps:$4 sm:$0xff]   ;;  %v3646_v40 = vld [vmem:[%s3949_s22 + $0xa8] ss:$36 sps:$4 sm:$0xff]   ;;  %v3648_v42 = vld [vmem:[%s4512_s3 + $0x18] sm:$0xff]  }
  0x32   : > { %1270 = vmatprep.mubr.bf16.mxu1 %v3575_v44  ;;  %v3649_v43 = vld [vmem:[%s4510_s1 + $0x210] sm:$0xff]  }
  0x33   : > { %3194 = vmatpush3.bf16.msra.mxu0 %v3571_v41  ;;  %v3647_v41 = vld [vmem:[%s4512_s3 + $0x58] sm:$0xff]   ;;  %v3650_v44 = vld [vmem:[%s4512_s3 + $0x50] sm:$0xff]  }
  0x34   : > { %3234 = vmatpush3.bf16.msra.mxu1 %v3577_v45  ;;  %3195 = vmatprep.subr.bf16.mxu0 %v3580_v48  ;;  %v3651_v45 = vld [vmem:[%s3949_s22 + $0xec] ss:$36 sps:$4 sm:$0xff]  }
  0x35   : > { %3235 = vmatprep.subr.bf16.mxu1 %v3582_v50  ;;  %v3655_v48 = vld [vmem:[%s4510_s1 + $0x208] sm:$0xff]   ;;  %v3658_v50 = vld [vmem:[%s3949_s22 + $0xf0] ss:$36 sps:$4 sm:$0xff]  }
  0x36   : > { %1206 = vmatmul.mubr.bf16.gmra.mxu0 %v3578_v46  ;;  %v3653_v46 = vld [vmem:[%s4512_s3 + $0x10] sm:$0xff]  }
  0x37   : > { %1271 = vmatmul.mubr.bf16.gmra.mxu1 %v3579_v47  ;;  %3196 = vmatpush3.bf16.msra.mxu0 %v3581_v49  ;;  %v3654_v47 = vld [vmem:[%s3949_s22 + $0xe8] ss:$36 sps:$4 sm:$0xff]   ;;  %v3656_v49 = vld [vmem:[%s3949_s22 + $0xf4] ss:$36 sps:$4 sm:$0xff]  }
  0x38   : > { %3236 = vmatpush3.bf16.msra.mxu1 %v3583_v51  ;;  %3197 = vmatprep.subr.bf16.mxu0 %v3584_v52  ;;  %v3659_v51 = vld [vmem:[%s4512_s3 + $0x48] sm:$0xff]  }
  0x39   : > { %3237 = vmatprep.subr.bf16.mxu1 %v3586_v54  ;;  %1213 = vmatprep.mubr.bf16.mxu0 %v3587_v55  ;;  %v3660_v52 = vld [vmem:[%s4512_s3 + $0x8] sm:$0xff]   ;;  %v3662_v54 = vld [vmem:[%s4512_s3 + $0x40] sm:$0xff]  }
  0x3a   : > { %1278 = vmatprep.mubr.bf16.mxu1 %v3589_v56  ;;  %v3663_v55 = vld [vmem:[%s3949_s22 + $0x20] ss:$36 sps:$4 sm:$0xff]  }
  0x3b   : > { %3198 = vmatpush3.bf16.msra.mxu0 %v3585_v53  ;;  %v3661_v53 = vld [vmem:[%s4510_s1 + $0x200] sm:$0xff]  }
  0x3c   : > { %3238 = vmatpush3.bf16.msra.mxu1 %v3591_v57  ;;  %3199 = vmatprep.subr.bf16.mxu0 %v3594_v60  ;;  %v3664_v56 = vld [vmem:[%s4512_s3] sm:$0xff]   ;;  %v3665_v57 = vld [vmem:[%s3949_s22 + $0x68] ss:$36 sps:$4 sm:$0xff]  }
  0x3d   : > { %3239 = vmatprep.subr.bf16.mxu1 %v3596_v62  ;;  %v3669_v60 = vld [vmem:[%s4163_s27 + $0x4] ss:$36 sps:$4 sm:$0xff]   ;;  %v3671_v62 = vld [vmem:[%s4512_s3 + $0x178] sm:$0xff]  }
  0x3e   : > { %1214 = vmatmul.mubr.bf16.gmra.mxu0 %v3592_v58  ;;  %v3666_v58 = vld [vmem:[%s4512_s3 + $0xf8] sm:$0xff]  }
  0x3f   : > { %1279 = vmatmul.mubr.bf16.gmra.mxu1 %v3593_v59  ;;  %3200 = vmatpush3.bf16.msra.mxu0 %v3595_v61  ;;  %v3667_v59 = vld [vmem:[%s4163_s27] ss:$36 sps:$4 sm:$0xff]   ;;  %v3670_v61 = vld [vmem:[%s4512_s3 + $0xb8] sm:$0xff]  }
  0x40   : > { %3240 = vmatpush3.bf16.msra.mxu1 %v3597_v63  ;;  %3201 = vmatprep.subr.bf16.mxu0 %v3598_v0  ;;  %v3672_v63 = vld [vmem:[%s4512_s3 + $0x138] sm:$0xff]   ;;  %v3673_v0 = vld [vmem:[%s4512_s3 + $0xf0] sm:$0xff]  }
  0x41   : > { %3241 = vmatprep.subr.bf16.mxu1 %v3600_v2  ;;  %1221 = vmatprep.mubr.bf16.mxu0 %v3601_v3  ;;  %v3675_v2 = vld [vmem:[%s4512_s3 + $0x170] sm:$0xff]  }
  0x42   : > { %1286 = vmatprep.mubr.bf16.mxu1 %v3603_v4  ;;  %v3676_v3 = vld [vmem:[%s3949_s22 + $0xb0] ss:$36 sps:$4 sm:$0xff]  }
  0x43   : > { %3202 = vmatpush3.bf16.msra.mxu0 %v3599_v1  ;;  %v3674_v1 = vld [vmem:[%s4512_s3 + $0xb0] sm:$0xff]  }
  0x44   : > { %3242 = vmatpush3.bf16.msra.mxu1 %v3605_v5  ;;  %3203 = vmatprep.subr.bf16.mxu0 %v3608_v8  ;;  %v3677_v4 = vld [vmem:[%s4512_s3 + $0x130] sm:$0xff]   ;;  %v3678_v5 = vld [vmem:[%s3949_s22 + $0xf8] ss:$36 sps:$4 sm:$0xff]   ;;  %v3682_v8 = vld [vmem:[%s4512_s3 + $0xa8] sm:$0xff]  }
  0x45   : > { %3243 = vmatprep.subr.bf16.mxu1 %v3610_v10  ;;  %v3684_v10 = vld [vmem:[%s4512_s3 + $0x168] sm:$0xff]  }
  0x46   : > { %1222 = vmatmul.mubr.bf16.gmra.mxu0 %v3606_v6  ;;  %v3679_v6 = vld [vmem:[%s4512_s3 + $0xe8] sm:$0xff]  }
  0x47   : > { %1287 = vmatmul.mubr.bf16.gmra.mxu1 %v3607_v7  ;;  %3204 = vmatpush3.bf16.msra.mxu0 %v3609_v9  ;;  %v3680_v7 = vld [vmem:[%s4163_s27 + $0x4c] ss:$36 sps:$4 sm:$0xff]  }
  0x48   : > { %3244 = vmatpush3.bf16.msra.mxu1 %v3611_v11  ;;  %3205 = vmatprep.subr.bf16.mxu0 %v3612_v12  ;;  %v3683_v9 = vld [vmem:[%s4163_s27 + $0x48] ss:$36 sps:$4 sm:$0xff]   ;;  %v3686_v12 = vld [vmem:[%s4512_s3 + $0xe0] sm:$0xff]  }
  0x49   : > { %3245 = vmatprep.subr.bf16.mxu1 %v3614_v14  ;;  %1327 = vmatprep.mubr.bf16.mxu0 %v3617_v16  ;;  %v3685_v11 = vld [vmem:[%s4512_s3 + $0x128] sm:$0xff]   ;;  %v3688_v14 = vld [vmem:[%s4512_s3 + $0x160] sm:$0xff]   ;;  %v3690_v16 = vld [vmem:[%s4512_s3 + $0xd8] sm:$0xff]  }
  0x4a   : > { %1392 = vmatprep.mubr.bf16.mxu1 %v3622_v20  ;;  %v3695_v20 = vld [vmem:[%s4512_s3 + $0x158] sm:$0xff]  }
  0x4b   : > { %3206 = vmatpush3.bf16.msra.mxu0 %v3613_v13  ;;  %v3687_v13 = vld [vmem:[%s4512_s3 + $0xa0] sm:$0xff]  }
  0x4c   : > { %3246 = vmatpush3.bf16.msra.mxu1 %v3618_v17  ;;  %3455 = vmatprep.subr.bf16.mxu0 %v3619_v18  ;;  %v3691_v17 = vld [vmem:[%s4163_s27 + $0x94] ss:$36 sps:$4 sm:$0xff]  }
  0x4d   : > { %3283 = vmatprep.subr.bf16.mxu1 %v3623_v21  ;;  %v3696_v21 = vld [vmem:[%s4512_s3 + $0x118] sm:$0xff]  }
  0x4e   : > { %1328 = vmatmul.mubr.bf16.vlgmr.msra.gmra.mxu0 %v3615_v15  ;;  %v3689_v15 = vld [vmem:[%s4512_s3 + $0x120] sm:$0xff]  }
  0x4f   : > { %3456 = vmatpush3.bf16.msra.mxu0 %v3619_v18  ;;  %1393 = vmatmul.mubr.bf16.vlgmr.msra.gmra.mxu1 %v3620_v19  ;;  %v3693_v18 = vld [vmem:[%s4512_s3 + $0x98] sm:$0xff]   ;;  %v3694_v19 = vld [vmem:[%s4163_s27 + $0x90] ss:$36 sps:$4 sm:$0xff]  }
  0x50   : > { %3284 = vmatpush3.bf16.msra.mxu1 %v3624_v22  ;;  %3457 = vmatprep.subr.bf16.mxu0 %v3625_v23  ;;  %v3697_v22 = vld [vmem:[%s4512_s3 + $0xd0] sm:$0xff]  }
  0x51   : > { %3285 = vmatprep.subr.bf16.mxu1 %v3626_v24  ;;  %1335 = vmatprep.mubr.bf16.mxu0 %v3627_v25  ;;  %v3699_v24 = vld [vmem:[%s4512_s3 + $0x150] sm:$0xff]  }
  0x52   : > { %1400 = vmatprep.mubr.bf16.mxu1 %v3632_v29  ;;  %v3700_v25 = vld [vmem:[%s4512_s3 + $0x110] sm:$0xff]   ;;  %v3705_v29 = vld [vmem:[%s4163_s27 + $0xd8] ss:$36 sps:$4 sm:$0xff]  }
  0x53   : > { %3458 = vmatpush3.bf16.msra.mxu0 %v3625_v23  ;;  %v3698_v23 = vld [vmem:[%s4512_s3 + $0x90] sm:$0xff]  }
  0x54   : > { %3286 = vmatpush3.bf16.msra.mxu1 %v3629_v26  ;;  %3459 = vmatprep.subr.bf16.mxu0 %v3631_v28  ;;  %v3701_v26 = vld [vmem:[%s4512_s3 + $0xc8] sm:$0xff]  }
  0x55   : > { %3287 = vmatprep.subr.bf16.mxu1 %v3635_v31  ;;  %v3707_v31 = vld [vmem:[%s4512_s3 + $0x108] sm:$0xff]  }
  0x56   : > { %1336 = vmatmul.mubr.bf16.gmra.mxu0 %v3630_v27  ;;  %v3702_v27 = vld [vmem:[%s4163_s27 + $0xdc] ss:$36 sps:$4 sm:$0xff]  }
  0x57   : > { %3460 = vmatpush3.bf16.msra.mxu0 %v3631_v28  ;;  %1401 = vmatmul.mubr.bf16.gmra.mxu1 %v3634_v30  ;;  %v3704_v28 = vld [vmem:[%s4512_s3 + $0x88] sm:$0xff]  }
  0x58   : > { %3288 = vmatpush3.bf16.msra.mxu1 %v3636_v32  ;;  %3461 = vmatprep.subr.bf16.mxu0 %v3637_v33  ;;  %v3706_v30 = vld [vmem:[%s4512_s3 + $0x148] sm:$0xff]   ;;  %v3708_v32 = vld [vmem:[%s4512_s3 + $0xc0] sm:$0xff]  }
  0x59   : > { %3289 = vmatprep.subr.bf16.mxu1 %v3638_v34  ;;  %1343 = vmatprep.mubr.bf16.mxu0 %v3639_v35  ;;  %v3710_v34 = vld [vmem:[%s4512_s3 + $0x140] sm:$0xff]   ;;  %v3711_v35 = vld [vmem:[%s4163_s27 + $0x8] ss:$36 sps:$4 sm:$0xff]  }
  0x5a   : > { %1408 = vmatprep.mubr.bf16.mxu1 %v3644_v39  ;;  %v3716_v39 = vld [vmem:[%s4163_s27 + $0x10] ss:$36 sps:$4 sm:$0xff]  }
  0x5b   : > { %3462 = vmatpush3.bf16.msra.mxu0 %v3637_v33  ;;  %v3709_v33 = vld [vmem:[%s4512_s3 + $0x80] sm:$0xff]  }
  0x5c   : > { %3290 = vmatpush3.bf16.msra.mxu1 %v3641_v36  ;;  %3463 = vmatprep.subr.bf16.mxu0 %v3643_v38  ;;  %v3713_v36 = vld [vmem:[%s4163_s27 + $0xc] ss:$36 sps:$4 sm:$0xff]  }
  0x5d   : > { %3291 = vmatprep.subr.bf16.mxu1 %v3647_v41  ;;  %v3719_v41 = vld [vmem:[%s4512_s3 + $0x1b8] sm:$0xff]  }
  0x5e   : > { %1344 = vmatmul.mubr.bf16.gmra.mxu0 %v3642_v37  ;;  %v3714_v37 = vld [vmem:[%s4512_s3 + $0x100] sm:$0xff]  }
  0x5f   : > { %3464 = vmatpush3.bf16.msra.mxu0 %v3643_v38  ;;  %1409 = vmatmul.mubr.bf16.gmra.mxu1 %v3646_v40  ;;  %v3715_v38 = vld [vmem:[%s4512_s3 + $0x1f8] sm:$0xff]  }
  0x60   : > { %3292 = vmatpush3.bf16.msra.mxu1 %v3648_v42  ;;  %3465 = vmatprep.subr.bf16.mxu0 %v3649_v43  ;;  %v3718_v40 = vld [vmem:[%s4163_s27 + $0x14] ss:$36 sps:$4 sm:$0xff]  }
  0x61   : > { %3293 = vmatprep.subr.bf16.mxu1 %v3650_v44  ;;  %1351 = vmatprep.mubr.bf16.mxu0 %v3651_v45  ;;  %v3720_v42 = vld [vmem:[%s4512_s3 + $0x1f0] sm:$0xff]  }
  0x62   : > { %1416 = vmatprep.mubr.bf16.mxu1 %v3656_v49  ;;  %v3722_v44 = vld [vmem:[%s4512_s3 + $0x1b0] sm:$0xff]   ;;  %v3728_v49 = vld [vmem:[%s4163_s27 + $0x5c] ss:$36 sps:$4 sm:$0xff]  }
  0x63   : > { %3466 = vmatpush3.bf16.msra.mxu0 %v3649_v43  ;;  %v3721_v43 = vld [vmem:[%s4512_s3 + $0x238] sm:$0xff]  }
  0x64   : > { %3294 = vmatpush3.bf16.msra.mxu1 %v3653_v46  ;;  %3467 = vmatprep.subr.bf16.mxu0 %v3655_v48  ;;  %v3723_v45 = vld [vmem:[%s4163_s27 + $0x54] ss:$36 sps:$4 sm:$0xff]  }
  0x65   : > { %3295 = vmatprep.subr.bf16.mxu1 %v3659_v51  ;;  %v3725_v46 = vld [vmem:[%s4163_s27 + $0x50] ss:$36 sps:$4 sm:$0xff]   ;;  %v3731_v51 = vld [vmem:[%s4163_s27 + $0x58] ss:$36 sps:$4 sm:$0xff]  }
  0x66   : > { %1352 = vmatmul.mubr.bf16.gmra.mxu0 %v3654_v47  ;;  %v3726_v47 = vld [vmem:[%s4512_s3 + $0x1e8] sm:$0xff]  }
  0x67   : > { %3468 = vmatpush3.bf16.msra.mxu0 %v3655_v48  ;;  %1417 = vmatmul.mubr.bf16.gmra.mxu1 %v3658_v50  ;;  %v3727_v48 = vld [vmem:[%s4512_s3 + $0x230] sm:$0xff]   ;;  %v3730_v50 = vld [vmem:[%s4512_s3 + $0x1a8] sm:$0xff]  }
  0x68   : > { %3296 = vmatpush3.bf16.msra.mxu1 %v3660_v52  ;;  %3469 = vmatprep.subr.bf16.mxu0 %v3661_v53  ;;  %v3732_v52 = vld [vmem:[%s4512_s3 + $0x1e0] sm:$0xff]  }
  0x69   : > { %3297 = vmatprep.subr.bf16.mxu1 %v3662_v54  ;;  %3471 = vmatprep.mubr.bf16.mxu0 %v3663_v55  ;;  %v3734_v54 = vld [vmem:[%s4512_s3 + $0x1a0] sm:$0xff]  }
  0x6a   : > { %2346 = vmatprep.mubr.bf16.mxu1 %v3669_v60  ;;  %v3735_v55 = vld [vmem:[%s4163_s27 + $0x9c] ss:$36 sps:$4 sm:$0xff]  }
  0x6b   : > { %3470 = vmatpush3.bf16.msra.mxu0 %v3661_v53  ;;  %v3733_v53 = vld [vmem:[%s4512_s3 + $0x228] sm:$0xff]   ;;  %v3742_v60 = vld [vmem:[%s4512_s3 + $0x198] sm:$0xff]  }
  0x6c   : > { %3298 = vmatpush3.bf16.msra.mxu1 %v3664_v56  ;;  %3323 = vmatprep.subr.bf16.mxu0 %v3666_v58  ;;  %v3737_v56 = vld [vmem:[%s4163_s27 + $0x98] ss:$36 sps:$4 sm:$0xff]   ;;  %v3739_v58 = vld [vmem:[%s4512_s3 + $0x220] sm:$0xff]  }
  0x6d   : > { %3363 = vmatprep.subr.bf16.mxu1 %v3671_v62  ;;  %v3744_v62 = vld [vmem:[%s4512_s3 + $0x1d0] sm:$0xff]  }
  0x6e   : > { %3472 = vmatmul.mubr.bf16.vlgmr.msra.gmra.mxu0 %v3665_v57  ;;  %v3738_v57 = vld [vmem:[%s4512_s3 + $0x1d8] sm:$0xff]  }
  0x6f   : > { %3324 = vmatpush3.bf16.msra.mxu0 %v3670_v61  ;;  %2347 = vmatmul.mubr.bf16.vlgmr.msra.gmra.mxu1 %v3667_v59  ;;  %v3740_v59 = vld [vmem:[%s4163_s27 + $0xa4] ss:$36 sps:$4 sm:$0xff]  }
  0x70   : > { %3364 = vmatpush3.bf16.msra.mxu1 %v3672_v63  ;;  %3325 = vmatprep.subr.bf16.mxu0 %v3673_v0  ;;  %v3743_v61 = vld [vmem:[%s4163_s27 + $0xa0] ss:$36 sps:$4 sm:$0xff]   ;;  %v3745_v63 = vld [vmem:[%s4512_s3 + $0x218] sm:$0xff]   ;;  %v3746_v0 = vld [vmem:[%s4512_s3 + $0x190] sm:$0xff]  }
  0x71   : > { %3365 = vmatprep.subr.bf16.mxu1 %v3675_v2  ;;  %3475 = vmatprep.mubr.bf16.mxu0 %v3676_v3  ;;  %v3749_v2 = vld [vmem:[%s4163_s27 + $0xe0] ss:$36 sps:$4 sm:$0xff]   ;;  %v3750_v3 = vld [vmem:[%s4512_s3 + $0x1c8] sm:$0xff]  }
  0x72   : > { %2354 = vmatprep.mubr.bf16.mxu1 %v3680_v7  ;;  %v3755_v7 = vld [vmem:[%s4163_s27 + $0xe8] ss:$36 sps:$4 sm:$0xff]  }
  0x73   : > { %3326 = vmatpush3.bf16.msra.mxu0 %v3674_v1  ;;  %v3747_v1 = vld [vmem:[%s4163_s27 + $0xe4] ss:$36 sps:$4 sm:$0xff]  }
  0x74   : > { %3366 = vmatpush3.bf16.msra.mxu1 %v3677_v4  ;;  %3327 = vmatprep.subr.bf16.mxu0 %v3679_v6  ;;  %v3751_v4 = vld [vmem:[%s4512_s3 + $0x210] sm:$0xff]   ;;  %v3754_v6 = vld [vmem:[%s4512_s3 + $0x188] sm:$0xff]  }
  0x75   : > { %3367 = vmatprep.subr.bf16.mxu1 %v3684_v10  ;;  %v3758_v10 = vld [vmem:[%s4512_s3 + $0x180] sm:$0xff]  }
  0x76   : > { %3476 = vmatmul.mubr.bf16.gmra.mxu0 %v3678_v5  ;;  %v3752_v5 = vld [vmem:[%s4163_s27 + $0xec] ss:$36 sps:$4 sm:$0xff]  }
  0x77   : > { %3328 = vmatpush3.bf16.msra.mxu0 %v3682_v8  ;;  %2355 = vmatmul.mubr.bf16.gmra.mxu1 %v3683_v9  ;;  %v3756_v8 = vld [vmem:[%s4512_s3 + $0x1c0] sm:$0xff]   ;;  %v3757_v9 = vld [vmem:[%s4512_s3 + $0x208] sm:$0xff]  }
  0x78   : > { %3368 = vmatpush3.bf16.msra.mxu1 %v3685_v11  ;;  %3329 = vmatprep.subr.bf16.mxu0 %v3686_v12  ;;  %v3759_v11 = vld [vmem:[%s4163_s27 + $0x18] ss:$36 sps:$4 sm:$0xff]  }
  0x79   : > { %3369 = vmatprep.subr.bf16.mxu1 %v3688_v14  ;;  %2362 = vmatprep.mubr.bf16.mxu1 %v3691_v17  ;;  %v3761_v12 = vld [vmem:[%s4163_s27 + $0x1c] ss:$36 sps:$4 sm:$0xff]   ;;  %v3771_v17 = vld [vmem:[%s4163_s27 + $0xb0] ss:$36 sps:$4 sm:$0xff]  }
  0x7a   : > { %2411 = vmatprep.mubr.bf16.mxu0 %v3713_v36  ;;  %v3763_v14 = vld [vmem:[%s4163_s27 + $0x20] ss:$36 sps:$4 sm:$0xff]  }
  0x7b   : > { %3330 = vmatpush3.bf16.msra.mxu0 %v3687_v13  ;;  %v3762_v13 = vld [vmem:[%s4512_s3 + $0x200] sm:$0xff]  }
  0x7c   : > { %3370 = vmatpush3.bf16.msra.mxu1 %v3689_v15  ;;  %3331 = vmatprep.subr.bf16.mxu0 %v3690_v16  ;;  %v3764_v15 = vld [vmem:[%s4163_s27 + $0x68] ss:$36 sps:$4 sm:$0xff]  }
  0x7d   : > { %3371 = vmatprep.subr.bf16.mxu1 %v3695_v20  ;;  %v3765_v16 = vld [vmem:[%s4163_s27 + $0x64] ss:$36 sps:$4 sm:$0xff]   ;;  %v3772_v20 = vld [vmem:[%s4163_s27 + $0xf8] ss:$36 sps:$4 sm:$0xff]  }
  0x7f   : > { %3332 = vmatpush3.bf16.msra.mxu0 %v3693_v18  ;;  %2363 = vmatmul.mubr.bf16.gmra.mxu1 %v3694_v19  ;;  %v3767_v18 = vld [vmem:[%s4163_s27 + $0x60] ss:$36 sps:$4 sm:$0xff]   ;;  %v3768_v19 = vld [vmem:[%s4163_s27 + $0xac] ss:$36 sps:$4 sm:$0xff]  }
  0x80   : > { %3372 = vmatpush3.bf16.msra.mxu1 %v3696_v21  ;;  %3333 = vmatprep.subr.bf16.mxu0 %v3697_v22  ;;  %v3770_v21 = vld [vmem:[%s4163_s27 + $0xa8] ss:$36 sps:$4 sm:$0xff]   ;;  %v3773_v22 = vld [vmem:[%s4163_s27 + $0xf4] ss:$36 sps:$4 sm:$0xff]  }
  0x81   : > { %3373 = vmatprep.subr.bf16.mxu1 %v3699_v24  ;;  %2370 = vmatprep.mubr.bf16.mxu1 %v3702_v27 }
  0x83   : > { %3334 = vmatpush3.bf16.msra.mxu0 %v3698_v23  ;;  %v3775_v23 = vld [vmem:[%s4163_s27 + $0xf0] ss:$36 sps:$4 sm:$0xff]  }
  0x84   : > { %3374 = vmatpush3.bf16.msra.mxu1 %v3700_v25  ;;  %3335 = vmatprep.subr.bf16.mxu0 %v3701_v26 }
  0x85   : > { %3375 = vmatprep.subr.bf16.mxu1 %v3706_v30 }
  0x87   : > { %3336 = vmatpush3.bf16.msra.mxu0 %v3704_v28  ;;  %2371 = vmatmul.mubr.bf16.gmra.mxu1 %v3705_v29 }
  0x88   : > { %3376 = vmatpush3.bf16.msra.mxu1 %v3707_v31  ;;  %3337 = vmatprep.subr.bf16.mxu0 %v3708_v32 }
  0x89   : > { %3377 = vmatprep.subr.bf16.mxu1 %v3710_v34  ;;  %2476 = vmatprep.mubr.bf16.mxu1 %v3718_v40 }
  0x8b   : > { %3338 = vmatpush3.bf16.msra.mxu0 %v3709_v33 }
  0x8c   : > { %3378 = vmatpush3.bf16.msra.mxu1 %v3714_v37  ;;  %3403 = vmatprep.subr.bf16.mxu0 %v3715_v38 }
  0x8d   : > { %3479 = vmatprep.subr.bf16.mxu1 %v3721_v43 }
  0x8e   : > { %2412 = vmatmul.mubr.bf16.vlgmr.msra.gmra.mxu0 %v3711_v35 }
  0x8f   : > { %3404 = vmatpush3.bf16.msra.mxu0 %v3719_v41  ;;  %2477 = vmatmul.mubr.bf16.vlgmr.msra.gmra.mxu1 %v3716_v39 }
  0x90   : > { %3405 = vmatprep.subr.bf16.mxu0 %v3720_v42  ;;  %3480 = vmatpush3.bf16.msra.mxu1 %v3721_v43 }
  0x91   : > { %2419 = vmatprep.mubr.bf16.mxu0 %v3723_v45  ;;  %3481 = vmatprep.subr.bf16.mxu1 %v3727_v48 }
  0x92   : > { %2484 = vmatprep.mubr.bf16.mxu1 %v3728_v49 }
  0x93   : > { %3406 = vmatpush3.bf16.msra.mxu0 %v3722_v44 }
  0x94   : > { %3407 = vmatprep.subr.bf16.mxu0 %v3726_v47  ;;  %3482 = vmatpush3.bf16.msra.mxu1 %v3727_v48 }
  0x95   : > { %3483 = vmatprep.subr.bf16.mxu1 %v3733_v53 }
  0x96   : > { %2420 = vmatmul.mubr.bf16.gmra.mxu0 %v3725_v46 }
  0x97   : > { %3408 = vmatpush3.bf16.msra.mxu0 %v3730_v50  ;;  %2485 = vmatmul.mubr.bf16.gmra.mxu1 %v3731_v51 }
  0x98   : > { %3409 = vmatprep.subr.bf16.mxu0 %v3732_v52  ;;  %3484 = vmatpush3.bf16.msra.mxu1 %v3733_v53 }
  0x99   : > { %2427 = vmatprep.mubr.bf16.mxu0 %v3735_v55  ;;  %3485 = vmatprep.subr.bf16.mxu1 %v3739_v58 }
  0x9a   : > { %2492 = vmatprep.mubr.bf16.mxu1 %v3740_v59 }
  0x9b   : > { %3410 = vmatpush3.bf16.msra.mxu0 %v3734_v54 }
  0x9c   : > { %3411 = vmatprep.subr.bf16.mxu0 %v3738_v57  ;;  %3486 = vmatpush3.bf16.msra.mxu1 %v3739_v58 }
  0x9d   : > { %3487 = vmatprep.subr.bf16.mxu1 %v3745_v63 }
  0x9e   : > { %2428 = vmatmul.mubr.bf16.gmra.mxu0 %v3737_v56 }
  0x9f   : > { %3412 = vmatpush3.bf16.msra.mxu0 %v3742_v60  ;;  %2493 = vmatmul.mubr.bf16.gmra.mxu1 %v3743_v61 }
  0xa0   : > { %3413 = vmatprep.subr.bf16.mxu0 %v3744_v62  ;;  %3488 = vmatpush3.bf16.msra.mxu1 %v3745_v63 }
  0xa1   : > { %2435 = vmatprep.mubr.bf16.mxu0 %v3747_v1  ;;  %3489 = vmatprep.subr.bf16.mxu1 %v3751_v4 }
  0xa2   : > { %2500 = vmatprep.mubr.bf16.mxu1 %v3752_v5 }
  0xa3   : > { %3414 = vmatpush3.bf16.msra.mxu0 %v3746_v0 }
  0xa4   : > { %3415 = vmatprep.subr.bf16.mxu0 %v3750_v3  ;;  %3490 = vmatpush3.bf16.msra.mxu1 %v3751_v4 }
  0xa5   : > { %3491 = vmatprep.subr.bf16.mxu1 %v3757_v9 }
  0xa6   : > { %2436 = vmatmul.mubr.bf16.gmra.mxu0 %v3749_v2 }
  0xa7   : > { %3416 = vmatpush3.bf16.msra.mxu0 %v3754_v6  ;;  %2501 = vmatmul.mubr.bf16.gmra.mxu1 %v3755_v7 }
  0xa8   : > { %3417 = vmatprep.subr.bf16.mxu0 %v3756_v8  ;;  %3492 = vmatpush3.bf16.msra.mxu1 %v3757_v9 }
  0xa9   : > { %2541 = vmatprep.mubr.bf16.mxu0 %v3761_v12  ;;  %3493 = vmatprep.subr.bf16.mxu1 %v3762_v13 }
  0xaa   : > { %3495 = vmatprep.mubr.bf16.mxu1 %v3763_v14 }
  0xab   : > { %3418 = vmatpush3.bf16.msra.mxu0 %v3758_v10 }
  0xac   : > { %3494 = vmatpush3.bf16.msra.mxu1 %v3762_v13 }
  0xae   : > { %2542 = vmatmul.mubr.bf16.vlgmr.msra.gmra.mxu0 %v3759_v11 }
  0xaf   : > { %2549 = vmatprep.mubr.bf16.mxu0 %v3765_v16  ;;  %3496 = vmatmul.mubr.bf16.vlgmr.msra.gmra.mxu1 %v3764_v15 }
  0xb0   : > { %3499 = vmatprep.mubr.bf16.mxu1 %v3771_v17 }
  0xb6   : > { %2550 = vmatmul.mubr.bf16.gmra.mxu0 %v3767_v18 }
  0xb7   : > { %2557 = vmatprep.mubr.bf16.mxu0 %v3768_v19  ;;  %3500 = vmatmul.mubr.bf16.gmra.mxu1 %v3772_v20 }
  0xbe   : > { %2558 = vmatmul.mubr.bf16.gmra.mxu0 %v3770_v21 }
  0xbf   : > { %2565 = vmatprep.mubr.bf16.mxu0 %v3773_v22 }
  0xc6   : > { %2566 = vmatmul.mubr.bf16.gmra.mxu0 %v3775_v23 }
  0xee   : > { %v3127_v24 = vpop.f32.mrf.mxu0 }
  0xef   : > { %v3167_v25 = vpop.f32.mrf.mxu1 }
  0xf0   : > { %v3128_v26 = vpop.f32.mrf.mxu0 }
  0xf1   : > { %v3129_v27 = vadd.f32 %v3128_v26, %v3127_v24  ;;  %v3168_v28 = vpop.f32.mrf.mxu1 }
  0xf2   : > { %v3169_v29 = vadd.f32 %v3168_v28, %v3167_v25  ;;  %v3130_v30 = vpop.f32.mrf.mxu0 }
  0xf3   : > { %v3170_v31 = vpop.f32.mrf.mxu1 }
  0xf4   : > { %v1265_v32 = vadd.f32 %v3169_v29, %v3129_v27  ;;  %v3131_v33 = vpop.f32.mrf.mxu0 }
  0xf5   : > { %v3132_v34 = vadd.f32 %v3131_v33, %v3130_v30  ;;  %v3171_v35 = vpop.f32.mrf.mxu1 }
  0xf6   : > { %v3172_v36 = vadd.f32 %v3171_v35, %v3170_v31  ;;  %v3133_v38 = vpop.f32.mrf.mxu0 }
  0xf7   : > { %v3173_v39 = vpop.f32.mrf.mxu1 }
  0xf8   : > { %v1268_v37 = vadd.f32 %v3172_v36, %v3132_v34  ;;  %v3134_v40 = vpop.f32.mrf.mxu0 }
  0xf9   : > { %v3135_v41 = vadd.f32 %v3134_v40, %v3133_v38  ;;  %v3174_v42 = vpop.f32.mrf.mxu1 }
  0xfa   : > { %v3175_v43 = vadd.f32 %v3174_v42, %v3173_v39  ;;  %v3136_v44 = vpop.f32.mrf.mxu0 }
  0xfb   : > { %v3176_v45 = vpop.f32.mrf.mxu1 }
  0xfc   : > { %v1273_v46 = vadd.f32 %v3175_v43, %v3135_v41  ;;  %v3137_v47 = vpop.f32.mrf.mxu0 }
  0xfd   : > { %v3138_v48 = vadd.f32 %v3137_v47, %v3136_v44  ;;  %v3177_v49 = vpop.f32.mrf.mxu1 }
  0xfe   : > { %v3178_v50 = vadd.f32 %v3177_v49, %v3176_v45  ;;  %v3139_v52 = vpop.f32.mrf.mxu0 }
  0xff   : > { %v3179_v53 = vpop.f32.mrf.mxu1 }
 0x100   : > { %v1276_v51 = vadd.f32 %v3178_v50, %v3138_v48  ;;  %v3140_v54 = vpop.f32.mrf.mxu0 }
 0x101   : > { %v3141_v55 = vadd.f32 %v3140_v54, %v3139_v52  ;;  %v3180_v56 = vpop.f32.mrf.mxu1 }
 0x102   : > { %v3181_v57 = vadd.f32 %v3180_v56, %v3179_v53  ;;  %v3142_v58 = vpop.f32.mrf.mxu0 }
 0x103   : > { %v3182_v59 = vpop.f32.mrf.mxu1 }
 0x104   : > { %v1281_v60 = vadd.f32 %v3181_v57, %v3141_v55  ;;  %v3143_v61 = vpop.f32.mrf.mxu0 }
 0x105   : > { %v3144_v62 = vadd.f32 %v3143_v61, %v3142_v58  ;;  %v3183_v63 = vpop.f32.mrf.mxu1 }
 0x106   : > { %v3184_v0 = vadd.f32 %v3183_v63, %v3182_v59  ;;  %v3145_v2 = vpop.f32.mrf.mxu0 }
 0x107   : > { %v3185_v3 = vpop.f32.mrf.mxu1 }
 0x108   : > { %v1284_v1 = vadd.f32 %v3184_v0, %v3144_v62  ;;  %v3146_v4 = vpop.f32.mrf.mxu0 }
 0x109   : > { %v3186_v5 = vpop.f32.mrf.mxu1  ;;  %v3147_v6 = vadd.f32 %v3146_v4, %v3145_v2 }
 0x10a   : > { %v3187_v7 = vadd.f32 %v3186_v5, %v3185_v3  ;;  %v3148_v8 = vpop.f32.mrf.mxu0 }
 0x10b   : > { %v3188_v9 = vpop.f32.mrf.mxu1 }
 0x10c   : > { %v1289_v10 = vadd.f32 %v3187_v7, %v3147_v6  ;;  %v3149_v11 = vpop.f32.mrf.mxu0 }
 0x10d   : > { %v3189_v12 = vpop.f32.mrf.mxu1  ;;  %v3150_v13 = vadd.f32 %v3149_v11, %v3148_v8 }
 0x10e   : > { %v3190_v14 = vadd.f32 %v3189_v12, %v3188_v9  ;;  %v3207_v16 = vpop.f32.mrf.mxu0 }
 0x10f   : > { %v3247_v19 = vpop.f32.mrf.mxu1 }
 0x110   : > { %v1292_v15 = vadd.f32 %v3190_v14, %v3150_v13  ;;  %v3208_v17 = vpop.f32.mrf.mxu0 }
 0x111   : > { %v3209_v18 = vadd.f32 %v3208_v17, %v3207_v16  ;;  %v3248_v22 = vpop.f32.mrf.mxu1 }
 0x112   : > { %v3210_v20 = vpop.f32.mrf.mxu0  ;;  %v3249_v24 = vadd.f32 %v3248_v22, %v3247_v19 }
 0x113   : > { %v1330_v21 = vadd.f32 %v3209_v18, %v1265_v32  ;;  %v3250_v26 = vpop.f32.mrf.mxu1 }
 0x114   : > { %v3211_v23 = vpop.f32.mrf.mxu0 }
 0x115   : > { %v3212_v25 = vadd.f32 %v3211_v23, %v3210_v20  ;;  %v4372_v29 = vadd.f32 %v3249_v24, %v1330_v21  ;;  %v3251_v30 = vpop.f32.mrf.mxu1 }
 0x116   : > { %v3213_v28 = vpop.f32.mrf.mxu0  ;;  %v3252_v31 = vadd.f32 %v3251_v30, %v3250_v26 }
 0x117   : > { %v1333_v27 = vadd.f32 %v3212_v25, %v1268_v37  ;;  %v3253_v35 = vpop.f32.mrf.mxu1 }
 0x118   : > { %v3214_v33 = vpop.f32.mrf.mxu0 }
 0x119   : > { %v3215_v34 = vadd.f32 %v3214_v33, %v3213_v28  ;;  %v4374_v38 = vadd.f32 %v3252_v31, %v1333_v27  ;;  %v3254_v40 = vpop.f32.mrf.mxu1 }
 0x11a   : > { %v3216_v36 = vpop.f32.mrf.mxu0  ;;  %v3255_v32 = vadd.f32 %v3254_v40, %v3253_v35 }
 0x11b   : > { %v1338_v39 = vadd.f32 %v3215_v34, %v1273_v46  ;;  %v3256_v43 = vpop.f32.mrf.mxu1 }
 0x11c   : > { %v3217_v41 = vpop.f32.mrf.mxu0 }
 0x11d   : > { %v3218_v42 = vadd.f32 %v3217_v41, %v3216_v36  ;;  %v1403_v44 = vadd.f32 %v3255_v32, %v1338_v39  ;;  %v3257_v47 = vpop.f32.mrf.mxu1 }
 0x11e   : > { %v3219_v37 = vpop.f32.mrf.mxu0  ;;  %v3258_v48 = vadd.f32 %v3257_v47, %v3256_v43 }
 0x11f   : > { %v1341_v45 = vadd.f32 %v3218_v42, %v1276_v51  ;;  %v3259_v52 = vpop.f32.mrf.mxu1 }
 0x120   : > { %v3220_v49 = vpop.f32.mrf.mxu0 }
 0x121   : > { %v3221_v50 = vadd.f32 %v3220_v49, %v3219_v37  ;;  %v4376_v53 = vadd.f32 %v3258_v48, %v1341_v45  ;;  %v3260_v56 = vpop.f32.mrf.mxu1 }
 0x122   : > { %v3222_v54 = vpop.f32.mrf.mxu0  ;;  %v3261_v57 = vadd.f32 %v3260_v56, %v3259_v52 }
 0x123   : > { %v1346_v55 = vadd.f32 %v3221_v50, %v1281_v60  ;;  %v3262_v59 = vpop.f32.mrf.mxu1 }
 0x124   : > { %v3223_v46 = vpop.f32.mrf.mxu0 }
 0x125   : > { %v3224_v58 = vadd.f32 %v3223_v46, %v3222_v54  ;;  %v1411_v62 = vadd.f32 %v3261_v57, %v1346_v55  ;;  %v3263_v0 = vpop.f32.mrf.mxu1 }
 0x126   : > { %v3225_v61 = vpop.f32.mrf.mxu0  ;;  %v3264_v51 = vadd.f32 %v3263_v0, %v3262_v59 }
 0x127   : > { %v1349_v63 = vadd.f32 %v3224_v58, %v1284_v1  ;;  %v3265_v4 = vpop.f32.mrf.mxu1 }
 0x128   : > { %v3226_v2 = vpop.f32.mrf.mxu0 }
 0x129   : > { %v3227_v3 = vadd.f32 %v3226_v2, %v3225_v61  ;;  %v4378_v6 = vadd.f32 %v3264_v51, %v1349_v63  ;;  %v3266_v8 = vpop.f32.mrf.mxu1 }
 0x12a   : > { %v3228_v5 = vpop.f32.mrf.mxu0  ;;  %v3267_v9 = vadd.f32 %v3266_v8, %v3265_v4 }
 0x12b   : > { %4515 = vst [vmem:[#allocation3_spill] sm:$0xff] %v4378_v6  ;;  %v1354_v7 = vadd.f32 %v3227_v3, %v1289_v10  ;;  %v3268_v12 = vpop.f32.mrf.mxu1 }
 0x12c   : > { %v3229_v60 = vpop.f32.mrf.mxu0 }
 0x12d   : > { %v3230_v11 = vadd.f32 %v3229_v60, %v3228_v5  ;;  %v1419_v13 = vadd.f32 %v3267_v9, %v1354_v7  ;;  %v3269_v16 = vpop.f32.mrf.mxu1 }
 0x12e   : > { %v3270_v17 = vadd.f32 %v3269_v16, %v3268_v12  ;;  %v3473_v18 = vpop.f32.mrf.mxu0 }
 0x12f   : > { %v1357_v14 = vadd.f32 %v3230_v11, %v1292_v15  ;;  %v4380_v1 = vadd.f32 %v3473_v18, %v1403_v44  ;;  %v3299_v21 = vpop.f32.mrf.mxu1 }
 0x130   : > { %v4382_v19 = vpop.f32.mrf.mxu0 }
 0x131   : > { %v1422_v20 = vadd.f32 %v3270_v17, %v1357_v14  ;;  %v3300_v23 = vpop.f32.mrf.mxu1 }
 0x132   : > { %v4384_v22 = vpop.f32.mrf.mxu0  ;;  %v3301_v18 = vadd.f32 %v3300_v23, %v3299_v21 }
 0x133   : > { %v3302_v24 = vpop.f32.mrf.mxu1 }
 0x134   : > { %v4386_v10 = vpop.f32.mrf.mxu0 }
 0x135   : > { %v3303_v25 = vpop.f32.mrf.mxu1 }
 0x136   : > { %v3477_v26 = vpop.f32.mrf.mxu0 }
 0x137   : > { %v4388_v27 = vadd.f32 %v3477_v26, %v1419_v13  ;;  %v3305_v30 = vpop.f32.mrf.mxu1 }
 0x138   : > { %v1475_v15 = vpop.f32.mrf.mxu0 }
 0x139   : > { %4516 = vst [vmem:[#allocation4_spill] sm:$0xff] %v4388_v27  ;;  %v4390_v28 = vadd.f32 %v1475_v15, %v1411_v62  ;;  %v3306_v34 = vpop.f32.mrf.mxu1 }
 0x13a   : > { %v3478_v31 = vpop.f32.mrf.mxu0 }
 0x13b   : > { %4517 = vst [vmem:[#allocation5_spill] sm:$0xff] %v4390_v28  ;;  %v4392_v33 = vadd.f32 %v3478_v31, %v1422_v20  ;;  %v4394_v35 = vpop.f32.mrf.mxu1 }
 0x13c   : > { %v4412_v45 = vpop.f32.mrf.mxu0 }
 0x13d   : > { %4518 = vst [vmem:[#allocation6_spill] sm:$0xff] %v4392_v33  ;;  %v4396_v36 = vpop.f32.mrf.mxu1  ;;  %4520 = vst [vmem:[#allocation8_spill] sm:$0xff] %v4412_v45  ;;  %v3304_v33 = vadd.f32 %v3303_v25, %v3302_v24 }
 0x13f   : > { %v4398_v39 = vpop.f32.mrf.mxu1 }
 0x141   : > { %v4400_v40 = vpop.f32.mrf.mxu1 }
 0x143   : > { %v4402_v32 = vpop.f32.mrf.mxu1 }
 0x145   : > { %v4404_v41 = vpop.f32.mrf.mxu1 }
 0x147   : > { %v4406_v42 = vpop.f32.mrf.mxu1 }
 0x149   : > { %v4408_v43 = vpop.f32.mrf.mxu1 }
 0x14b   : > { %v4410_v44 = vpop.f32.mrf.mxu1 }
 0x14c   : > { %4519 = vst [vmem:[#allocation7_spill] sm:$0xff] %v4410_v44 }
 0x14d   : > { %v4414_v37 = vpop.f32.mrf.mxu1 }
 0x14e   : > { %4521 = vst [vmem:[#allocation9_spill] sm:$0xff] %v4414_v37  ;;  %v3339_v47 = vpop.f32.mrf.mxu0 }
 0x14f   : > { %v3379_v49 = vpop.f32.mrf.mxu1 }
 0x150   : > { %v3340_v48 = vpop.f32.mrf.mxu0 }
 0x151   : > { %v3380_v52 = vpop.f32.mrf.mxu1  ;;  %v3341_v14 = vadd.f32 %v3340_v48, %v3339_v47 }
 0x152   : > { %v3342_v50 = vpop.f32.mrf.mxu0  ;;  %v3381_v31 = vadd.f32 %v3380_v52, %v3379_v49 }
 0x153   : > { %v3382_v55 = vpop.f32.mrf.mxu1  ;;  %v2414_v15 = vadd.f32 %v3341_v14, %v3301_v18 }
 0x154   : > { %v3343_v54 = vpop.f32.mrf.mxu0 }
 0x155   : > { %v3383_v57 = vpop.f32.mrf.mxu1  ;;  %v3344_v20 = vadd.f32 %v3343_v54, %v3342_v50  ;;  %v2479_v44 = vadd.f32 %v3381_v31, %v2414_v15 }
 0x156   : > { %v3345_v56 = vpop.f32.mrf.mxu0  ;;  %v3384_v45 = vadd.f32 %v3383_v57, %v3382_v55 }
 0x157   : > { %v3385_v58 = vpop.f32.mrf.mxu1  ;;  %v2417_v28 = vadd.f32 %v3344_v20, %v3304_v33  ;;  %v3310_v33 = vadd.f32 %v4396_v36, %v4394_v35  ;;  %v3313_v35 = vadd.f32 %v4400_v40, %v4398_v39 }
 0x158   : > { %v3346_v46 = vpop.f32.mrf.mxu0 }
 0x159   : > { %v3386_v61 = vpop.f32.mrf.mxu1  ;;  %v2482_v21 = vadd.f32 %v3384_v45, %v2417_v28  ;;  %v1463_v28 = vadd.f32 %v4386_v10, %v4374_v38 }
 0x15a   : > { %v3348_v59 = vpop.f32.mrf.mxu0  ;;  %v3387_v49 = vadd.f32 %v3386_v61, %v3385_v58 }
 0x15b   : > { %v3388_v63 = vpop.f32.mrf.mxu1 }
 0x15c   : > { %v3349_v62 = vpop.f32.mrf.mxu0 }
 0x15d   : > { %v3389_v51 = vpop.f32.mrf.mxu1  ;;  %v3350_v23 = vadd.f32 %v3349_v62, %v3348_v59 }
 0x15e   : > { %v3351_v0 = vpop.f32.mrf.mxu0 }
 0x15f   : > { %v4416_v3 = vpop.f32.mrf.mxu1 }
 0x160   : > { %v3352_v2 = vpop.f32.mrf.mxu0 }
 0x161   : > { %v3392_v5 = vpop.f32.mrf.mxu1 }
 0x162   : > { %v4418_v4 = vpop.f32.mrf.mxu0 }
 0x163   : > { %v4420_v8 = vpop.f32.mrf.mxu1 }
 0x164   : > { %v3355_v7 = vpop.f32.mrf.mxu0 }
 0x165   : > { %v4424_v60 = vpop.f32.mrf.mxu1 }
 0x166   : > { %v4422_v9 = vpop.f32.mrf.mxu0  ;;  %v3396_v18 = vadd.f32 %v4424_v60, %v4420_v8 }
 0x167   : > { %v4428_v12 = vpop.f32.mrf.mxu1 }
 0x168   : > { %v4426_v11 = vpop.f32.mrf.mxu0  ;;  %4522 = vst [vmem:[#allocation10_spill] sm:$0xff] %v4428_v12  ;;  %v3307_v12 = vadd.f32 %v3306_v34, %v3305_v30  ;;  %v2425_v30 = vadd.f32 %v3350_v23, %v3310_v33  ;;  %v3390_v34 = vadd.f32 %v3389_v51, %v3388_v63  ;;  %v3393_v63 = vadd.f32 %v3392_v5, %v4416_v3 }
 0x169   : > { %v4432_v16 = vpop.f32.mrf.mxu1 }
 0x16a   : > { %v4430_v13 = vpop.f32.mrf.mxu0  ;;  %4524 = vst [vmem:[#allocation12_spill] sm:$0xff] %v4432_v16  ;;  %v2490_v61 = vadd.f32 %v3390_v34, %v2425_v30  ;;  %v4532_v34 = vld [vmem:[#allocation3_spill] sm:$0xff] }
 0x16b   : > { %4523 = vst [vmem:[#allocation11_spill] sm:$0xff] %v4430_v13  ;;  %v4436_v26 = vpop.f32.mrf.mxu1  ;;  %v3347_v13 = vadd.f32 %v3346_v46, %v3345_v56 }
 0x16c   : > { %v4434_v17 = vpop.f32.mrf.mxu0 }
 0x16d   : > { %4525 = vst [vmem:[#allocation13_spill] sm:$0xff] %v4434_v17  ;;  %v4438_v6 = vpop.f32.mrf.mxu1  ;;  %v2422_v14 = vadd.f32 %v3347_v13, %v3307_v12  ;;  %v3316_v13 = vadd.f32 %v4404_v41, %v4402_v32  ;;  %v3359_v32 = vadd.f32 %v4426_v11, %v4422_v9 }
 0x16e   : > { %v3419_v27 = vpop.f32.mrf.mxu0 }
 0x16f   : > { %v3497_v16 = vpop.f32.mrf.mxu1  ;;  %v2487_v57 = vadd.f32 %v3387_v49, %v2422_v14  ;;  %v4526_v8 = vld [vmem:[#allocation10_spill] sm:$0xff] }
 0x170   : > { %v3420_v37 = vpop.f32.mrf.mxu0 }
 0x171   : > { %v3421_v47 = vadd.f32 %v3420_v37, %v3419_v27  ;;  %v2608_v54 = vpop.f32.mrf.mxu1  ;;  %v1460_v27 = vadd.f32 %v4382_v19, %v4372_v29  ;;  %v4451_v29 = vld [vmem:[%s4513_s4] ss:$0 sm:$0xff]  ;;  %v4527_v60 = vld [vmem:[#allocation12_spill] sm:$0xff] }
 0x172   : > { %v3422_v48 = vpop.f32.mrf.mxu0  ;;  %v3399_v14 = vadd.f32 %v4527_v60, %v4526_v8  ;;  %v4528_v9 = vld [vmem:[#allocation11_spill] sm:$0xff] }
 0x173   : > { %v2544_v17 = vadd.f32 %v3421_v47, %v2479_v44  ;;  %v3498_v55 = vpop.f32.mrf.mxu1  ;;  %v3353_v44 = vadd.f32 %v3352_v2, %v3351_v0  ;;  %v3356_v0 = vadd.f32 %v3355_v7, %v4418_v4  ;;  %v1471_v7 = vadd.f32 %v4384_v22, %v4376_v53 }
 0x174   : > { %v3423_v50 = vpop.f32.mrf.mxu0  ;;  %v4529_v11 = vld [vmem:[#allocation13_spill] sm:$0xff] }
 0x175   : > { %v3424_v24 = vadd.f32 %v3423_v50, %v3422_v48  ;;  %v2609_v25 = vadd.f32 %v2608_v54, %v2544_v17  ;;  %v2611_v56 = vpop.f32.mrf.mxu1  ;;  %v2430_v62 = vadd.f32 %v3353_v44, %v3313_v35  ;;  %v3319_v48 = vadd.f32 %v4408_v43, %v4406_v42  ;;  %v4530_v43 = vld [vmem:[#allocation7_spill] sm:$0xff]  ;;  %v4533_v44 = vld [vmem:[#allocation8_spill] sm:$0xff] }
 0x176   : > { %v3425_v52 = vpop.f32.mrf.mxu0  ;;  %v3362_v49 = vadd.f32 %v4529_v11, %v4528_v9 }
 0x177   : > { %v2547_v37 = vadd.f32 %v3424_v24, %v2482_v21  ;;  %v2639_v46 = vadd.f32 %v2609_v25, %v1460_v27  ;;  %v4453_v36 = vpop.f32.mrf.mxu1  ;;  %v2495_v20 = vadd.f32 %v3393_v63, %v2430_v62  ;;  %v2438_v54 = vadd.f32 %v3359_v32, %v3319_v48 }
 0x178   : > { %v3426_v45 = vpop.f32.mrf.mxu0 }
 0x179   : > { %v3427_v58 = vadd.f32 %v3426_v45, %v3425_v52  ;;  %v2612_v59 = vadd.f32 %v2611_v56, %v2547_v37  ;;  %v2673_v39 = vadd.f32 %v4451_v29, %v2639_v46  ;;  %v2624_v3 = vpop.f32.mrf.mxu1  ;;  %v4531_v52 = vld [vmem:[#allocation9_spill] sm:$0xff]  ;;  %v1479_v45 = vadd.f32 %v4533_v44, %v4532_v34 }
 0x17a   : > { %v3428_v19 = vpop.f32.mrf.mxu0 }
 0x17b   : > { %v2552_v38 = vadd.f32 %v3427_v58, %v2487_v57  ;;  %v2640_v10 = vadd.f32 %v2612_v59, %v1463_v28  ;;  %v3502_v23 = vpop.f32.mrf.mxu1  ;;  %v3402_v57 = vadd.f32 %v4438_v6, %v4436_v26  ;;  %v2503_v58 = vadd.f32 %v3399_v14, %v2438_v54  ;;  %v4534_v59 = vld [vmem:[#allocation5_spill] sm:$0xff] }
 0x17c   : > { %v3429_v51 = vpop.f32.mrf.mxu0 }
 0x17d   : > { %v2617_v40 = vadd.f32 %v3497_v16, %v2552_v38  ;;  %v2674_v2 = vadd.f32 %v4451_v29, %v2640_v10  ;;  %v3430_v12 = vadd.f32 %v3429_v51, %v3428_v19  ;;  %v2433_v16 = vadd.f32 %v3356_v0, %v3316_v13  ;;  %v2627_v37 = vpop.f32.mrf.mxu1 }
 0x17e   : > { %v3431_v17 = vpop.f32.mrf.mxu0 }
 0x17f   : > { %v3091_v5 = vpack.c.bf16 %v2674_v2, %v2673_v39  ;;  %v2555_v4 = vadd.f32 %v3430_v12, %v2490_v61  ;;  %v2641_v15 = vadd.f32 %v2617_v40, %v4380_v1  ;;  %v2498_v50 = vadd.f32 %v3396_v18, %v2433_v16  ;;  %v4535_v12 = vld [vmem:[#allocation4_spill] sm:$0xff] }
 0x180   : > { %v3432_v41 = vpop.f32.mrf.mxu0 }
 0x181   : > { %3092 = vst [vmem:[%s4465_s6] sm:$0xff] %v3091_v5   ;;  %v2620_v31 = vadd.f32 %v3498_v55, %v2555_v4  ;;  %v3433_v47 = vadd.f32 %v3432_v41, %v3431_v17  ;;  %v2675_v24 = vadd.f32 %v4451_v29, %v2641_v15  ;;  %v3322_v55 = vadd.f32 %v4531_v52, %v4530_v43 }
 0x182   : > { %v3434_v21 = vpop.f32.mrf.mxu0 }
 0x183   : > { %v2642_v53 = vadd.f32 %v2620_v31, %v1471_v7  ;;  %v2560_v22 = vadd.f32 %v3433_v47, %v2495_v20  ;;  %v2441_v56 = vadd.f32 %v3362_v49, %v3322_v55 }
 0x184   : > { %v3435_v1 = vpop.f32.mrf.mxu0 }
 0x185   : > { %v2676_v25 = vadd.f32 %v4451_v29, %v2642_v53  ;;  %v3436_v33 = vadd.f32 %v3435_v1, %v3434_v21  ;;  %v2625_v42 = vadd.f32 %v2624_v3, %v2560_v22  ;;  %v2506_v63 = vadd.f32 %v3402_v57, %v2441_v56  ;;  %v4536_v3 = vld [vmem:[#allocation6_spill] sm:$0xff] }
 0x186   : > { %v3437_v27 = vpop.f32.mrf.mxu0 }
 0x187   : > { %v3096_v28 = vpack.c.bf16 %v2676_v25, %v2675_v24  ;;  %v2563_v30 = vadd.f32 %v3436_v33, %v2498_v50  ;;  %v2643_v35 = vadd.f32 %v2625_v42, %v4534_v59 }
 0x188   : > { %v3438_v46 = vpop.f32.mrf.mxu0 }
 0x189   : > { %3108 = vst [vmem:[%s4465_s6 + $0x8] sm:$0xff] %v3096_v28   ;;  %v3439_v19 = vadd.f32 %v3438_v46, %v3437_v27  ;;  %v2628_v38 = vadd.f32 %v2627_v37, %v2563_v30  ;;  %v2677_v51 = vadd.f32 %v4451_v29, %v2643_v35 }
 0x18a   : > { %v3440_v10 = vpop.f32.mrf.mxu0 }
 0x18b   : > { %v2568_v61 = vadd.f32 %v3439_v19, %v2503_v58  ;;  %v2644_v62 = vadd.f32 %v2628_v38, %v1479_v45 }
 0x18c   : > { %v3441_v0 = vpop.f32.mrf.mxu0 }
 0x18d   : > { %v2633_v39 = vadd.f32 %v4453_v36, %v2568_v61  ;;  %v2678_v6 = vadd.f32 %v4451_v29, %v2644_v62  ;;  %v3442_v26 = vadd.f32 %v3441_v0, %v3440_v10 }
 0x18f   : > { %v3101_v40 = vpack.c.bf16 %v2678_v6, %v2677_v51  ;;  %v2571_v2 = vadd.f32 %v3442_v26, %v2506_v63  ;;  %v2645_v13 = vadd.f32 %v2633_v39, %v4535_v12 }
 0x191   : > { %3109 = vst [vmem:[%s4465_s6 + $0x10] sm:$0xff] %v3101_v40   ;;  %v2636_v17 = vadd.f32 %v3502_v23, %v2571_v2  ;;  %v2679_v4 = vadd.f32 %v4451_v29, %v2645_v13 }
 0x193   : > { %v2646_v5 = vadd.f32 %v2636_v17, %v4536_v3 }
 0x195   : > { %v2680_v7 = vadd.f32 %v4451_v29, %v2646_v5 }
 0x197   : > { %v3106_v16 = vpack.c.bf16 %v2680_v7, %v2679_v4 }
 0x199   : > { %3110 = vst [vmem:[%s4465_s6 + $0x18] sm:$0xff] %v3106_v16  }
 0x19a PF: > { %s15_s20 = sadd.s32 1, %s3798_s20   ;;  %s4537_s18 = smov %s3794_s19 }
 0x19b   : > { %p12_p5 = scmp.ge.s32.totalorder %s15_s20, 4   ;;  %s4538_s19 = smov %s4540_s21 }
 0x19d   :  { %14 = sbr.rel (!%p12_p5) target bundleno = 2 (0x2), region = 87 }

</bundles_post_ra>
